<compile_context>
chip_gen: v7x
topology: tpu7x:2x2x1
jax: 0.10.0
libtpu: 0.0.40
codegen_flags: <defaults>
</compile_context>

<pallas_src>
import functools

import numpy as np
import jax
import jax.numpy as jnp
from jax.experimental import pallas as pl
from jax.experimental.pallas import tpu as pltpu

NUM_PARTS = 24          # num joints
LATENT_DIM = 128
SEQ_LEN = 32            # sequence_length; pools (4,4,2) reduce 32 -> 1
_POOLS = (4, 4, 2)
_GUARD = 8              # guard rows around the staging buffer for +/-1 shifts


def foot_contact_kernel(x_ref, w_emb_ref, b_emb_ref, wconv_ref, bconv_ref,
                        w_fc_ref, b_fc_ref, mprev_ref, mnext_ref,
                        out_ref, buf, taps, *, tb, seq_len):
    """One grid step processes `tb` samples packed along the sublane dim."""
    C = LATENT_DIM
    n0 = tb * seq_len

    # Zero the guard rows every step (2 vector stores).  Not gated on
    # program_id == 0: with megacore "parallel" semantics each core has its
    # own scratch and only one of them runs step 0; garbage bits could be NaN
    # and NaN * 0 != 0 under the multiplicative boundary masks below.
    buf[pl.ds(0, _GUARD), :] = jnp.zeros((_GUARD, C), jnp.float32)
    buf[pl.ds(_GUARD + n0, _GUARD), :] = jnp.zeros((_GUARD, C), jnp.float32)

    # j_embedding: (tb*F, 72) @ (72, 128), bf16 operands, f32 accumulation.
    h = jnp.dot(x_ref[...], w_emb_ref[...],
                preferred_element_type=jnp.float32) + b_emb_ref[...]
    buf[pl.ds(_GUARD, n0), :] = h

    L = seq_len
    moff = 0
    pooled = None
    for layer, k in enumerate(_POOLS):
        N = tb * L
        mprev = mprev_ref[moff:moff + N, :]     # bf16, 0.0 at t == 0 rows
        mnext = mnext_ref[moff:moff + N, :]     # bf16, 0.0 at t == L-1 rows
        moff += N

        # ---- 3-tap temporal conv: build [prev | center | next] bf16 slab ---
        # Offset reads of the staging buffer give the +/-1 time shift; the
        # masks zero the rows that would otherwise leak across packed samples
        # (the leaked values are always finite: guard rows or stale, already
        # written activations).
        taps[:N, 0:C] = buf[pl.ds(_GUARD - 1, N), :].astype(jnp.bfloat16) * mprev
        taps[:N, C:2 * C] = buf[pl.ds(_GUARD, N), :].astype(jnp.bfloat16)
        taps[:N, 2 * C:3 * C] = buf[pl.ds(_GUARD + 1, N), :].astype(jnp.bfloat16) * mnext

        # One fused K=384 MXU matmul per layer, then bias + ReLU.
        z = jnp.dot(taps[:N, :], wconv_ref[layer],
                    preferred_element_type=jnp.float32)
        z = jnp.maximum(z + bconv_ref[layer], 0.0)

        # ---- non-overlapping max pool (window/stride k) along time ---------
        buf[pl.ds(_GUARD, N), :] = z
        L = L // k
        No = tb * L
        p = buf[pl.ds(_GUARD, No, k), :]
        for j in range(1, k):
            p = jnp.maximum(p, buf[pl.ds(_GUARD + j, No, k), :])
        if layer + 1 < len(_POOLS):
            buf[pl.ds(_GUARD, No), :] = p       # next layer's center tap
        pooled = p

    # After the 4*4*2 pools L == 1, so pooled is (tb, C).  fc_a o fc_b folded
    # into one matmul in the wrapper (output lanes padded to 128; first 2 real).
    out_ref[...] = jnp.dot(pooled.astype(jnp.bfloat16), w_fc_ref[...],
                           preferred_element_type=jnp.float32) + b_fc_ref[...]


def _pick_tb(batch, tb_max=128):
    """Samples per grid step: multiple of 8, <= tb_max, minimal padding.
    Large batches automatically give >= 2 grid steps (feeds both v7x cores)."""
    b8 = -(-batch // 8) * 8
    if b8 <= tb_max:
        return b8
    n_steps = -(-b8 // tb_max)
    return -(-(b8 // 8) // n_steps) * 8


def _boundary_masks(tb, seq_len):
    """Lane-replicated bf16 masks zeroing the prev tap at t==0 and the next
    tap at t==L-1 of every packed sample, stacked per layer along rows."""
    prev_parts, next_parts = [], []
    L = seq_len
    for k in _POOLS:
        t = np.arange(tb * L) % L
        prev_parts.append((t != 0).astype(np.float32))
        next_parts.append((t != L - 1).astype(np.float32))
        L //= k
    mp = np.repeat(np.concatenate(prev_parts)[:, None], LATENT_DIM, axis=1)
    mn = np.repeat(np.concatenate(next_parts)[:, None], LATENT_DIM, axis=1)
    return (jnp.asarray(mp, dtype=jnp.bfloat16),
            jnp.asarray(mn, dtype=jnp.bfloat16))


def foot_contact_forward(img_smpl_joints, params, *, tb=None):
    """img_smpl_joints: (B, F, J, 3) float32.  Returns (B, 1, 2) float32.

    `tb` = samples per grid step (multiple of 8).  Default picks up to 128,
    capped at round_up(B, 8) so small batches don't compute padding.  At
    tb <= 128 everything fits well under the default 32 MiB scoped VMEM; raise
    vmem_limit_bytes only if you push tb >= 256.
    """
    B, F, J, _ = img_smpl_joints.shape
    C = LATENT_DIM
    assert F == SEQ_LEN, "pools (4,4,2) require sequence_length == 32"
    assert J == NUM_PARTS
    if tb is None:
        tb = _pick_tb(B)
    assert tb % 8 == 0 and tb >= 8, "tb must be a multiple of 8"

    n_steps = -(-B // tb)
    b_pad = n_steps * tb

    # ---- operand prep (cheap one-off XLA ops) ------------------------------
    x = img_smpl_joints.reshape(B, F, J * 3)
    x = jnp.pad(x, ((0, b_pad - B), (0, 0), (0, 0)))            # batch pad only
    x = x.reshape(b_pad * F, J * 3).astype(jnp.bfloat16)        # K = 72, no lane pad

    w_emb = params["w_emb"].astype(jnp.bfloat16)                # (72, 128)
    wconv = params["wconv"].astype(jnp.bfloat16)                # (3, 3C, C)
    b_emb, bconv = params["b_emb"], params["bconv"]

    # Fold fc_a o fc_b (no activation between them).  Factors are rounded to
    # bf16 first so numerics track the unfused bf16 path closely.
    wa = params["wa"].astype(jnp.bfloat16).astype(jnp.float32)
    wb = params["wb"].astype(jnp.bfloat16).astype(jnp.float32)
    w_fc = jnp.pad(wa @ wb, ((0, 0), (0, C - 2))).astype(jnp.bfloat16)
    b_fc = jnp.pad(params["ba"] @ wb + params["bb"], ((0, 0), (0, C - 2)))

    mprev, mnext = _boundary_masks(tb, F)
    mask_rows = mprev.shape[0]                                  # tb * 42

    kernel = functools.partial(foot_contact_kernel, tb=tb, seq_len=F)
    grid_spec = pltpu.PrefetchScalarGridSpec(
        num_scalar_prefetch=0,
        grid=(n_steps,),
        in_specs=[
            pl.BlockSpec((tb * F, J * 3), lambda b: (b, 0)),     # packed joints (bf16)
            pl.BlockSpec((J * 3, C), lambda b: (0, 0)),          # j_embedding W (72,128)
            pl.BlockSpec((1, C), lambda b: (0, 0)),              # j_embedding bias
            pl.BlockSpec((3, 3 * C, C), lambda b: (0, 0, 0)),    # conv W, taps on K
            pl.BlockSpec((3, 1, C), lambda b: (0, 0, 0)),        # conv biases
            pl.BlockSpec((C, C), lambda b: (0, 0)),              # fused fc W
            pl.BlockSpec((1, C), lambda b: (0, 0)),              # fused fc bias
            pl.BlockSpec((mask_rows, C), lambda b: (0, 0)),      # prev-tap mask (bf16)
            pl.BlockSpec((mask_rows, C), lambda b: (0, 0)),      # next-tap mask (bf16)
        ],
        out_specs=pl.BlockSpec((tb, C), lambda b: (b, 0)),
        scratch_shapes=[
            pltpu.VMEM((tb * F + 2 * _GUARD, C), jnp.float32),   # f32 staging buffer
            pltpu.VMEM((tb * F, 3 * C), jnp.bfloat16),           # bf16 taps slab
        ],
    )

    out = pl.pallas_call(
        kernel,
        out_shape=jax.ShapeDtypeStruct((b_pad, C), jnp.float32),
        grid_spec=grid_spec,
        compiler_params=pltpu.CompilerParams(dimension_semantics=("parallel",)),
    )(x, w_emb, b_emb, wconv, bconv, w_fc, b_fc, mprev, mnext)

    return out[:B, :2].reshape(B, 1, 2)


def foot_contact_reference(img_smpl_joints, params):
    """Pure-JAX forward mirroring the PyTorch module (same bf16 weight cast)."""
    B, F, J, _ = img_smpl_joints.shape
    C = LATENT_DIM
    bf = jnp.bfloat16
    h = img_smpl_joints.reshape(B, F, J * 3).astype(bf)
    h = jnp.dot(h, params["w_emb"].astype(bf),
                preferred_element_type=jnp.float32) + params["b_emb"]
    for layer, k in enumerate(_POOLS):
        w = params["wconv"][layer].astype(bf)                     # (3C, C)
        L = h.shape[1]
        zero = jnp.zeros((B, 1, C), h.dtype)
        h_prev = jnp.concatenate([zero, h[:, :-1]], axis=1)
        h_next = jnp.concatenate([h[:, 1:], zero], axis=1)
        z = (jnp.dot(h_prev.astype(bf), w[:C], preferred_element_type=jnp.float32)
             + jnp.dot(h.astype(bf), w[C:2 * C], preferred_element_type=jnp.float32)
             + jnp.dot(h_next.astype(bf), w[2 * C:], preferred_element_type=jnp.float32)
             + params["bconv"][layer])
        z = jnp.maximum(z, 0.0)
        h = z.reshape(B, L // k, k, C).max(axis=2)
    h = jnp.dot(h.astype(bf), params["wa"].astype(bf),
                preferred_element_type=jnp.float32) + params["ba"]
    h = jnp.dot(h.astype(bf), params["wb"].astype(bf),
                preferred_element_type=jnp.float32) + params["bb"]
    return h                                                      # (B, 1, 2)


def init_params(key):
    """Deterministic synthetic params (shapes from FootContactModel.__init__).

    Conv weights are stored pre-stacked per layer as (3*Cin, Cout) =
    concat([W[:,:,0,0].T, W[:,:,0,1].T, W[:,:,0,2].T]) i.e. [prev; center; next]
    taps stacked along K; Linear weights stored as (in, out)."""
    C, J3 = LATENT_DIM, NUM_PARTS * 3
    ks = jax.random.split(key, 8)
    s = 0.05
    return dict(
        w_emb=jax.random.normal(ks[0], (J3, C), jnp.float32) * s,
        b_emb=jax.random.normal(ks[1], (1, C), jnp.float32) * s,
        wconv=jax.random.normal(ks[2], (3, 3 * C, C), jnp.float32) * s,
        bconv=jax.random.normal(ks[3], (3, 1, C), jnp.float32) * s,
        wa=jax.random.normal(ks[4], (C, C), jnp.float32) * s,
        ba=jax.random.normal(ks[5], (1, C), jnp.float32) * s,
        wb=jax.random.normal(ks[6], (C, 2), jnp.float32) * s,
        bb=jax.random.normal(ks[7], (1, 2), jnp.float32) * s,
    )


if __name__ == "__main__":
    key = jax.random.PRNGKey(0)
    pkey, xkey = jax.random.split(key)
    params = init_params(pkey)

    batch = 20
    x = jax.random.normal(xkey, (batch, SEQ_LEN, NUM_PARTS, 3), jnp.float32)

    ref = jax.block_until_ready(foot_contact_reference(x, params))

    # auto tb (24 -> single grid step, exercises batch padding 20 -> 24)
    out_auto = jax.block_until_ready(foot_contact_forward(x, params))
    # explicit small tb (3 grid steps, exercises scratch reuse across steps)
    out_multi = jax.block_until_ready(foot_contact_forward(x, params, tb=8))

    for out in (out_auto, out_multi):
        assert out.shape == (batch, 1, 2) and out.dtype == jnp.float32
        max_err = float(jnp.max(jnp.abs(out - ref)))
        # bf16 matmul path + folded fc; tolerance covers bf16 rounding only.
        assert max_err < 5e-3, f"kernel/reference mismatch: {max_err}"
    print("KERNEL_OK")
</pallas_src>

<mosaic_0001>
module attributes {stable_mosaic.version = 11 : i64} {
  func.func @foot_contact_kernel(%arg0: i32, %arg1: memref<768x72xbf16, #tpu.memory_space<vmem>>, %arg2: memref<72x128xbf16, #tpu.memory_space<vmem>>, %arg3: memref<1x128xf32, #tpu.memory_space<vmem>>, %arg4: memref<3x384x128xbf16, #tpu.memory_space<vmem>>, %arg5: memref<3x1x128xf32, #tpu.memory_space<vmem>>, %arg6: memref<128x128xbf16, #tpu.memory_space<vmem>>, %arg7: memref<1x128xf32, #tpu.memory_space<vmem>>, %arg8: memref<1008x128xbf16, #tpu.memory_space<vmem>>, %arg9: memref<1008x128xbf16, #tpu.memory_space<vmem>>, %arg10: memref<24x128xf32, #tpu.memory_space<vmem>>, %arg11: memref<784x128xf32, #tpu.memory_space<vmem>>, %arg12: memref<768x384xbf16, #tpu.memory_space<vmem>>) attributes {dimension_semantics = [#tpu.dimension_semantics<parallel>], iteration_bounds = array<i64: 1>, scalar_prefetch = 0 : i64, scratch_operands = 2 : i64, tpu.core_type = #tpu.core_type<tc>, window_params = [{transform_indices = @transform_0, window_bounds = array<i64: 768, 72>}, {pipeline_mode = #tpu.pipeline_mode<synchronous>, transform_indices = @transform_1, window_bounds = array<i64: 72, 128>}, {pipeline_mode = #tpu.pipeline_mode<synchronous>, transform_indices = @transform_2, window_bounds = array<i64: 1, 128>}, {pipeline_mode = #tpu.pipeline_mode<synchronous>, transform_indices = @transform_3, window_bounds = array<i64: 3, 384, 128>}, {pipeline_mode = #tpu.pipeline_mode<synchronous>, transform_indices = @transform_4, window_bounds = array<i64: 3, 1, 128>}, {pipeline_mode = #tpu.pipeline_mode<synchronous>, transform_indices = @transform_5, window_bounds = array<i64: 128, 128>}, {pipeline_mode = #tpu.pipeline_mode<synchronous>, transform_indices = @transform_6, window_bounds = array<i64: 1, 128>}, {pipeline_mode = #tpu.pipeline_mode<synchronous>, transform_indices = @transform_7, window_bounds = array<i64: 1008, 128>}, {pipeline_mode = #tpu.pipeline_mode<synchronous>, transform_indices = @transform_8, window_bounds = array<i64: 1008, 128>}, {transform_indices = @transform_9, window_bounds = array<i64: 24, 128>}]} {
    %cst = arith.constant 0.000000e+00 : f32
    %0 = vector.broadcast %cst : f32 to vector<8x128xf32>
    %c0 = arith.constant 0 : index
    %c0_0 = arith.constant 0 : index
    %1 = vector.load %arg11[%c0, %c0_0] : memref<784x128xf32, #tpu.memory_space<vmem>>, vector<8x128xf32>
    tpu.vector_store %arg11[%c0, %c0_0], %0 {strides = array<i32>} : memref<784x128xf32, #tpu.memory_space<vmem>>, vector<8x128xf32>,
    %cst_1 = arith.constant 0.000000e+00 : f32
    %2 = vector.broadcast %cst_1 : f32 to vector<8x128xf32>
    %c776 = arith.constant 776 : index
    %c0_2 = arith.constant 0 : index
    %3 = vector.load %arg11[%c776, %c0_2] : memref<784x128xf32, #tpu.memory_space<vmem>>, vector<8x128xf32>
    tpu.vector_store %arg11[%c776, %c0_2], %2 {strides = array<i32>} : memref<784x128xf32, #tpu.memory_space<vmem>>, vector<8x128xf32>,
    %c0_3 = arith.constant 0 : index
    %c0_4 = arith.constant 0 : index
    %4 = vector.load %arg1[%c0_3, %c0_4] : memref<768x72xbf16, #tpu.memory_space<vmem>>, vector<768x72xbf16>
    %c0_5 = arith.constant 0 : index
    %c0_6 = arith.constant 0 : index
    %5 = vector.load %arg2[%c0_5, %c0_6] : memref<72x128xbf16, #tpu.memory_space<vmem>>, vector<72x128xbf16>
    %cst_7 = arith.constant dense<0.000000e+00> : vector<768x128xf32>
    %6 = tpu.matmul %4, %5, %cst_7 {dimension_numbers = #tpu.dot_dimension_numbers<[1], [0], [0], [1], [0, 0, 1, 1], [], []>} : vector<768x72xbf16>, vector<72x128xbf16>, vector<768x128xf32> -> vector<768x128xf32>
    %c0_8 = arith.constant 0 : index
    %c0_9 = arith.constant 0 : index
    %7 = vector.load %arg3[%c0_8, %c0_9] : memref<1x128xf32, #tpu.memory_space<vmem>>, vector<1x128xf32>
    %8 = vector.broadcast %7 : vector<1x128xf32> to vector<768x128xf32>
    %9 = arith.addf %6, %8 : vector<768x128xf32>
    %c8 = arith.constant 8 : index
    %c0_10 = arith.constant 0 : index
    %10 = vector.load %arg11[%c8, %c0_10] : memref<784x128xf32, #tpu.memory_space<vmem>>, vector<768x128xf32>
    tpu.vector_store %arg11[%c8, %c0_10], %9 {strides = array<i32>} : memref<784x128xf32, #tpu.memory_space<vmem>>, vector<768x128xf32>,
    %c0_11 = arith.constant 0 : index
    %c0_12 = arith.constant 0 : index
    %11 = vector.load %arg8[%c0_11, %c0_12] : memref<1008x128xbf16, #tpu.memory_space<vmem>>, vector<768x128xbf16>
    %c0_13 = arith.constant 0 : index
    %c0_14 = arith.constant 0 : index
    %12 = vector.load %arg9[%c0_13, %c0_14] : memref<1008x128xbf16, #tpu.memory_space<vmem>>, vector<768x128xbf16>
    %c7 = arith.constant 7 : index
    %c0_15 = arith.constant 0 : index
    %13 = vector.load %arg11[%c7, %c0_15] : memref<784x128xf32, #tpu.memory_space<vmem>>, vector<768x128xf32>
    %14 = arith.truncf %13 : vector<768x128xf32> to vector<768x128xbf16>
    %15 = arith.mulf %14, %11 : vector<768x128xbf16>
    %c0_16 = arith.constant 0 : index
    %c0_17 = arith.constant 0 : index
    %16 = vector.load %arg12[%c0_16, %c0_17] : memref<768x384xbf16, #tpu.memory_space<vmem>>, vector<768x128xbf16>
    tpu.vector_store %arg12[%c0_16, %c0_17], %15 {strides = array<i32>} : memref<768x384xbf16, #tpu.memory_space<vmem>>, vector<768x128xbf16>,
    %c8_18 = arith.constant 8 : index
    %c0_19 = arith.constant 0 : index
    %17 = vector.load %arg11[%c8_18, %c0_19] : memref<784x128xf32, #tpu.memory_space<vmem>>, vector<768x128xf32>
    %18 = arith.truncf %17 : vector<768x128xf32> to vector<768x128xbf16>
    %c0_20 = arith.constant 0 : index
    %c128 = arith.constant 128 : index
    %19 = vector.load %arg12[%c0_20, %c128] : memref<768x384xbf16, #tpu.memory_space<vmem>>, vector<768x128xbf16>
    tpu.vector_store %arg12[%c0_20, %c128], %18 {strides = array<i32>} : memref<768x384xbf16, #tpu.memory_space<vmem>>, vector<768x128xbf16>,
    %c9 = arith.constant 9 : index
    %c0_21 = arith.constant 0 : index
    %20 = vector.load %arg11[%c9, %c0_21] : memref<784x128xf32, #tpu.memory_space<vmem>>, vector<768x128xf32>
    %21 = arith.truncf %20 : vector<768x128xf32> to vector<768x128xbf16>
    %22 = arith.mulf %21, %12 : vector<768x128xbf16>
    %c0_22 = arith.constant 0 : index
    %c256 = arith.constant 256 : index
    %23 = vector.load %arg12[%c0_22, %c256] : memref<768x384xbf16, #tpu.memory_space<vmem>>, vector<768x128xbf16>
    tpu.vector_store %arg12[%c0_22, %c256], %22 {strides = array<i32>} : memref<768x384xbf16, #tpu.memory_space<vmem>>, vector<768x128xbf16>,
    %c0_23 = arith.constant 0 : index
    %c0_24 = arith.constant 0 : index
    %24 = vector.load %arg12[%c0_23, %c0_24] : memref<768x384xbf16, #tpu.memory_space<vmem>>, vector<768x384xbf16>
    %c0_25 = arith.constant 0 : index
    %c0_26 = arith.constant 0 : index
    %c0_27 = arith.constant 0 : index
    %25 = vector.load %arg4[%c0_25, %c0_26, %c0_27] : memref<3x384x128xbf16, #tpu.memory_space<vmem>>, vector<1x384x128xbf16>
    %26 = vector.shape_cast %25 : vector<1x384x128xbf16> to vector<384x128xbf16>
    %cst_28 = arith.constant dense<0.000000e+00> : vector<768x128xf32>
    %27 = tpu.matmul %24, %26, %cst_28 {dimension_numbers = #tpu.dot_dimension_numbers<[1], [0], [0], [1], [0, 0, 1, 1], [], []>} : vector<768x384xbf16>, vector<384x128xbf16>, vector<768x128xf32> -> vector<768x128xf32>
    %c0_29 = arith.constant 0 : index
    %c0_30 = arith.constant 0 : index
    %c0_31 = arith.constant 0 : index
    %28 = vector.load %arg5[%c0_29, %c0_30, %c0_31] : memref<3x1x128xf32, #tpu.memory_space<vmem>>, vector<1x1x128xf32>
    %29 = vector.shape_cast %28 : vector<1x1x128xf32> to vector<1x128xf32>
    %30 = vector.broadcast %29 : vector<1x128xf32> to vector<768x128xf32>
    %31 = arith.addf %27, %30 : vector<768x128xf32>
    %cst_32 = arith.constant 0.000000e+00 : f32
    %32 = vector.broadcast %cst_32 : f32 to vector<768x128xf32>
    %33 = arith.maximumf %31, %32 : vector<768x128xf32>
    %c8_33 = arith.constant 8 : index
    %c0_34 = arith.constant 0 : index
    %34 = vector.load %arg11[%c8_33, %c0_34] : memref<784x128xf32, #tpu.memory_space<vmem>>, vector<768x128xf32>
    tpu.vector_store %arg11[%c8_33, %c0_34], %33 {strides = array<i32>} : memref<784x128xf32, #tpu.memory_space<vmem>>, vector<768x128xf32>,
    %c8_35 = arith.constant 8 : index
    %c0_36 = arith.constant 0 : index
    %35 = tpu.strided_load %arg11[%c8_35, %c0_36] {strides = array<i32: 4, 1>} : memref<784x128xf32, #tpu.memory_space<vmem>>, vector<192x128xf32>
    %c9_37 = arith.constant 9 : index
    %c0_38 = arith.constant 0 : index
    %36 = tpu.strided_load %arg11[%c9_37, %c0_38] {strides = array<i32: 4, 1>} : memref<784x128xf32, #tpu.memory_space<vmem>>, vector<192x128xf32>
    %37 = arith.maximumf %35, %36 : vector<192x128xf32>
    %c10 = arith.constant 10 : index
    %c0_39 = arith.constant 0 : index
    %38 = tpu.strided_load %arg11[%c10, %c0_39] {strides = array<i32: 4, 1>} : memref<784x128xf32, #tpu.memory_space<vmem>>, vector<192x128xf32>
    %39 = arith.maximumf %37, %38 : vector<192x128xf32>
    %c11 = arith.constant 11 : index
    %c0_40 = arith.constant 0 : index
    %40 = tpu.strided_load %arg11[%c11, %c0_40] {strides = array<i32: 4, 1>} : memref<784x128xf32, #tpu.memory_space<vmem>>, vector<192x128xf32>
    %41 = arith.maximumf %39, %40 : vector<192x128xf32>
    %c8_41 = arith.constant 8 : index
    %c0_42 = arith.constant 0 : index
    %42 = vector.load %arg11[%c8_41, %c0_42] : memref<784x128xf32, #tpu.memory_space<vmem>>, vector<192x128xf32>
    tpu.vector_store %arg11[%c8_41, %c0_42], %41 {strides = array<i32>} : memref<784x128xf32, #tpu.memory_space<vmem>>, vector<192x128xf32>,
    %c768 = arith.constant 768 : index
    %c0_43 = arith.constant 0 : index
    %43 = vector.load %arg8[%c768, %c0_43] : memref<1008x128xbf16, #tpu.memory_space<vmem>>, vector<192x128xbf16>
    %c768_44 = arith.constant 768 : index
    %c0_45 = arith.constant 0 : index
    %44 = vector.load %arg9[%c768_44, %c0_45] : memref<1008x128xbf16, #tpu.memory_space<vmem>>, vector<192x128xbf16>
    %c7_46 = arith.constant 7 : index
    %c0_47 = arith.constant 0 : index
    %45 = vector.load %arg11[%c7_46, %c0_47] : memref<784x128xf32, #tpu.memory_space<vmem>>, vector<192x128xf32>
    %46 = arith.truncf %45 : vector<192x128xf32> to vector<192x128xbf16>
    %47 = arith.mulf %46, %43 : vector<192x128xbf16>
    %c0_48 = arith.constant 0 : index
    %c0_49 = arith.constant 0 : index
    %48 = vector.load %arg12[%c0_48, %c0_49] : memref<768x384xbf16, #tpu.memory_space<vmem>>, vector<192x128xbf16>
    tpu.vector_store %arg12[%c0_48, %c0_49], %47 {strides = array<i32>} : memref<768x384xbf16, #tpu.memory_space<vmem>>, vector<192x128xbf16>,
    %c8_50 = arith.constant 8 : index
    %c0_51 = arith.constant 0 : index
    %49 = vector.load %arg11[%c8_50, %c0_51] : memref<784x128xf32, #tpu.memory_space<vmem>>, vector<192x128xf32>
    %50 = arith.truncf %49 : vector<192x128xf32> to vector<192x128xbf16>
    %c0_52 = arith.constant 0 : index
    %c128_53 = arith.constant 128 : index
    %51 = vector.load %arg12[%c0_52, %c128_53] : memref<768x384xbf16, #tpu.memory_space<vmem>>, vector<192x128xbf16>
    tpu.vector_store %arg12[%c0_52, %c128_53], %50 {strides = array<i32>} : memref<768x384xbf16, #tpu.memory_space<vmem>>, vector<192x128xbf16>,
    %c9_54 = arith.constant 9 : index
    %c0_55 = arith.constant 0 : index
    %52 = vector.load %arg11[%c9_54, %c0_55] : memref<784x128xf32, #tpu.memory_space<vmem>>, vector<192x128xf32>
    %53 = arith.truncf %52 : vector<192x128xf32> to vector<192x128xbf16>
    %54 = arith.mulf %53, %44 : vector<192x128xbf16>
    %c0_56 = arith.constant 0 : index
    %c256_57 = arith.constant 256 : index
    %55 = vector.load %arg12[%c0_56, %c256_57] : memref<768x384xbf16, #tpu.memory_space<vmem>>, vector<192x128xbf16>
    tpu.vector_store %arg12[%c0_56, %c256_57], %54 {strides = array<i32>} : memref<768x384xbf16, #tpu.memory_space<vmem>>, vector<192x128xbf16>,
    %c0_58 = arith.constant 0 : index
    %c0_59 = arith.constant 0 : index
    %56 = vector.load %arg12[%c0_58, %c0_59] : memref<768x384xbf16, #tpu.memory_space<vmem>>, vector<192x384xbf16>
    %c1 = arith.constant 1 : index
    %c0_60 = arith.constant 0 : index
    %c0_61 = arith.constant 0 : index
    %57 = vector.load %arg4[%c1, %c0_60, %c0_61] : memref<3x384x128xbf16, #tpu.memory_space<vmem>>, vector<1x384x128xbf16>
    %58 = vector.shape_cast %57 : vector<1x384x128xbf16> to vector<384x128xbf16>
    %cst_62 = arith.constant dense<0.000000e+00> : vector<192x128xf32>
    %59 = tpu.matmul %56, %58, %cst_62 {dimension_numbers = #tpu.dot_dimension_numbers<[1], [0], [0], [1], [0, 0, 1, 1], [], []>} : vector<192x384xbf16>, vector<384x128xbf16>, vector<192x128xf32> -> vector<192x128xf32>
    %c1_63 = arith.constant 1 : index
    %c0_64 = arith.constant 0 : index
    %c0_65 = arith.constant 0 : index
    %60 = vector.load %arg5[%c1_63, %c0_64, %c0_65] : memref<3x1x128xf32, #tpu.memory_space<vmem>>, vector<1x1x128xf32>
    %61 = vector.shape_cast %60 : vector<1x1x128xf32> to vector<1x128xf32>
    %62 = vector.broadcast %61 : vector<1x128xf32> to vector<192x128xf32>
    %63 = arith.addf %59, %62 : vector<192x128xf32>
    %cst_66 = arith.constant 0.000000e+00 : f32
    %64 = vector.broadcast %cst_66 : f32 to vector<192x128xf32>
    %65 = arith.maximumf %63, %64 : vector<192x128xf32>
    %c8_67 = arith.constant 8 : index
    %c0_68 = arith.constant 0 : index
    %66 = vector.load %arg11[%c8_67, %c0_68] : memref<784x128xf32, #tpu.memory_space<vmem>>, vector<192x128xf32>
    tpu.vector_store %arg11[%c8_67, %c0_68], %65 {strides = array<i32>} : memref<784x128xf32, #tpu.memory_space<vmem>>, vector<192x128xf32>,
    %c8_69 = arith.constant 8 : index
    %c0_70 = arith.constant 0 : index
    %67 = tpu.strided_load %arg11[%c8_69, %c0_70] {strides = array<i32: 4, 1>} : memref<784x128xf32, #tpu.memory_space<vmem>>, vector<48x128xf32>
    %c9_71 = arith.constant 9 : index
    %c0_72 = arith.constant 0 : index
    %68 = tpu.strided_load %arg11[%c9_71, %c0_72] {strides = array<i32: 4, 1>} : memref<784x128xf32, #tpu.memory_space<vmem>>, vector<48x128xf32>
    %69 = arith.maximumf %67, %68 : vector<48x128xf32>
    %c10_73 = arith.constant 10 : index
    %c0_74 = arith.constant 0 : index
    %70 = tpu.strided_load %arg11[%c10_73, %c0_74] {strides = array<i32: 4, 1>} : memref<784x128xf32, #tpu.memory_space<vmem>>, vector<48x128xf32>
    %71 = arith.maximumf %69, %70 : vector<48x128xf32>
    %c11_75 = arith.constant 11 : index
    %c0_76 = arith.constant 0 : index
    %72 = tpu.strided_load %arg11[%c11_75, %c0_76] {strides = array<i32: 4, 1>} : memref<784x128xf32, #tpu.memory_space<vmem>>, vector<48x128xf32>
    %73 = arith.maximumf %71, %72 : vector<48x128xf32>
    %c8_77 = arith.constant 8 : index
    %c0_78 = arith.constant 0 : index
    %74 = vector.load %arg11[%c8_77, %c0_78] : memref<784x128xf32, #tpu.memory_space<vmem>>, vector<48x128xf32>
    tpu.vector_store %arg11[%c8_77, %c0_78], %73 {strides = array<i32>} : memref<784x128xf32, #tpu.memory_space<vmem>>, vector<48x128xf32>,
    %c960 = arith.constant 960 : index
    %c0_79 = arith.constant 0 : index
    %75 = vector.load %arg8[%c960, %c0_79] : memref<1008x128xbf16, #tpu.memory_space<vmem>>, vector<48x128xbf16>
    %c960_80 = arith.constant 960 : index
    %c0_81 = arith.constant 0 : index
    %76 = vector.load %arg9[%c960_80, %c0_81] : memref<1008x128xbf16, #tpu.memory_space<vmem>>, vector<48x128xbf16>
    %c7_82 = arith.constant 7 : index
    %c0_83 = arith.constant 0 : index
    %77 = vector.load %arg11[%c7_82, %c0_83] : memref<784x128xf32, #tpu.memory_space<vmem>>, vector<48x128xf32>
    %78 = arith.truncf %77 : vector<48x128xf32> to vector<48x128xbf16>
    %79 = arith.mulf %78, %75 : vector<48x128xbf16>
    %c0_84 = arith.constant 0 : index
    %c0_85 = arith.constant 0 : index
    %80 = vector.load %arg12[%c0_84, %c0_85] : memref<768x384xbf16, #tpu.memory_space<vmem>>, vector<48x128xbf16>
    tpu.vector_store %arg12[%c0_84, %c0_85], %79 {strides = array<i32>} : memref<768x384xbf16, #tpu.memory_space<vmem>>, vector<48x128xbf16>,
    %c8_86 = arith.constant 8 : index
    %c0_87 = arith.constant 0 : index
    %81 = vector.load %arg11[%c8_86, %c0_87] : memref<784x128xf32, #tpu.memory_space<vmem>>, vector<48x128xf32>
    %82 = arith.truncf %81 : vector<48x128xf32> to vector<48x128xbf16>
    %c0_88 = arith.constant 0 : index
    %c128_89 = arith.constant 128 : index
    %83 = vector.load %arg12[%c0_88, %c128_89] : memref<768x384xbf16, #tpu.memory_space<vmem>>, vector<48x128xbf16>
    tpu.vector_store %arg12[%c0_88, %c128_89], %82 {strides = array<i32>} : memref<768x384xbf16, #tpu.memory_space<vmem>>, vector<48x128xbf16>,
    %c9_90 = arith.constant 9 : index
    %c0_91 = arith.constant 0 : index
    %84 = vector.load %arg11[%c9_90, %c0_91] : memref<784x128xf32, #tpu.memory_space<vmem>>, vector<48x128xf32>
    %85 = arith.truncf %84 : vector<48x128xf32> to vector<48x128xbf16>
    %86 = arith.mulf %85, %76 : vector<48x128xbf16>
    %c0_92 = arith.constant 0 : index
    %c256_93 = arith.constant 256 : index
    %87 = vector.load %arg12[%c0_92, %c256_93] : memref<768x384xbf16, #tpu.memory_space<vmem>>, vector<48x128xbf16>
    tpu.vector_store %arg12[%c0_92, %c256_93], %86 {strides = array<i32>} : memref<768x384xbf16, #tpu.memory_space<vmem>>, vector<48x128xbf16>,
    %c0_94 = arith.constant 0 : index
    %c0_95 = arith.constant 0 : index
    %88 = vector.load %arg12[%c0_94, %c0_95] : memref<768x384xbf16, #tpu.memory_space<vmem>>, vector<48x384xbf16>
    %c2 = arith.constant 2 : index
    %c0_96 = arith.constant 0 : index
    %c0_97 = arith.constant 0 : index
    %89 = vector.load %arg4[%c2, %c0_96, %c0_97] : memref<3x384x128xbf16, #tpu.memory_space<vmem>>, vector<1x384x128xbf16>
    %90 = vector.shape_cast %89 : vector<1x384x128xbf16> to vector<384x128xbf16>
    %cst_98 = arith.constant dense<0.000000e+00> : vector<48x128xf32>
    %91 = tpu.matmul %88, %90, %cst_98 {dimension_numbers = #tpu.dot_dimension_numbers<[1], [0], [0], [1], [0, 0, 1, 1], [], []>} : vector<48x384xbf16>, vector<384x128xbf16>, vector<48x128xf32> -> vector<48x128xf32>
    %c2_99 = arith.constant 2 : index
    %c0_100 = arith.constant 0 : index
    %c0_101 = arith.constant 0 : index
    %92 = vector.load %arg5[%c2_99, %c0_100, %c0_101] : memref<3x1x128xf32, #tpu.memory_space<vmem>>, vector<1x1x128xf32>
    %93 = vector.shape_cast %92 : vector<1x1x128xf32> to vector<1x128xf32>
    %94 = vector.broadcast %93 : vector<1x128xf32> to vector<48x128xf32>
    %95 = arith.addf %91, %94 : vector<48x128xf32>
    %cst_102 = arith.constant 0.000000e+00 : f32
    %96 = vector.broadcast %cst_102 : f32 to vector<48x128xf32>
    %97 = arith.maximumf %95, %96 : vector<48x128xf32>
    %c8_103 = arith.constant 8 : index
    %c0_104 = arith.constant 0 : index
    %98 = vector.load %arg11[%c8_103, %c0_104] : memref<784x128xf32, #tpu.memory_space<vmem>>, vector<48x128xf32>
    tpu.vector_store %arg11[%c8_103, %c0_104], %97 {strides = array<i32>} : memref<784x128xf32, #tpu.memory_space<vmem>>, vector<48x128xf32>,
    %c8_105 = arith.constant 8 : index
    %c0_106 = arith.constant 0 : index
    %99 = tpu.strided_load %arg11[%c8_105, %c0_106] {strides = array<i32: 2, 1>} : memref<784x128xf32, #tpu.memory_space<vmem>>, vector<24x128xf32>
    %c9_107 = arith.constant 9 : index
    %c0_108 = arith.constant 0 : index
    %100 = tpu.strided_load %arg11[%c9_107, %c0_108] {strides = array<i32: 2, 1>} : memref<784x128xf32, #tpu.memory_space<vmem>>, vector<24x128xf32>
    %101 = arith.maximumf %99, %100 : vector<24x128xf32>
    %102 = arith.truncf %101 : vector<24x128xf32> to vector<24x128xbf16>
    %c0_109 = arith.constant 0 : index
    %c0_110 = arith.constant 0 : index
    %103 = vector.load %arg6[%c0_109, %c0_110] : memref<128x128xbf16, #tpu.memory_space<vmem>>, vector<128x128xbf16>
    %cst_111 = arith.constant dense<0.000000e+00> : vector<24x128xf32>
    %104 = tpu.matmul %102, %103, %cst_111 {dimension_numbers = #tpu.dot_dimension_numbers<[1], [0], [0], [1], [0, 0, 1, 1], [], []>} : vector<24x128xbf16>, vector<128x128xbf16>, vector<24x128xf32> -> vector<24x128xf32>
    %c0_112 = arith.constant 0 : index
    %c0_113 = arith.constant 0 : index
    %105 = vector.load %arg7[%c0_112, %c0_113] : memref<1x128xf32, #tpu.memory_space<vmem>>, vector<1x128xf32>
    %106 = vector.broadcast %105 : vector<1x128xf32> to vector<24x128xf32>
    %107 = arith.addf %104, %106 : vector<24x128xf32>
    %c0_114 = arith.constant 0 : index
    %c0_115 = arith.constant 0 : index
    %108 = vector.load %arg10[%c0_114, %c0_115] : memref<24x128xf32, #tpu.memory_space<vmem>>, vector<24x128xf32>
    tpu.vector_store %arg10[%c0_114, %c0_115], %107 {strides = array<i32>} : memref<24x128xf32, #tpu.memory_space<vmem>>, vector<24x128xf32>,
    return
  }
  func.func @transform_0(%arg0: i32) -> (i32, i32) {
    %c0_i32 = arith.constant 0 : i32
    %c0_i32_0 = arith.constant 0 : i32
    return %arg0, %c0_i32 : i32, i32
  }
  func.func @transform_1(%arg0: i32) -> (i32, i32) {
    %c0_i32 = arith.constant 0 : i32
    %c0_i32_0 = arith.constant 0 : i32
    %c0_i32_1 = arith.constant 0 : i32
    return %c0_i32, %c0_i32_0 : i32, i32
  }
  func.func @transform_2(%arg0: i32) -> (i32, i32) {
    %c0_i32 = arith.constant 0 : i32
    %c0_i32_0 = arith.constant 0 : i32
    %c0_i32_1 = arith.constant 0 : i32
    return %c0_i32, %c0_i32_0 : i32, i32
  }
  func.func @transform_3(%arg0: i32) -> (i32, i32, i32) {
    %c0_i32 = arith.constant 0 : i32
    %c0_i32_0 = arith.constant 0 : i32
    %c0_i32_1 = arith.constant 0 : i32
    %c0_i32_2 = arith.constant 0 : i32
    return %c0_i32, %c0_i32_0, %c0_i32_1 : i32, i32, i32
  }
  func.func @transform_4(%arg0: i32) -> (i32, i32, i32) {
    %c0_i32 = arith.constant 0 : i32
    %c0_i32_0 = arith.constant 0 : i32
    %c0_i32_1 = arith.constant 0 : i32
    %c0_i32_2 = arith.constant 0 : i32
    return %c0_i32, %c0_i32_0, %c0_i32_1 : i32, i32, i32
  }
  func.func @transform_5(%arg0: i32) -> (i32, i32) {
    %c0_i32 = arith.constant 0 : i32
    %c0_i32_0 = arith.constant 0 : i32
    %c0_i32_1 = arith.constant 0 : i32
    return %c0_i32, %c0_i32_0 : i32, i32
  }
  func.func @transform_6(%arg0: i32) -> (i32, i32) {
    %c0_i32 = arith.constant 0 : i32
    %c0_i32_0 = arith.constant 0 : i32
    %c0_i32_1 = arith.constant 0 : i32
    return %c0_i32, %c0_i32_0 : i32, i32
  }
  func.func @transform_7(%arg0: i32) -> (i32, i32) {
    %c0_i32 = arith.constant 0 : i32
    %c0_i32_0 = arith.constant 0 : i32
    %c0_i32_1 = arith.constant 0 : i32
    return %c0_i32, %c0_i32_0 : i32, i32
  }
  func.func @transform_8(%arg0: i32) -> (i32, i32) {
    %c0_i32 = arith.constant 0 : i32
    %c0_i32_0 = arith.constant 0 : i32
    %c0_i32_1 = arith.constant 0 : i32
    return %c0_i32, %c0_i32_0 : i32, i32
  }
  func.func @transform_9(%arg0: i32) -> (i32, i32) {
    %c0_i32 = arith.constant 0 : i32
    %c0_i32_0 = arith.constant 0 : i32
    return %arg0, %c0_i32 : i32, i32
  }
}

</mosaic_0001>

<bundles_post_ra>
// kernel: tpu_custom_call.1
= control target key start
LH: loop header
LB: loop body
LE: loop exit
PB: predicated region body
PF: predicated region fallthrough
CT: control target
= control target key end

     0   :  { %14 = vsyncpa [#allocation5], 0  ;;  %s8642_s0 = inlined_call_operand.vmem [shape: bf16[768,72], index: 0, kind: input, shape index: {}]   ;;  %s8643_s1 = inlined_call_operand.hbm [shape: bf16[72,128], index: 1, kind: input, shape index: {}]   ;;  %s8644_s2 = inlined_call_operand.vmem [shape: f32[1,128], index: 2, kind: input, shape index: {}]   ;;  %s8645_s3 = inlined_call_operand.vmem [shape: bf16[3,384,128], index: 3, kind: input, shape index: {}]   ;;  %s8646_s4 = inlined_call_operand.vmem [shape: f32[3,1,128], index: 4, kind: input, shape index: {}]   ;;  %s8647_s5 = inlined_call_operand.hbm [shape: bf16[128,128], index: 5, kind: input, shape index: {}]   ;;  %s8648_s6 = inlined_call_operand.vmem [shape: f32[1,128], index: 6, kind: input, shape index: {}]   ;;  %s8649_s7 = inlined_call_operand.hbm [shape: bf16[1008,128], index: 7, kind: input, shape index: {}]   ;;  %s8650_s8 = inlined_call_operand.hbm [shape: bf16[1008,128], index: 8, kind: input, shape index: {}]   ;;  %s8651_s9 = inlined_call_operand.hbm [shape: f32[24,128], index: 9, kind: output, shape index: {}]  }
   0x1   :  { %15 = vsyncpa [#allocation8], 0 }
   0x2   :  { %16 = vsyncpa [#allocation11], 0 }
   0x3   :  { %17 = vsyncpa [#allocation6], 0  ;;  %s7143_s30 = smov [#allocation7]   ;;  %s7144_s11 = smov [#allocation4]  }
   0x4   :  { %s43_s10 = sshll.u32 %s7143_s30, 4  ;;  %s25_s12 = sshll.u32 %s7144_s11, 4  ;;  %s44_s10 = int_to_ptr.vmem [resolvable:$true] %s43_s10  ;;  %s7205_s12 = int_to_ptr.vmem [resolvable:$true] %s25_s12 }
   0x5   :  { %s7025_s15 = scalar_lea.hbm %s8647_s5, 1024 }
   0x6   :  { %p7026_p0 = scmp.ne.s32.totalorder %s8647_s5, %s7025_s15  ;;  %p7029_p1 = scmp.lt.u32.totalorder %s7025_s15, %s8647_s5 }
   0x8   :  { %p7031_p2 = pnand %p7029_p1, %p7026_p0 }
   0xa   :  { %7034 = shalt.err (!%p7031_p2)
}
   0xb   :  { %s7035_s20 = scalar_lea.vmem %s44_s10, 1024  ;;  %p7040_p4 = scmp.lt.s32.totalorder %s44_s10, %s44_s10 }
   0xc   :  { %p7036_p3 = scmp.ne.s32.totalorder %s44_s10, %s7035_s20  ;;  %p7041_p5 = scmp.lt.s32.totalorder %s7035_s20, %s7035_s20 }
   0xe   :  { %p7042_p6 = por %p7041_p5, %p7040_p4 }
  0x10   :  { %p7043_p7 = pnand %p7042_p6, %p7036_p3 }
  0x12   :  { %7046 = shalt.err (!%p7043_p7)
}
  0x13   :  { %s7145_s21 = smov 64   ;;  %s7146_s22 = smov 4  }
  0x14   :  { %49 = dma.hbm_to_vmem [thread:$0]  %s8647_s5, 1024, %s44_s10, [#allocation8], %s7145_s21, %s7145_s21, %s7146_s22  }
  0x15   :  { %s7047_s27 = scalar_lea.hbm %s8643_s1, 576 }
  0x16   :  { %p7048_p8 = scmp.ne.s32.totalorder %s8643_s1, %s7047_s27  ;;  %p7051_p9 = scmp.lt.u32.totalorder %s7047_s27, %s8643_s1 }
  0x18   :  { %p7053_p10 = pnand %p7051_p9, %p7048_p8 }
  0x1a   :  { %7056 = shalt.err (!%p7053_p10)
}
  0x1b   :  { %s7057_s13 = scalar_lea.vmem %s7205_s12, 576  ;;  %p7062_p12 = scmp.lt.s32.totalorder %s7205_s12, %s7205_s12 }
  0x1c   :  { %p7058_p11 = scmp.ne.s32.totalorder %s7205_s12, %s7057_s13  ;;  %p7063_p13 = scmp.lt.s32.totalorder %s7057_s13, %s7057_s13 }
  0x1e   :  { %p7064_p0 = por %p7063_p13, %p7062_p12 }
  0x20   :  { %p7065_p1 = pnand %p7064_p0, %p7058_p11 }
  0x22   :  { %7068 = shalt.err (!%p7065_p1)
}
  0x23   :  { %31 = dma.hbm_to_vmem [thread:$0]  %s8643_s1, 576, %s7205_s12, [#allocation5], %s7145_s21, %s7145_s21, %s7146_s22  }
  0x24   :  { %s7147_s14 = smov [#allocation9]   ;;  %s7148_s16 = smov [#allocation10]  }
  0x25   :  { %s57_s15 = sshll.u32 %s7147_s14, 4  ;;  %s69_s17 = sshll.u32 %s7148_s16, 4  ;;  %s58_s15 = int_to_ptr.vmem [resolvable:$true] %s57_s15  ;;  %s7242_s17 = int_to_ptr.vmem [resolvable:$true] %s69_s17 }
  0x26   :  { %s7069_s20 = scalar_lea.hbm %s8649_s7, 8064 }
  0x27   :  { %p7070_p2 = scmp.ne.s32.totalorder %s8649_s7, %s7069_s20  ;;  %p7073_p3 = scmp.lt.u32.totalorder %s7069_s20, %s8649_s7 }
  0x29   :  { %p7075_p4 = pnand %p7073_p3, %p7070_p2 }
  0x2b   :  { %7078 = shalt.err (!%p7075_p4)
}
  0x2c   :  { %s7079_s1 = scalar_lea.vmem %s58_s15, 8064  ;;  %p7084_p6 = scmp.lt.s32.totalorder %s58_s15, %s58_s15 }
  0x2d   :  { %p7080_p5 = scmp.ne.s32.totalorder %s58_s15, %s7079_s1  ;;  %p7085_p7 = scmp.lt.s32.totalorder %s7079_s1, %s7079_s1 }
  0x2f   :  { %p7086_p8 = por %p7085_p7, %p7084_p6 }
  0x31   :  { %p7087_p9 = pnand %p7086_p8, %p7080_p5 }
  0x33   :  { %7090 = shalt.err (!%p7087_p9)
}
  0x34   :  { %63 = dma.hbm_to_vmem [thread:$0]  %s8649_s7, 8064, %s58_s15, [#allocation8], %s7145_s21, %s7145_s21, %s7146_s22  }
  0x35   :  { %s7091_s30 = scalar_lea.hbm %s8650_s8, 8064 }
  0x36   :  { %p7092_p10 = scmp.ne.s32.totalorder %s8650_s8, %s7091_s30  ;;  %p7095_p11 = scmp.lt.u32.totalorder %s7091_s30, %s8650_s8 }
  0x38   :  { %p7097_p12 = pnand %p7095_p11, %p7092_p10 }
  0x3a   :  { %7100 = shalt.err (!%p7097_p12)
}
  0x3b   :  { %s7101_s14 = scalar_lea.vmem %s7242_s17, 8064  ;;  %p7106_p0 = scmp.lt.s32.totalorder %s7242_s17, %s7242_s17 }
  0x3c   :  { %p7102_p13 = scmp.ne.s32.totalorder %s7242_s17, %s7101_s14  ;;  %p7107_p1 = scmp.lt.s32.totalorder %s7101_s14, %s7101_s14 }
  0x3e   :  { %p7108_p2 = por %p7107_p1, %p7106_p0 }
  0x40   :  { %p7109_p3 = pnand %p7108_p2, %p7102_p13 }
  0x42   :  { %7112 = shalt.err (!%p7109_p3)
}
  0x43   :  { %75 = dma.hbm_to_vmem [thread:$0]  %s8650_s8, 8064, %s7242_s17, [#allocation11], %s7145_s21, %s7145_s21, %s7146_s22  }
  0x44   :  { %7135 = dma.done.wait [#allocation5], 576  }
  0x45   :  { %7136 = vsyncadd [#allocation5], 4294966720 }
  0x46   :  { %7137 = dma.done.wait [#allocation8], 9088  }
  0x47   :  { %7138 = vsyncadd [#allocation8], 4294958208 }
  0x48   :  { %7139 = dma.done.wait [#allocation11], 8064  }
  0x49   :  { %7140 = vsyncadd [#allocation11], 4294959232  ;;  %v6761_v0 = vld [vmem:[#allocation4] sm:$0xff]   ;;  %v6762_v1 = vld [vmem:[#allocation4 + $0x8] sm:$0xff]   ;;  %vm470_vm0 = vcmask 588800   ;;  %vm615_vm1 = vcmask 1043456  }
  0x4a   :  { %6442 = vmatprep.subr.bf16.mxu0 %v6761_v0  ;;  %v6763_v2 = vld [vmem:[#allocation4 + $0x10] sm:$0xff]   ;;  %v6764_v4 = vld [vmem:[#allocation4 + $0x18] sm:$0xff]   ;;  %v6765_v5 = vld [vmem:[#allocation4 + $0x20] ss:$0 sps:$4 sm:$0xff]   ;;  %v7149_v6 = vmov 0   ;;  %v7150_v49 = vmov 0.0  }
  0x4b   :  { %6443 = vmatpush3.bf16.msra.mxu0 %v6761_v0  ;;  %v6766_v3 = vld [vmem:[%s8642_s0] sm:$0xff]   ;;  %2915 = vmatprep.subr.bf16.mxu1 %v7149_v6  ;;  %v617_v7 = vsel %vm615_vm1, %v6765_v5, 0  ;;  %v6767_v8 = vld [vmem:[%s8642_s0 + $0x8] sm:$0xff]   ;;  %v6768_v9 = vld [vmem:[%s8642_s0 + $0x10] sm:$0xff]   ;;  %89 = vst [vmem:[#allocation2] sm:$0xff] %v7150_v49  ;;  %vm7151_vm2 = vmmov 0  }
  0x4c   :  { %6444 = vmatprep.subr.bf16.mxu0 %v6762_v1  ;;  %6452 = vmatprep.mubr.msk.bf16.mxu0 %vm470_vm0, %v6766_v3  ;;  %v6769_v10 = vld [vmem:[%s8642_s0 + $0x18] sm:$0xff]   ;;  %v6770_v11 = vld [vmem:[%s8642_s0 + $0x20] sm:$0xff]   ;;  %v6771_v12 = vld [vmem:[%s8642_s0 + $0x28] sm:$0xff]   ;;  %90 = vst [vmem:[#allocation2 + $0x308] sm:$0xff] %v7150_v49 }
  0x4d   :  { %v6772_v13 = vld [vmem:[%s8642_s0 + $0x30] sm:$0xff]   ;;  %v6798_v14 = vld [vmem:[%s8645_s3] sm:$0xff]   ;;  %v6800_v15 = vld [vmem:[%s8645_s3 + $0x8] sm:$0xff]  }
  0x4e   :  { %2916 = vmatpush1.bf16.msra.mxu1 %v6798_v14  ;;  %v6773_v16 = vld [vmem:[%s8642_s0 + $0x38] sm:$0xff]   ;;  %v6774_v17 = vld [vmem:[%s8642_s0 + $0x40] sm:$0xff]   ;;  %v6802_v18 = vld [vmem:[%s8645_s3 + $0x10] sm:$0xff]  }
  0x4f   :  { %6445 = vmatpush3.bf16.msra.mxu0 %v6762_v1  ;;  %2917 = vmatprep.subr.bf16.mxu1 %v7149_v6  ;;  %v6804_v19 = vld [vmem:[%s8645_s3 + $0x18] sm:$0xff]   ;;  %v6775_v20 = vld [vmem:[%s8642_s0 + $0x48] sm:$0xff]   ;;  %v6776_v21 = vld [vmem:[%s8642_s0 + $0x50] sm:$0xff]  }
  0x50   :  { %6446 = vmatprep.subr.bf16.mxu0 %v6763_v2  ;;  %v6806_v22 = vld [vmem:[%s8645_s3 + $0x20] sm:$0xff]   ;;  %v6808_v23 = vld [vmem:[%s8645_s3 + $0x28] sm:$0xff]   ;;  %v6777_v24 = vld [vmem:[%s8642_s0 + $0x58] sm:$0xff]  }
  0x51   :  { %v6778_v25 = vld [vmem:[%s8642_s0 + $0x60] sm:$0xff]   ;;  %v6810_v27 = vld [vmem:[%s8645_s3 + $0x30] sm:$0xff]   ;;  %v6820_v28 = vld [vmem:[%s8645_s3 + $0x88] sm:$0xff]  }
  0x52   :  { %2918 = vmatpush1.bf16.msra.mxu1 %v6800_v15  ;;  %v6818_v26 = vld [vmem:[%s8645_s3 + $0x80] sm:$0xff]   ;;  %v6812_v29 = vld [vmem:[%s8645_s3 + $0x38] sm:$0xff]   ;;  %v6779_v30 = vld [vmem:[%s8642_s0 + $0x68] sm:$0xff]  }
  0x53   :  { %6447 = vmatpush3.bf16.msra.mxu0 %v6763_v2  ;;  %2919 = vmatprep.subr.bf16.mxu1 %v7149_v6  ;;  %v6780_v31 = vld [vmem:[%s8642_s0 + $0x70] sm:$0xff]   ;;  %v6814_v32 = vld [vmem:[%s8645_s3 + $0x40] sm:$0xff]   ;;  %v6816_v33 = vld [vmem:[%s8645_s3 + $0x48] sm:$0xff]  }
  0x54   :  { %6448 = vmatprep.subr.bf16.mxu0 %v6764_v4  ;;  %v6781_v34 = vld [vmem:[%s8642_s0 + $0x78] sm:$0xff]   ;;  %v6782_v35 = vld [vmem:[%s8642_s0 + $0x80] sm:$0xff]   ;;  %v6819_v36 = vld [vmem:[%s8645_s3 + $0x50] sm:$0xff]  }
  0x55   :  { %v6822_v37 = vld [vmem:[%s8645_s3 + $0x58] sm:$0xff]   ;;  %v6783_v38 = vld [vmem:[%s8642_s0 + $0x88] sm:$0xff]   ;;  %v6784_v39 = vld [vmem:[%s8642_s0 + $0x90] sm:$0xff]  }
  0x56   :  { %2920 = vmatpush1.bf16.msra.mxu1 %v6802_v18  ;;  %v6785_v40 = vld [vmem:[%s8642_s0 + $0x98] sm:$0xff]   ;;  %v6786_v41 = vld [vmem:[%s8642_s0 + $0xa0] sm:$0xff]   ;;  %v6787_v42 = vld [vmem:[%s8642_s0 + $0xa8] sm:$0xff]  }
  0x57   :  { %6449 = vmatpush3.bf16.msra.mxu0 %v6764_v4  ;;  %2921 = vmatprep.subr.bf16.mxu1 %v7149_v6  ;;  %v6788_v43 = vld [vmem:[%s8642_s0 + $0xb0] sm:$0xff]   ;;  %v6789_v45 = vld [vmem:[%s8642_s0 + $0xb8] sm:$0xff]   ;;  %v6790_v46 = vld [vmem:[%s8642_s0 + $0xc0] sm:$0xff]  }
  0x58   :  { %6748 = vmatprep.subr.msk.bf16.mxu0 %vm615_vm1, %v6765_v5  ;;  %v6824_v44 = vld [vmem:[%s8645_s3 + $0x90] sm:$0xff]   ;;  %v6825_v47 = vld [vmem:[%s8645_s3 + $0x60] sm:$0xff]   ;;  %v6826_v48 = vld [vmem:[%s8645_s3 + $0x98] sm:$0xff]  }
  0x59   :  { %v6828_v50 = vld [vmem:[%s8645_s3 + $0x68] sm:$0xff]   ;;  %v6830_v52 = vld [vmem:[%s8645_s3 + $0xa0] sm:$0xff]   ;;  %v6792_v53 = vld [vmem:[%s8642_s0 + $0xd0] sm:$0xff]  }
  0x5a   :  { %2922 = vmatpush1.bf16.msra.mxu1 %v6804_v19  ;;  %v6791_v51 = vld [vmem:[%s8642_s0 + $0xc8] sm:$0xff]   ;;  %v6831_v54 = vld [vmem:[%s8645_s3 + $0x70] sm:$0xff]   ;;  %v6834_v56 = vld [vmem:[%s8645_s3 + $0x78] sm:$0xff]  }
  0x5b   :  { %6451 = vmatpush3.bf16.msra.mxu0 %v617_v7  ;;  %2923 = vmatprep.subr.bf16.mxu1 %v7149_v6  ;;  %v6832_v55 = vld [vmem:[%s8645_s3 + $0xa8] sm:$0xff]   ;;  %v6836_v57 = vld [vmem:[%s8645_s3 + $0xb0] sm:$0xff]   ;;  %v6793_v58 = vld [vmem:[%s8642_s0 + $0xd8] sm:$0xff]  }
  0x5c   :  { %6548 = vmatprep.subr.bf16.mxu0 %v6818_v26  ;;  %v6794_v59 = vld [vmem:[%s8642_s0 + $0xe0] sm:$0xff]   ;;  %v6839_v60 = vld [vmem:[%s8645_s3 + $0xb8] sm:$0xff]   ;;  %v6795_v61 = vld [vmem:[%s8642_s0 + $0xe8] sm:$0xff]  }
  0x5d   :  { %v6796_v62 = vld [vmem:[%s8642_s0 + $0xf0] sm:$0xff]   ;;  %v6797_v63 = vld [vmem:[%s8642_s0 + $0xf8] sm:$0xff]   ;;  %v6799_v0 = vld [vmem:[%s8642_s0 + $0x100] sm:$0xff]  }
  0x5e   :  { %6453 = vmatmul.mubr.msk.bf16.vlgmr.msra.gmra.mrb[0].mxu0 %vm470_vm0, %v6767_v8  ;;  %2924 = vmatpush1.bf16.msra.mxu1 %v6806_v22  ;;  %v6801_v1 = vld [vmem:[%s8642_s0 + $0x108] sm:$0xff]   ;;  %v6803_v2 = vld [vmem:[%s8642_s0 + $0x110] sm:$0xff]   ;;  %v6805_v3 = vld [vmem:[%s8642_s0 + $0x118] sm:$0xff]  }
  0x5f   :  { %6456 = vmatprep.mubr.msk.bf16.mxu0 %vm470_vm0, %v6768_v9  ;;  %2925 = vmatprep.subr.bf16.mxu1 %v7149_v6  ;;  %v6807_v4 = vld [vmem:[%s8642_s0 + $0x120] sm:$0xff]   ;;  %v6809_v5 = vld [vmem:[%s8642_s0 + $0x128] sm:$0xff]   ;;  %v6813_v7 = vld [vmem:[%s8642_s0 + $0x138] sm:$0xff]  }
  0x60   :  { %6549 = vmatpush3.bf16.msra.mxu0 %v6818_v26  ;;  %v6815_v8 = vld [vmem:[%s8642_s0 + $0x140] sm:$0xff]   ;;  %v6817_v9 = vld [vmem:[%s8642_s0 + $0x148] sm:$0xff]   ;;  %v6833_v14 = vld [vmem:[%s8642_s0 + $0x170] sm:$0xff]  }
  0x61   :  { %6550 = vmatprep.subr.bf16.mxu0 %v6820_v28  ;;  %v6835_v15 = vld [vmem:[%s8642_s0 + $0x178] sm:$0xff]  }
  0x62   :  { %2926 = vmatpush1.bf16.msra.mxu1 %v6808_v23 }
  0x63   :  { %2927 = vmatprep.subr.bf16.mxu1 %v7149_v6 }
  0x64   :  { %6551 = vmatpush3.bf16.msra.mxu0 %v6820_v28 }
  0x65   :  { %6552 = vmatprep.subr.bf16.mxu0 %v6824_v44 }
  0x66   :  { %6457 = vmatmul.mubr.msk.bf16.gmra.mrb[4].mxu0 %vm470_vm0, %v6769_v10  ;;  %2928 = vmatpush1.bf16.msra.mxu1 %v6810_v27  ;;  %v6821_v10 = vld [vmem:[%s8642_s0 + $0x150] sm:$0xff]  }
  0x67   :  { %6460 = vmatprep.mubr.msk.bf16.mxu0 %vm470_vm0, %v6770_v11  ;;  %2929 = vmatprep.subr.bf16.mxu1 %v7149_v6  ;;  %v6823_v11 = vld [vmem:[%s8642_s0 + $0x158] sm:$0xff]  }
  0x68   :  { %6553 = vmatpush3.bf16.msra.mxu0 %v6824_v44 }
  0x69   :  { %6554 = vmatprep.subr.bf16.mxu0 %v6826_v48 }
  0x6a   :  { %2930 = vmatpush1.bf16.msra.mxu1 %v6812_v29 }
  0x6b   :  { %2931 = vmatprep.subr.bf16.mxu1 %v7149_v6 }
  0x6c   :  { %6555 = vmatpush3.bf16.msra.mxu0 %v6826_v48 }
  0x6d   :  { %6556 = vmatprep.subr.bf16.mxu0 %v6830_v52 }
  0x6e   :  { %6461 = vmatmul.mubr.msk.bf16.gmra.mrb[8].mxu0 %vm470_vm0, %v6771_v12  ;;  %2932 = vmatpush1.bf16.msra.mxu1 %v6814_v32  ;;  %v6827_v12 = vld [vmem:[%s8642_s0 + $0x160] sm:$0xff]  }
  0x6f   :  { %6464 = vmatprep.mubr.msk.bf16.mxu0 %vm470_vm0, %v6772_v13  ;;  %2933 = vmatprep.subr.bf16.mxu1 %v7149_v6  ;;  %v6829_v13 = vld [vmem:[%s8642_s0 + $0x168] sm:$0xff]  }
  0x70   :  { %6557 = vmatpush3.bf16.msra.mxu0 %v6830_v52 }
  0x71   :  { %6558 = vmatprep.subr.bf16.mxu0 %v6832_v55 }
  0x72   :  { %2934 = vmatpush1.bf16.msra.mxu1 %v6816_v33 }
  0x73   :  { %2935 = vmatprep.subr.bf16.mxu1 %v7149_v6 }
  0x74   :  { %6559 = vmatpush3.bf16.msra.mxu0 %v6832_v55 }
  0x75   :  { %6560 = vmatprep.subr.bf16.mxu0 %v6836_v57 }
  0x76   :  { %6465 = vmatmul.mubr.msk.bf16.gmra.mrb[12].mxu0 %vm470_vm0, %v6773_v16  ;;  %2936 = vmatpush1.bf16.msra.mxu1 %v6819_v36  ;;  %v7562_v16 = vld [vmem:[%s8644_s2] ss:$0 sm:$0xff]  ;;  %v6838_v36 = vld [vmem:[#allocation10] sm:$0xff]  }
  0x77   :  { %6468 = vmatprep.mubr.msk.bf16.mxu0 %vm470_vm0, %v6774_v17  ;;  %2937 = vmatprep.subr.bf16.mxu1 %v7149_v6 }
  0x78   :  { %6561 = vmatpush3.bf16.msra.mxu0 %v6836_v57 }
  0x79   :  { %6562 = vmatprep.subr.bf16.mxu0 %v6839_v60 }
  0x7a   :  { %2938 = vmatpush1.bf16.msra.mxu1 %v6822_v37 }
  0x7b   :  { %2939 = vmatprep.subr.bf16.mxu1 %v7149_v6 }
  0x7c   :  { %6563 = vmatpush3.bf16.msra.mxu0 %v6839_v60 }
  0x7e   :  { %6469 = vmatmul.mubr.msk.bf16.gmra.mrb[16].mxu0 %vm470_vm0, %v6775_v20  ;;  %2940 = vmatpush1.bf16.msra.mxu1 %v6825_v47 }
  0x7f   :  { %6472 = vmatprep.mubr.msk.bf16.mxu0 %vm470_vm0, %v6776_v21  ;;  %2941 = vmatprep.subr.bf16.mxu1 %v7149_v6 }
  0x82   :  { %2942 = vmatpush1.bf16.msra.mxu1 %v6828_v50 }
  0x83   :  { %2943 = vmatprep.subr.bf16.mxu1 %v7149_v6 }
  0x86   :  { %6473 = vmatmul.mubr.msk.bf16.gmra.mrb[20].mxu0 %vm470_vm0, %v6777_v24  ;;  %2944 = vmatpush1.bf16.msra.mxu1 %v6831_v54  ;;  %v6840_v54 = vld [vmem:[#allocation10 + $0x8] sm:$0xff]  }
  0x87   :  { %6476 = vmatprep.mubr.msk.bf16.mxu0 %vm470_vm0, %v6778_v25  ;;  %2945 = vmatprep.subr.bf16.mxu1 %v7149_v6  ;;  %v6811_v6 = vld [vmem:[%s8642_s0 + $0x130] sm:$0xff]   ;;  %s7152_s0 = smov [#allocation12]  }
  0x88   :  { %s5746_s10 = sshll.u32 %s7152_s0, 4  ;;  %s5747_s10 = int_to_ptr.vmem [resolvable:$true] %s5746_s10 }
  0x89   :  { %s7113_s14 = scalar_lea.vmem %s5747_s10, 384  ;;  %p7118_p5 = scmp.lt.s32.totalorder %s5747_s10, %s5747_s10 }
  0x8a   :  { %2946 = vmatpush1.bf16.msra.mxu1 %v6834_v56  ;;  %p7114_p4 = scmp.ne.s32.totalorder %s5747_s10, %s7113_s14  ;;  %p7119_p6 = scmp.lt.s32.totalorder %s7113_s14, %s7113_s14 }
  0x8c   :  { %p7120_p7 = por %p7119_p6, %p7118_p5 }
  0x8e   :  { %6477 = vmatmul.mubr.msk.bf16.gmra.mrb[24].mxu0 %vm470_vm0, %v6779_v30  ;;  %p7121_p8 = pnand %p7120_p7, %p7114_p4 }
  0x8f   :  { %6480 = vmatprep.mubr.msk.bf16.mxu0 %vm470_vm0, %v6780_v31 }
  0x96   :  { %6481 = vmatmul.mubr.msk.bf16.gmra.mrb[28].mxu0 %vm470_vm0, %v6781_v34 }
  0x97   :  { %6484 = vmatprep.mubr.msk.bf16.mxu0 %vm470_vm0, %v6782_v35  ;;  %v6837_v35 = vld [vmem:[#allocation9] sm:$0xff]  }
  0x9e   :  { %6485 = vmatmul.mubr.msk.bf16.gmra.mrb[32].mxu0 %vm470_vm0, %v6783_v38 }
  0x9f   :  { %6488 = vmatprep.mubr.msk.bf16.mxu0 %vm470_vm0, %v6784_v39 }
  0xa6   :  { %6489 = vmatmul.mubr.msk.bf16.gmra.mrb[36].mxu0 %vm470_vm0, %v6785_v40 }
  0xa7   :  { %6492 = vmatprep.mubr.msk.bf16.mxu0 %vm470_vm0, %v6786_v41 }
  0xae   :  { %6493 = vmatmul.mubr.msk.bf16.gmra.mrb[40].mxu0 %vm470_vm0, %v6787_v42 }
  0xaf   :  { %6496 = vmatprep.mubr.msk.bf16.mxu0 %vm470_vm0, %v6788_v43 }
  0xb6   :  { %6497 = vmatmul.mubr.msk.bf16.gmra.mrb[44].mxu0 %vm470_vm0, %v6789_v45 }
  0xb7   :  { %6500 = vmatprep.mubr.msk.bf16.mxu0 %vm470_vm0, %v6790_v46 }
  0xbe   :  { %6501 = vmatmul.mubr.msk.bf16.gmra.mrb[48].mxu0 %vm470_vm0, %v6791_v51 }
  0xbf   :  { %6504 = vmatprep.mubr.msk.bf16.mxu0 %vm470_vm0, %v6792_v53 }
  0xc6   :  { %6505 = vmatmul.mubr.msk.bf16.gmra.mrb[52].mxu0 %vm470_vm0, %v6793_v58 }
  0xc7   :  { %6508 = vmatprep.mubr.msk.bf16.mxu0 %vm470_vm0, %v6794_v59 }
  0xce   :  { %6509 = vmatmul.mubr.msk.bf16.gmra.mrb[56].mxu0 %vm470_vm0, %v6795_v61 }
  0xcf   :  { %6512 = vmatprep.mubr.msk.bf16.mxu0 %vm470_vm0, %v6796_v62  ;;  %v6841_v62 = vld [vmem:[#allocation9 + $0x8] sm:$0xff]  }
  0xd6   :  { %6513 = vmatmul.mubr.msk.bf16.gmra.mrb[60].mxu0 %vm470_vm0, %v6797_v63  ;;  %v6842_v63 = vld [vmem:[#allocation10 + $0x10] sm:$0xff]  }
  0xd7   :  { %6516 = vmatprep.mubr.msk.bf16.mxu0 %vm470_vm0, %v6799_v0 }
  0xde   :  { %6517 = vmatmul.mubr.msk.bf16.gmra.mrb[64].mxu0 %vm470_vm0, %v6801_v1 }
  0xdf   :  { %6520 = vmatprep.mubr.msk.bf16.mxu0 %vm470_vm0, %v6803_v2 }
  0xe6   :  { %6521 = vmatmul.mubr.msk.bf16.gmra.mrb[68].mxu0 %vm470_vm0, %v6805_v3 }
  0xe7   :  { %6524 = vmatprep.mubr.msk.bf16.mxu0 %vm470_vm0, %v6807_v4 }
  0xee   :  { %6525 = vmatmul.mubr.msk.bf16.gmra.mrb[72].mxu0 %vm470_vm0, %v6809_v5 }
  0xef   :  { %6528 = vmatprep.mubr.msk.bf16.mxu0 %vm470_vm0, %v6811_v6 }
  0xf6   :  { %6529 = vmatmul.mubr.msk.bf16.gmra.mrb[76].mxu0 %vm470_vm0, %v6813_v7 }
  0xf7   :  { %6532 = vmatprep.mubr.msk.bf16.mxu0 %vm470_vm0, %v6815_v8 }
  0xfe   :  { %6533 = vmatmul.mubr.msk.bf16.gmra.mrb[80].mxu0 %vm470_vm0, %v6817_v9 }
  0xff   :  { %6536 = vmatprep.mubr.msk.bf16.mxu0 %vm470_vm0, %v6821_v10 }
 0x106   :  { %6537 = vmatmul.mubr.msk.bf16.gmra.mrb[84].mxu0 %vm470_vm0, %v6823_v11 }
 0x107   :  { %6540 = vmatprep.mubr.msk.bf16.mxu0 %vm470_vm0, %v6827_v12 }
 0x10e   :  { %6541 = vmatmul.mubr.msk.bf16.gmra.mrb[88].mxu0 %vm470_vm0, %v6829_v13 }
 0x10f   :  { %6544 = vmatprep.mubr.msk.bf16.mxu0 %vm470_vm0, %v6833_v14 }
 0x116   :  { %6545 = vmatmul.mubr.msk.bf16.gmra.mrb[92].mxu0 %vm470_vm0, %v6835_v15  ;;  %v6843_v15 = vld [vmem:[#allocation10 + $0x18] sm:$0xff]  }
 0x131   :  { %v6454_v17 = vpop.f32.mrb[0].mxu0 }
 0x132   :  { %v662_v18 = vadd.f32 %v6454_v17, %v7562_v16  ;;  %v653_v19 = vpop.f32.mrb[1].mxu0 }
 0x133   :  { %v654_v20 = vadd.f32 %v7562_v16, %v653_v19  ;;  %v6455_v21 = vpop.f32.mrb[2].mxu0 }
 0x134   :  { %1038 = vst [vmem:[#allocation2 + $0x18] sm:$0xff] %v662_v18  ;;  %v665_v22 = vadd.f32 %v6455_v21, %v7562_v16  ;;  %v656_v23 = vpop.f32.mrb[3].mxu0 }
 0x135   :  { %1036 = vst [vmem:[#allocation2 + $0x8] sm:$0xff] %v654_v20  ;;  %v657_v24 = vadd.f32 %v7562_v16, %v656_v23 }
 0x136   :  { %1039 = vst [vmem:[#allocation2 + $0x20] sm:$0xff] %v665_v22  ;;  %v1949_v25 = vpack.c.bf16 %v665_v22, %v662_v18 }
 0x137   :  { %1037 = vst [vmem:[#allocation2 + $0x10] sm:$0xff] %v657_v24  ;;  %v1948_v26 = vpack.c.bf16 %v657_v24, %v654_v20  ;;  %v6844_v24 = vld [vmem:[#allocation9 + $0x10] sm:$0xff]  }
 0x139   :  { %v6458_v27 = vpop.f32.mrb[4].mxu0  ;;  %2947 = vmatprep.mubr.bf16.mxu1 %v1948_v26 }
 0x13a   :  { %v7569_v28 = vadd.f32 %v6458_v27, %v7562_v16  ;;  %v669_v29 = vpop.f32.mrb[5].mxu0 }
 0x13b   :  { %v7572_v30 = vadd.f32 %v7562_v16, %v669_v29  ;;  %v6459_v31 = vpop.f32.mrb[6].mxu0 }
 0x13c   :  { %1042 = vst [vmem:[#allocation2 + $0x38] sm:$0xff] %v7569_v28  ;;  %v7576_v32 = vadd.f32 %v6459_v31, %v7562_v16  ;;  %v672_v33 = vpop.f32.mrb[7].mxu0  ;;  %v1324_v39 = vld [vmem:[#allocation2 + $0x7] sm:$0xff] }
 0x13d   :  { %1040 = vst [vmem:[#allocation2 + $0x28] sm:$0xff] %v7572_v30  ;;  %v673_v34 = vadd.f32 %v7562_v16, %v672_v33  ;;  %v1327_v47 = vld [vmem:[#allocation2 + $0x1f] sm:$0xff] }
 0x13e   :  { %v1325_v37 = vld [vmem:[#allocation2 + $0xf] sm:$0xff]  ;;  %1043 = vst [vmem:[#allocation2 + $0x40] sm:$0xff] %v7576_v32  ;;  %v1951_v40 = vpack.c.bf16 %v7576_v32, %v7569_v28  ;;  %v1326_v48 = vld [vmem:[#allocation2 + $0x17] sm:$0xff] }
 0x13f   :  { %v2044_v38 = vld [vmem:[#allocation2 + $0x9] sm:$0xff]  ;;  %v2045_v41 = vld [vmem:[#allocation2 + $0x11] sm:$0xff]  ;;  %1041 = vst [vmem:[#allocation2 + $0x30] sm:$0xff] %v673_v34  ;;  %v1420_v42 = vpack.c.bf16 %v1325_v37, %v1324_v39  ;;  %v1950_v43 = vpack.c.bf16 %v673_v34, %v7572_v30  ;;  %v2046_v55 = vld [vmem:[#allocation2 + $0x19] sm:$0xff]  ;;  %v1421_v61 = vpack.c.bf16 %v1327_v47, %v1326_v48 }
 0x140   :  { %v2140_v44 = vpack.c.bf16 %v2045_v41, %v2044_v38 }
 0x141   :  { %v6462_v45 = vpop.f32.mrb[8].mxu0  ;;  %v1756_v46 = vmul.bf16 %v6837_v35, %v1420_v42  ;;  %v1757_v6 = vmul.bf16 %v6841_v62, %v1421_v61 }
 0x142   :  { %v7585_v49 = vadd.f32 %v6462_v45, %v7562_v16  ;;  %v685_v50 = vpop.f32.mrb[9].mxu0  ;;  %v2476_v51 = vmul.bf16 %v6838_v36, %v2140_v44 }
 0x143   :  { %v7588_v52 = vadd.f32 %v7562_v16, %v685_v50  ;;  %v6463_v53 = vpop.f32.mrb[10].mxu0  ;;  %2948 = vmatmul.mubr.bf16.vlgmr.msra.gmra.mrb[0].mxu1 %v1756_v46 }
 0x144   :  { %v2047_v56 = vld [vmem:[#allocation2 + $0x21] sm:$0xff]  ;;  %1046 = vst [vmem:[#allocation2 + $0x58] sm:$0xff] %v7585_v49  ;;  %v7592_v57 = vadd.f32 %v6463_v53, %v7562_v16  ;;  %6564 = vmatprep.mubr.bf16.mxu0 %v2476_v51  ;;  %v688_v58 = vpop.f32.mrb[11].mxu0  ;;  %2955 = vmatprep.mubr.bf16.mxu1 %v1949_v25  ;;  %v6846_v25 = vld [vmem:[#allocation10 + $0x20] sm:$0xff]  }
 0x145   :  { %1044 = vst [vmem:[#allocation2 + $0x48] sm:$0xff] %v7588_v52  ;;  %v7596_v59 = vadd.f32 %v7562_v16, %v688_v58  ;;  %v2141_v60 = vpack.c.bf16 %v2047_v56, %v2046_v55  ;;  %v2050_v12 = vld [vmem:[#allocation2 + $0x39] sm:$0xff]  ;;  %v1328_v17 = vld [vmem:[#allocation2 + $0x27] sm:$0xff] }
 0x146   :  { %v2048_v0 = vld [vmem:[#allocation2 + $0x29] sm:$0xff]  ;;  %1047 = vst [vmem:[#allocation2 + $0x60] sm:$0xff] %v7592_v57  ;;  %v2049_v1 = vld [vmem:[#allocation2 + $0x31] sm:$0xff]  ;;  %v1953_v2 = vpack.c.bf16 %v7592_v57, %v7585_v49  ;;  %v1331_v38 = vld [vmem:[#allocation2 + $0x3f] sm:$0xff] }
 0x147   :  { %1045 = vst [vmem:[#allocation2 + $0x50] sm:$0xff] %v7596_v59  ;;  %v2477_v3 = vmul.bf16 %v6840_v54, %v2141_v60  ;;  %v2142_v4 = vpack.c.bf16 %v2049_v1, %v2048_v0  ;;  %v1952_v5 = vpack.c.bf16 %v7596_v59, %v7588_v52  ;;  %v1329_v9 = vld [vmem:[#allocation2 + $0x2f] sm:$0xff]  ;;  %v1330_v37 = vld [vmem:[#allocation2 + $0x37] sm:$0xff] }
 0x148   :  { %v1422_v23 = vpack.c.bf16 %v1329_v9, %v1328_v17  ;;  %v1423_v50 = vpack.c.bf16 %v1331_v38, %v1330_v37  ;;  %v6845_v51 = vld [vmem:[#allocation9 + $0x18] sm:$0xff]   ;;  %v6850_v55 = vld [vmem:[#allocation10 + $0x30] sm:$0xff]   ;;  %v6848_v17 = vld [vmem:[#allocation9 + $0x20] sm:$0xff]  }
 0x149   :  { %6565 = vmatmul.mubr.bf16.vlgmr.msra.gmra.mrb[96].mxu0 %v2477_v3  ;;  %v6466_v7 = vpop.f32.mrb[12].mxu0  ;;  %v2478_v8 = vmul.bf16 %v6842_v63, %v2142_v4  ;;  %v6855_v38 = vld [vmem:[#allocation10 + $0x48] sm:$0xff]  }
 0x14a   :  { %v7605_v10 = vadd.f32 %v6466_v7, %v7562_v16  ;;  %v701_v11 = vpop.f32.mrb[13].mxu0  ;;  %v1758_v34 = vmul.bf16 %v6844_v24, %v1422_v23  ;;  %v1759_v61 = vmul.bf16 %v6845_v51, %v1423_v50  ;;  %v6849_v50 = vld [vmem:[#allocation9 + $0x28] sm:$0xff]  }
 0x14b   :  { %2956 = vmatmul.mubr.bf16.gmra.mrb[4].mxu1 %v1757_v6  ;;  %v7608_v13 = vadd.f32 %v7562_v16, %v701_v11  ;;  %v6467_v14 = vpop.f32.mrb[14].mxu0  ;;  %6568 = vmatprep.mubr.bf16.mxu0 %v2478_v8  ;;  %v6851_v6 = vld [vmem:[#allocation10 + $0x38] sm:$0xff]  }
 0x14c   :  { %1050 = vst [vmem:[#allocation2 + $0x78] sm:$0xff] %v7605_v10  ;;  %2963 = vmatprep.mubr.bf16.mxu1 %v1950_v43  ;;  %v7612_v18 = vadd.f32 %v6467_v14, %v7562_v16  ;;  %v704_v19 = vpop.f32.mrb[15].mxu0  ;;  %v2051_v20 = vld [vmem:[#allocation2 + $0x41] sm:$0xff]  ;;  %v6847_v43 = vld [vmem:[#allocation10 + $0x28] sm:$0xff]  }
 0x14d   :  { %1048 = vst [vmem:[#allocation2 + $0x68] sm:$0xff] %v7608_v13  ;;  %v7616_v21 = vadd.f32 %v7562_v16, %v704_v19  ;;  %v2143_v22 = vpack.c.bf16 %v2051_v20, %v2050_v12  ;;  %v2054_v41 = vld [vmem:[#allocation2 + $0x59] sm:$0xff]  ;;  %v1332_v9 = vld [vmem:[#allocation2 + $0x47] sm:$0xff] }
 0x14e   :  { %1051 = vst [vmem:[#allocation2 + $0x80] sm:$0xff] %v7612_v18  ;;  %v2052_v26 = vld [vmem:[#allocation2 + $0x49] sm:$0xff]  ;;  %v2053_v27 = vld [vmem:[#allocation2 + $0x51] sm:$0xff]  ;;  %v1955_v29 = vpack.c.bf16 %v7612_v18, %v7605_v10 }
 0x14f   :  { %1049 = vst [vmem:[#allocation2 + $0x70] sm:$0xff] %v7616_v21  ;;  %v2479_v30 = vmul.bf16 %v6843_v15, %v2143_v22  ;;  %v2144_v31 = vpack.c.bf16 %v2053_v27, %v2052_v26  ;;  %v1954_v33 = vpack.c.bf16 %v7616_v21, %v7608_v13  ;;  %v1333_v0 = vld [vmem:[#allocation2 + $0x4f] sm:$0xff] }
 0x150   :  { %v1424_v15 = vpack.c.bf16 %v1333_v0, %v1332_v9  ;;  %v6854_v22 = vld [vmem:[#allocation10 + $0x40] sm:$0xff]  }
 0x151   :  { %6569 = vmatmul.mubr.bf16.gmra.mrb[100].mxu0 %v2479_v30  ;;  %v2480_v35 = vmul.bf16 %v6846_v25, %v2144_v31  ;;  %v6470_v36 = vpop.f32.mrb[16].mxu0  ;;  %v1334_v31 = vld [vmem:[#allocation2 + $0x57] sm:$0xff] }
 0x152   :  { %v7625_v39 = vadd.f32 %v6470_v36, %v7562_v16  ;;  %v717_v42 = vpop.f32.mrb[17].mxu0  ;;  %v1760_v26 = vmul.bf16 %v6848_v17, %v1424_v15 }
 0x153   :  { %2964 = vmatmul.mubr.bf16.gmra.mrb[8].mxu1 %v1758_v34  ;;  %6572 = vmatprep.mubr.bf16.mxu0 %v2480_v35  ;;  %v7628_v44 = vadd.f32 %v7562_v16, %v717_v42  ;;  %v6471_v45 = vpop.f32.mrb[18].mxu0  ;;  %v1335_v34 = vld [vmem:[#allocation2 + $0x5f] sm:$0xff] }
 0x154   :  { %2971 = vmatprep.mubr.bf16.mxu1 %v1951_v40  ;;  %1054 = vst [vmem:[#allocation2 + $0x98] sm:$0xff] %v7625_v39  ;;  %v2055_v46 = vld [vmem:[#allocation2 + $0x61] sm:$0xff]  ;;  %v7635_v47 = vadd.f32 %v6471_v45, %v7562_v16  ;;  %v720_v48 = vpop.f32.mrb[19].mxu0 }
 0x155   :  { %v2145_v53 = vpack.c.bf16 %v2055_v46, %v2054_v41  ;;  %1052 = vst [vmem:[#allocation2 + $0x88] sm:$0xff] %v7628_v44  ;;  %v7639_v54 = vadd.f32 %v7562_v16, %v720_v48  ;;  %v2058_v3 = vld [vmem:[#allocation2 + $0x79] sm:$0xff]  ;;  %v1425_v48 = vpack.c.bf16 %v1335_v34, %v1334_v31 }
 0x156   :  { %1055 = vst [vmem:[#allocation2 + $0xa0] sm:$0xff] %v7635_v47  ;;  %v2056_v28 = vld [vmem:[#allocation2 + $0x69] sm:$0xff]  ;;  %v2057_v32 = vld [vmem:[#allocation2 + $0x71] sm:$0xff]  ;;  %v1957_v40 = vpack.c.bf16 %v7635_v47, %v7625_v39 }
 0x157   :  { %v2481_v56 = vmul.bf16 %v6847_v43, %v2145_v53  ;;  %1053 = vst [vmem:[#allocation2 + $0x90] sm:$0xff] %v7639_v54  ;;  %v2146_v58 = vpack.c.bf16 %v2057_v32, %v2056_v28  ;;  %v1956_v60 = vpack.c.bf16 %v7639_v54, %v7628_v44  ;;  %v1337_v0 = vld [vmem:[#allocation2 + $0x6f] sm:$0xff] }
 0x159   :  { %6573 = vmatmul.mubr.bf16.gmra.mrb[104].mxu0 %v2481_v56  ;;  %v2482_v62 = vmul.bf16 %v6850_v55, %v2146_v58  ;;  %v6474_v63 = vpop.f32.mrb[20].mxu0  ;;  %v6858_v55 = vld [vmem:[#allocation10 + $0x50] sm:$0xff]   ;;  %v1761_v58 = vmul.bf16 %v6849_v50, %v1425_v48 }
 0x15a   :  { %v7648_v1 = vadd.f32 %v6474_v63, %v7562_v16  ;;  %v733_v4 = vpop.f32.mrb[21].mxu0  ;;  %v1336_v63 = vld [vmem:[#allocation2 + $0x67] sm:$0xff] }
 0x15b   :  { %2972 = vmatmul.mubr.bf16.gmra.mrb[12].mxu1 %v1759_v61  ;;  %6576 = vmatprep.mubr.bf16.mxu0 %v2482_v62  ;;  %v7651_v7 = vadd.f32 %v7562_v16, %v733_v4  ;;  %v6475_v8 = vpop.f32.mrb[22].mxu0 }
 0x15c   :  { %2979 = vmatprep.mubr.bf16.mxu1 %v1952_v5  ;;  %1058 = vst [vmem:[#allocation2 + $0xb8] sm:$0xff] %v7648_v1  ;;  %v2059_v11 = vld [vmem:[#allocation2 + $0x81] sm:$0xff]  ;;  %v7658_v12 = vadd.f32 %v6475_v8, %v7562_v16  ;;  %v736_v14 = vpop.f32.mrb[23].mxu0 }
 0x15d   :  { %v2147_v19 = vpack.c.bf16 %v2059_v11, %v2058_v3  ;;  %1056 = vst [vmem:[#allocation2 + $0xa8] sm:$0xff] %v7651_v7  ;;  %v7662_v20 = vadd.f32 %v7562_v16, %v736_v14  ;;  %v2062_v36 = vld [vmem:[#allocation2 + $0x99] sm:$0xff]  ;;  %v6859_v8 = vld [vmem:[#allocation10 + $0x58] sm:$0xff]  }
 0x15e   :  { %1059 = vst [vmem:[#allocation2 + $0xc0] sm:$0xff] %v7658_v12  ;;  %v2060_v52 = vld [vmem:[#allocation2 + $0x89] sm:$0xff]  ;;  %v2061_v59 = vld [vmem:[#allocation2 + $0x91] sm:$0xff]  ;;  %v1959_v5 = vpack.c.bf16 %v7658_v12, %v7648_v1 }
 0x15f   :  { %v2483_v23 = vmul.bf16 %v6851_v6, %v2147_v19  ;;  %1057 = vst [vmem:[#allocation2 + $0xb0] sm:$0xff] %v7662_v20  ;;  %v2148_v24 = vpack.c.bf16 %v2061_v59, %v2060_v52  ;;  %v1958_v25 = vpack.c.bf16 %v7662_v20, %v7651_v7  ;;  %v1426_v19 = vpack.c.bf16 %v1337_v0, %v1336_v63 }
 0x161   :  { %6577 = vmatmul.mubr.bf16.gmra.mrb[108].mxu0 %v2483_v23  ;;  %v2484_v27 = vmul.bf16 %v6854_v22, %v2148_v24  ;;  %v6478_v30 = vpop.f32.mrb[24].mxu0  ;;  %v6852_v22 = vld [vmem:[#allocation9 + $0x30] sm:$0xff]   ;;  %v6862_v23 = vld [vmem:[#allocation10 + $0x60] sm:$0xff]  }
 0x162   :  { %v7671_v35 = vadd.f32 %v6478_v30, %v7562_v16  ;;  %v749_v37 = vpop.f32.mrb[25].mxu0  ;;  %v1762_v30 = vmul.bf16 %v6852_v22, %v1426_v19 }
 0x163   :  { %2980 = vmatmul.mubr.bf16.gmra.mrb[16].mxu1 %v1760_v26  ;;  %6580 = vmatprep.mubr.bf16.mxu0 %v2484_v27  ;;  %v7674_v41 = vadd.f32 %v7562_v16, %v749_v37  ;;  %v6479_v42 = vpop.f32.mrb[26].mxu0  ;;  %v1339_v37 = vld [vmem:[#allocation2 + $0x7f] sm:$0xff] }
 0x164   :  { %2987 = vmatprep.mubr.bf16.mxu1 %v1953_v2  ;;  %1062 = vst [vmem:[#allocation2 + $0xd8] sm:$0xff] %v7671_v35  ;;  %v2063_v43 = vld [vmem:[#allocation2 + $0xa1] sm:$0xff]  ;;  %v7681_v45 = vadd.f32 %v6479_v42, %v7562_v16  ;;  %v752_v46 = vpop.f32.mrb[27].mxu0 }
 0x165   :  { %v2149_v51 = vpack.c.bf16 %v2063_v43, %v2062_v36  ;;  %1060 = vst [vmem:[#allocation2 + $0xc8] sm:$0xff] %v7674_v41  ;;  %v7685_v53 = vadd.f32 %v7562_v16, %v752_v46  ;;  %v2066_v4 = vld [vmem:[#allocation2 + $0xb9] sm:$0xff] }
 0x166   :  { %1063 = vst [vmem:[#allocation2 + $0xe0] sm:$0xff] %v7681_v45  ;;  %v2064_v49 = vld [vmem:[#allocation2 + $0xa9] sm:$0xff]  ;;  %v2065_v57 = vld [vmem:[#allocation2 + $0xb1] sm:$0xff]  ;;  %v1961_v2 = vpack.c.bf16 %v7681_v45, %v7671_v35 }
 0x167   :  { %v2485_v28 = vmul.bf16 %v6855_v38, %v2149_v51  ;;  %1061 = vst [vmem:[#allocation2 + $0xd0] sm:$0xff] %v7685_v53  ;;  %v2150_v32 = vpack.c.bf16 %v2065_v57, %v2064_v49  ;;  %v1960_v56 = vpack.c.bf16 %v7685_v53, %v7674_v41  ;;  %v1338_v36 = vld [vmem:[#allocation2 + $0x77] sm:$0xff] }
 0x168   :  { %v6863_v46 = vld [vmem:[#allocation10 + $0x68] sm:$0xff]   ;;  %v1427_v57 = vpack.c.bf16 %v1339_v37, %v1338_v36  ;;  %v6870_v37 = vld [vmem:[#allocation10 + $0x80] sm:$0xff]  }
 0x169   :  { %6581 = vmatmul.mubr.bf16.gmra.mrb[112].mxu0 %v2485_v28  ;;  %v2486_v61 = vmul.bf16 %v6858_v55, %v2150_v32  ;;  %v6482_v62 = vpop.f32.mrb[28].mxu0  ;;  %v6853_v28 = vld [vmem:[#allocation9 + $0x38] sm:$0xff]  }
 0x16a   :  { %v7694_v3 = vadd.f32 %v6482_v62, %v7562_v16  ;;  %v765_v6 = vpop.f32.mrb[29].mxu0 }
 0x16b   :  { %2988 = vmatmul.mubr.bf16.gmra.mrb[20].mxu1 %v1761_v58  ;;  %6584 = vmatprep.mubr.bf16.mxu0 %v2486_v61  ;;  %v7697_v9 = vadd.f32 %v7562_v16, %v765_v6  ;;  %v6483_v11 = vpop.f32.mrb[30].mxu0  ;;  %v6866_v61 = vld [vmem:[#allocation10 + $0x70] sm:$0xff]  }
 0x16c   :  { %2995 = vmatprep.mubr.bf16.mxu1 %v1954_v33  ;;  %1066 = vst [vmem:[#allocation2 + $0xf8] sm:$0xff] %v7694_v3  ;;  %v2067_v14 = vld [vmem:[#allocation2 + $0xc1] sm:$0xff]  ;;  %v7704_v15 = vadd.f32 %v6483_v11, %v7562_v16  ;;  %v768_v17 = vpop.f32.mrb[31].mxu0 }
 0x16d   :  { %v2151_v52 = vpack.c.bf16 %v2067_v14, %v2066_v4  ;;  %1064 = vst [vmem:[#allocation2 + $0xe8] sm:$0xff] %v7697_v9  ;;  %v7708_v59 = vadd.f32 %v7562_v16, %v768_v17  ;;  %v2070_v42 = vld [vmem:[#allocation2 + $0xd9] sm:$0xff]  ;;  %v1763_v4 = vmul.bf16 %v6853_v28, %v1427_v57  ;;  %v1340_v11 = vld [vmem:[#allocation2 + $0x87] sm:$0xff]  ;;  %v1341_v14 = vld [vmem:[#allocation2 + $0x8f] sm:$0xff] }
 0x16e   :  { %1067 = vst [vmem:[#allocation2 + $0x100] sm:$0xff] %v7704_v15  ;;  %v2068_v13 = vld [vmem:[#allocation2 + $0xc9] sm:$0xff]  ;;  %v2069_v21 = vld [vmem:[#allocation2 + $0xd1] sm:$0xff]  ;;  %v1963_v33 = vpack.c.bf16 %v7704_v15, %v7694_v3  ;;  %v1343_v28 = vld [vmem:[#allocation2 + $0x9f] sm:$0xff] }
 0x16f   :  { %v2487_v24 = vmul.bf16 %v6859_v8, %v2151_v52  ;;  %1065 = vst [vmem:[#allocation2 + $0xf0] sm:$0xff] %v7708_v59  ;;  %v2152_v26 = vpack.c.bf16 %v2069_v21, %v2068_v13  ;;  %v1962_v27 = vpack.c.bf16 %v7708_v59, %v7697_v9  ;;  %v6867_v52 = vld [vmem:[#allocation10 + $0x78] sm:$0xff]   ;;  %v1342_v57 = vld [vmem:[#allocation2 + $0x97] sm:$0xff] }
 0x170   :  { %v6914_v3 = vld [vmem:[%s8645_s3 + $0x108] sm:$0xff]  }
 0x171   :  { %6585 = vmatmul.mubr.bf16.gmra.mrb[116].mxu0 %v2487_v24  ;;  %v2488_v31 = vmul.bf16 %v6862_v23, %v2152_v26  ;;  %v6486_v34 = vpop.f32.mrb[32].mxu0 }
 0x172   :  { %v7717_v38 = vadd.f32 %v6486_v34, %v7562_v16  ;;  %v781_v43 = vpop.f32.mrb[33].mxu0 }
 0x173   :  { %2996 = vmatmul.mubr.bf16.gmra.mrb[24].mxu1 %v1762_v30  ;;  %6588 = vmatprep.mubr.bf16.mxu0 %v2488_v31  ;;  %v7720_v48 = vadd.f32 %v7562_v16, %v781_v43  ;;  %v6487_v50 = vpop.f32.mrb[34].mxu0  ;;  %v1428_v30 = vpack.c.bf16 %v1341_v14, %v1340_v11  ;;  %v6856_v31 = vld [vmem:[#allocation9 + $0x40] sm:$0xff]   ;;  %v1429_v11 = vpack.c.bf16 %v1343_v28, %v1342_v57  ;;  %v6857_v14 = vld [vmem:[#allocation9 + $0x48] sm:$0xff]  }
 0x174   :  { %3003 = vmatprep.mubr.bf16.mxu1 %v1955_v29  ;;  %1070 = vst [vmem:[#allocation2 + $0x118] sm:$0xff] %v7717_v38  ;;  %v2071_v51 = vld [vmem:[#allocation2 + $0xe1] sm:$0xff]  ;;  %v7727_v55 = vadd.f32 %v6487_v50, %v7562_v16  ;;  %v784_v49 = vpop.f32.mrb[35].mxu0 }
 0x175   :  { %v2153_v32 = vpack.c.bf16 %v2071_v51, %v2070_v42  ;;  %1068 = vst [vmem:[#allocation2 + $0x108] sm:$0xff] %v7720_v48  ;;  %v7731_v58 = vadd.f32 %v7562_v16, %v784_v49  ;;  %v2074_v19 = vld [vmem:[#allocation2 + $0xf9] sm:$0xff]  ;;  %v1764_v50 = vmul.bf16 %v6856_v31, %v1428_v30  ;;  %v1765_v30 = vmul.bf16 %v6857_v14, %v1429_v11  ;;  %v6878_v11 = vld [vmem:[#allocation10 + $0xa0] sm:$0xff]  }
 0x176   :  { %1071 = vst [vmem:[#allocation2 + $0x120] sm:$0xff] %v7727_v55  ;;  %v2072_v10 = vld [vmem:[#allocation2 + $0xe9] sm:$0xff]  ;;  %v2073_v18 = vld [vmem:[#allocation2 + $0xf1] sm:$0xff]  ;;  %v1965_v29 = vpack.c.bf16 %v7727_v55, %v7717_v38  ;;  %v6896_v57 = vld [vmem:[%s8645_s3 + $0x140] sm:$0xff]  }
 0x177   :  { %v2489_v62 = vmul.bf16 %v6863_v46, %v2153_v32  ;;  %1069 = vst [vmem:[#allocation2 + $0x110] sm:$0xff] %v7731_v58  ;;  %v2154_v63 = vpack.c.bf16 %v2073_v18, %v2072_v10  ;;  %v1964_v0 = vpack.c.bf16 %v7731_v58, %v7720_v48  ;;  %v6871_v18 = vld [vmem:[#allocation10 + $0x88] sm:$0xff]   ;;  %6660 = vmatprep.subr.bf16.mxu1 %v6896_v57 }
 0x178   :  { %6661 = vmatpush3.bf16.msra.mxu1 %v6896_v57 }
 0x179   :  { %6589 = vmatmul.mubr.bf16.gmra.mrb[120].mxu0 %v2489_v62  ;;  %v2490_v6 = vmul.bf16 %v6866_v61, %v2154_v63  ;;  %v6490_v8 = vpop.f32.mrb[36].mxu0 }
 0x17a   :  { %v7740_v17 = vadd.f32 %v6490_v8, %v7562_v16  ;;  %v797_v22 = vpop.f32.mrb[37].mxu0 }
 0x17b   :  { %3004 = vmatmul.mubr.bf16.gmra.mrb[28].mxu1 %v1763_v4  ;;  %6592 = vmatprep.mubr.bf16.mxu0 %v2490_v6  ;;  %v7743_v23 = vadd.f32 %v7562_v16, %v797_v22  ;;  %v6491_v13 = vpop.f32.mrb[38].mxu0 }
 0x17c   :  { %3011 = vmatprep.mubr.bf16.mxu1 %v1956_v60  ;;  %1074 = vst [vmem:[#allocation2 + $0x138] sm:$0xff] %v7740_v17  ;;  %v2075_v21 = vld [vmem:[#allocation2 + $0x101] sm:$0xff]  ;;  %v7750_v24 = vadd.f32 %v6491_v13, %v7562_v16  ;;  %v800_v26 = vpop.f32.mrb[39].mxu0 }
 0x17d   :  { %v2155_v34 = vpack.c.bf16 %v2075_v21, %v2074_v19  ;;  %1072 = vst [vmem:[#allocation2 + $0x128] sm:$0xff] %v7743_v23  ;;  %v7754_v36 = vadd.f32 %v7562_v16, %v800_v26  ;;  %v2078_v61 = vld [vmem:[#allocation2 + $0x119] sm:$0xff] }
 0x17e   :  { %1075 = vst [vmem:[#allocation2 + $0x140] sm:$0xff] %v7750_v24  ;;  %v2076_v44 = vld [vmem:[#allocation2 + $0x109] sm:$0xff]  ;;  %v2077_v54 = vld [vmem:[#allocation2 + $0x111] sm:$0xff]  ;;  %v1967_v60 = vpack.c.bf16 %v7750_v24, %v7740_v17 }
 0x17f   :  { %v2491_v42 = vmul.bf16 %v6867_v52, %v2155_v34  ;;  %1073 = vst [vmem:[#allocation2 + $0x130] sm:$0xff] %v7754_v36  ;;  %v2156_v43 = vpack.c.bf16 %v2077_v54, %v2076_v44  ;;  %v1966_v46 = vpack.c.bf16 %v7754_v36, %v7743_v23  ;;  %v6874_v52 = vld [vmem:[#allocation10 + $0x90] sm:$0xff]   ;;  %v1345_v44 = vld [vmem:[#allocation2 + $0xaf] sm:$0xff] }
 0x181   :  { %6593 = vmatmul.mubr.bf16.gmra.mrb[124].mxu0 %v2491_v42  ;;  %v2492_v51 = vmul.bf16 %v6870_v37, %v2156_v43  ;;  %v6494_v49 = vpop.f32.mrb[40].mxu0  ;;  %v1344_v37 = vld [vmem:[#allocation2 + $0xa7] sm:$0xff] }
 0x182   :  { %v7763_v32 = vadd.f32 %v6494_v49, %v7562_v16  ;;  %v813_v10 = vpop.f32.mrb[41].mxu0 }
 0x183   :  { %3012 = vmatmul.mubr.bf16.gmra.mrb[32].mxu1 %v1764_v50  ;;  %6596 = vmatprep.mubr.bf16.mxu0 %v2492_v51  ;;  %v7766_v62 = vadd.f32 %v7562_v16, %v813_v10  ;;  %v6495_v63 = vpop.f32.mrb[42].mxu0  ;;  %v6875_v50 = vld [vmem:[#allocation10 + $0x98] sm:$0xff]  }
 0x184   :  { %3019 = vmatprep.mubr.bf16.mxu1 %v1957_v40  ;;  %1078 = vst [vmem:[#allocation2 + $0x158] sm:$0xff] %v7763_v32  ;;  %v2079_v4 = vld [vmem:[#allocation2 + $0x121] sm:$0xff]  ;;  %v7773_v6 = vadd.f32 %v6495_v63, %v7562_v16  ;;  %v816_v8 = vpop.f32.mrb[43].mxu0 }
 0x185   :  { %v2157_v19 = vpack.c.bf16 %v2079_v4, %v2078_v61  ;;  %1076 = vst [vmem:[#allocation2 + $0x148] sm:$0xff] %v7766_v62  ;;  %v7777_v22 = vadd.f32 %v7562_v16, %v816_v8  ;;  %v2082_v42 = vld [vmem:[#allocation2 + $0x139] sm:$0xff]  ;;  %v6860_v63 = vld [vmem:[#allocation9 + $0x50] sm:$0xff]  }
 0x186   :  { %1079 = vst [vmem:[#allocation2 + $0x160] sm:$0xff] %v7773_v6  ;;  %v2080_v39 = vld [vmem:[#allocation2 + $0x129] sm:$0xff]  ;;  %v2081_v47 = vld [vmem:[#allocation2 + $0x131] sm:$0xff]  ;;  %v1969_v40 = vpack.c.bf16 %v7773_v6, %v7763_v32 }
 0x187   :  { %v2493_v13 = vmul.bf16 %v6871_v18, %v2157_v19  ;;  %1077 = vst [vmem:[#allocation2 + $0x150] sm:$0xff] %v7777_v22  ;;  %v2158_v21 = vpack.c.bf16 %v2081_v47, %v2080_v39  ;;  %v1968_v26 = vpack.c.bf16 %v7777_v22, %v7766_v62  ;;  %v1430_v18 = vpack.c.bf16 %v1345_v44, %v1344_v37 }
 0x189   :  { %6597 = vmatmul.mubr.bf16.gmra.mrb[128].mxu0 %v2493_v13  ;;  %v2494_v31 = vmul.bf16 %v6874_v52, %v2158_v21  ;;  %v6498_v34 = vpop.f32.mrb[44].mxu0  ;;  %v1766_v39 = vmul.bf16 %v6860_v63, %v1430_v18  ;;  %v1346_v21 = vld [vmem:[#allocation2 + $0xb7] sm:$0xff] }
 0x18a   :  { %v7786_v54 = vadd.f32 %v6498_v34, %v7562_v16  ;;  %v829_v43 = vpop.f32.mrb[45].mxu0 }
 0x18b   :  { %3020 = vmatmul.mubr.bf16.gmra.mrb[36].mxu1 %v1765_v30  ;;  %6600 = vmatprep.mubr.bf16.mxu0 %v2494_v31  ;;  %v7789_v51 = vadd.f32 %v7562_v16, %v829_v43  ;;  %v6499_v49 = vpop.f32.mrb[46].mxu0  ;;  %v1347_v30 = vld [vmem:[#allocation2 + $0xbf] sm:$0xff] }
 0x18c   :  { %3027 = vmatprep.mubr.bf16.mxu1 %v1958_v25  ;;  %1082 = vst [vmem:[#allocation2 + $0x178] sm:$0xff] %v7786_v54  ;;  %v2083_v28 = vld [vmem:[#allocation2 + $0x141] sm:$0xff]  ;;  %v7799_v61 = vadd.f32 %v6499_v49, %v7562_v16  ;;  %v832_v10 = vpop.f32.mrb[47].mxu0 }
 0x18d   :  { %v2159_v4 = vpack.c.bf16 %v2083_v28, %v2082_v42  ;;  %1080 = vst [vmem:[#allocation2 + $0x168] sm:$0xff] %v7789_v51  ;;  %v7803_v8 = vadd.f32 %v7562_v16, %v832_v10  ;;  %v2086_v37 = vld [vmem:[#allocation2 + $0x159] sm:$0xff]  ;;  %v1431_v28 = vpack.c.bf16 %v1347_v30, %v1346_v21  ;;  %v6861_v10 = vld [vmem:[#allocation9 + $0x58] sm:$0xff]  }
 0x18e   :  { %1083 = vst [vmem:[#allocation2 + $0x180] sm:$0xff] %v7799_v61  ;;  %v2084_v7 = vld [vmem:[#allocation2 + $0x149] sm:$0xff]  ;;  %v2085_v20 = vld [vmem:[#allocation2 + $0x151] sm:$0xff]  ;;  %v1971_v25 = vpack.c.bf16 %v7799_v61, %v7786_v54 }
 0x18f   :  { %v2495_v14 = vmul.bf16 %v6875_v50, %v2159_v4  ;;  %1081 = vst [vmem:[#allocation2 + $0x170] sm:$0xff] %v7803_v8  ;;  %v2160_v19 = vpack.c.bf16 %v2085_v20, %v2084_v7  ;;  %v1970_v52 = vpack.c.bf16 %v7803_v8, %v7789_v51  ;;  %v6879_v42 = vld [vmem:[#allocation10 + $0xa8] sm:$0xff]   ;;  %v6881_v4 = vld [vmem:[#allocation10 + $0xb0] sm:$0xff]  }
 0x191   :  { %6601 = vmatmul.mubr.bf16.gmra.mrb[132].mxu0 %v2495_v14  ;;  %v6502_v47 = vpop.f32.mrb[48].mxu0  ;;  %v2496_v13 = vmul.bf16 %v6878_v11, %v2160_v19  ;;  %v1767_v14 = vmul.bf16 %v6861_v10, %v1431_v28 }
 0x192   :  { %v7812_v31 = vadd.f32 %v6502_v47, %v7562_v16  ;;  %v845_v34 = vpop.f32.mrb[49].mxu0  ;;  %v1348_v47 = vld [vmem:[#allocation2 + $0xc7] sm:$0xff] }
 0x193   :  { %3028 = vmatmul.mubr.bf16.gmra.mrb[40].mxu1 %v1766_v39  ;;  %v7815_v44 = vadd.f32 %v7562_v16, %v845_v34  ;;  %6604 = vmatprep.mubr.bf16.mxu0 %v2496_v13  ;;  %v6503_v43 = vpop.f32.mrb[50].mxu0  ;;  %v1349_v13 = vld [vmem:[#allocation2 + $0xcf] sm:$0xff] }
 0x194   :  { %3035 = vmatprep.mubr.bf16.mxu1 %v1959_v5  ;;  %1086 = vst [vmem:[#allocation2 + $0x198] sm:$0xff] %v7812_v31  ;;  %v2087_v50 = vld [vmem:[#allocation2 + $0x161] sm:$0xff]  ;;  %v7822_v49 = vadd.f32 %v6503_v43, %v7562_v16  ;;  %v848_v57 = vpop.f32.mrb[51].mxu0  ;;  %v1432_v10 = vpack.c.bf16 %v1349_v13, %v1348_v47  ;;  %v1350_v13 = vld [vmem:[#allocation2 + $0xd7] sm:$0xff] }
 0x195   :  { %1084 = vst [vmem:[#allocation2 + $0x188] sm:$0xff] %v7815_v44  ;;  %v2161_v18 = vpack.c.bf16 %v2087_v50, %v2086_v37  ;;  %v7826_v63 = vadd.f32 %v7562_v16, %v848_v57  ;;  %v2090_v34 = vld [vmem:[#allocation2 + $0x179] sm:$0xff]  ;;  %v6882_v43 = vld [vmem:[#allocation10 + $0xb8] sm:$0xff]  }
 0x196   :  { %1087 = vst [vmem:[#allocation2 + $0x1a0] sm:$0xff] %v7822_v49  ;;  %v2088_v1 = vld [vmem:[#allocation2 + $0x169] sm:$0xff]  ;;  %v2089_v12 = vld [vmem:[#allocation2 + $0x171] sm:$0xff] }
 0x197   :  { %v2497_v11 = vmul.bf16 %v6879_v42, %v2161_v18  ;;  %1085 = vst [vmem:[#allocation2 + $0x190] sm:$0xff] %v7826_v63  ;;  %v2162_v7 = vpack.c.bf16 %v2089_v12, %v2088_v1  ;;  %v1972_v20 = vpack.c.bf16 %v7826_v63, %v7815_v44  ;;  %v6864_v18 = vld [vmem:[#allocation9 + $0x60] sm:$0xff]   ;;  %v6884_v12 = vld [vmem:[#allocation10 + $0xc0] sm:$0xff]  }
 0x199   :  { %6605 = vmatmul.mubr.bf16.gmra.mrb[136].mxu0 %v2497_v11  ;;  %v6506_v19 = vpop.f32.mrb[52].mxu0  ;;  %v2498_v39 = vmul.bf16 %v6881_v4, %v2162_v7 }
 0x19a   :  { %v7835_v21 = vadd.f32 %v6506_v19, %v7562_v16  ;;  %v861_v30 = vpop.f32.mrb[53].mxu0  ;;  %v1768_v19 = vmul.bf16 %v6864_v18, %v1432_v10 }
 0x19b   :  { %3036 = vmatmul.mubr.bf16.gmra.mrb[44].mxu1 %v1767_v14  ;;  %v7838_v37 = vadd.f32 %v7562_v16, %v861_v30  ;;  %v6507_v42 = vpop.f32.mrb[54].mxu0  ;;  %6608 = vmatprep.mubr.bf16.mxu0 %v2498_v39  ;;  %v1351_v30 = vld [vmem:[#allocation2 + $0xdf] sm:$0xff] }
 0x19c   :  { %3043 = vmatprep.mubr.bf16.mxu1 %v1960_v56  ;;  %1090 = vst [vmem:[#allocation2 + $0x1b8] sm:$0xff] %v7835_v21  ;;  %v7845_v50 = vadd.f32 %v6507_v42, %v7562_v16  ;;  %v864_v57 = vpop.f32.mrb[55].mxu0  ;;  %v2091_v28 = vld [vmem:[#allocation2 + $0x181] sm:$0xff] }
 0x19d   :  { %1088 = vst [vmem:[#allocation2 + $0x1a8] sm:$0xff] %v7838_v37  ;;  %v7849_v4 = vadd.f32 %v7562_v16, %v864_v57  ;;  %v2163_v1 = vpack.c.bf16 %v2091_v28, %v2090_v34  ;;  %v2094_v57 = vld [vmem:[#allocation2 + $0x199] sm:$0xff] }
 0x19e   :  { %1091 = vst [vmem:[#allocation2 + $0x1c0] sm:$0xff] %v7845_v50  ;;  %v2092_v41 = vld [vmem:[#allocation2 + $0x189] sm:$0xff]  ;;  %v2093_v53 = vld [vmem:[#allocation2 + $0x191] sm:$0xff] }
 0x19f   :  { %1089 = vst [vmem:[#allocation2 + $0x1b0] sm:$0xff] %v7849_v4  ;;  %v2499_v11 = vmul.bf16 %v6882_v43, %v2163_v1  ;;  %v2164_v7 = vpack.c.bf16 %v2093_v53, %v2092_v41  ;;  %v6885_v1 = vld [vmem:[#allocation10 + $0xc8] sm:$0xff]   ;;  %v1433_v41 = vpack.c.bf16 %v1351_v30, %v1350_v13  ;;  %v6865_v53 = vld [vmem:[#allocation9 + $0x68] sm:$0xff]   ;;  %v8653_v44 = vpack.c.bf16 %v7849_v4, %v7838_v37 }
 0x1a0   :  { %v8047_v37 = vld [vmem:[%s8646_s4] ss:$0 sm:$0xff] }
 0x1a1   :  { %v6510_v39 = vpop.f32.mrb[56].mxu0  ;;  %6609 = vmatmul.mubr.bf16.gmra.mrb[140].mxu0 %v2499_v11  ;;  %v2500_v47 = vmul.bf16 %v6884_v12, %v2164_v7  ;;  %v1769_v30 = vmul.bf16 %v6865_v53, %v1433_v41 }
 0x1a2   :  { %v7858_v34 = vadd.f32 %v6510_v39, %v7562_v16  ;;  %v877_v42 = vpop.f32.mrb[57].mxu0 }
 0x1a3   :  { %3044 = vmatmul.mubr.bf16.gmra.mrb[48].mxu1 %v1768_v19  ;;  %v7861_v28 = vadd.f32 %v7562_v16, %v877_v42  ;;  %v6511_v43 = vpop.f32.mrb[58].mxu0  ;;  %6612 = vmatprep.mubr.bf16.mxu0 %v2500_v47  ;;  %v6887_v19 = vld [vmem:[#allocation10 + $0xd0] sm:$0xff]  }
 0x1a4   :  { %3051 = vmatprep.mubr.bf16.mxu1 %v1961_v2  ;;  %1094 = vst [vmem:[#allocation2 + $0x1d8] sm:$0xff] %v7858_v34  ;;  %v7868_v10 = vadd.f32 %v6511_v43, %v7562_v16  ;;  %v880_v18 = vpop.f32.mrb[59].mxu0  ;;  %v2095_v12 = vld [vmem:[#allocation2 + $0x1a1] sm:$0xff] }
 0x1a5   :  { %1092 = vst [vmem:[#allocation2 + $0x1c8] sm:$0xff] %v7861_v28  ;;  %v7872_v11 = vadd.f32 %v7562_v16, %v880_v18  ;;  %v2165_v7 = vpack.c.bf16 %v2095_v12, %v2094_v57  ;;  %v1352_v57 = vld [vmem:[#allocation2 + $0xe7] sm:$0xff]  ;;  %v1353_v18 = vld [vmem:[#allocation2 + $0xef] sm:$0xff]  ;;  %v2098_v14 = vld [vmem:[#allocation2 + $0x1b9] sm:$0xff] }
 0x1a6   :  { %1095 = vst [vmem:[#allocation2 + $0x1e0] sm:$0xff] %v7868_v10  ;;  %v2096_v35 = vld [vmem:[#allocation2 + $0x1a9] sm:$0xff]  ;;  %v2097_v45 = vld [vmem:[#allocation2 + $0x1b1] sm:$0xff] }
 0x1a7   :  { %1093 = vst [vmem:[#allocation2 + $0x1d0] sm:$0xff] %v7872_v11  ;;  %v2501_v39 = vmul.bf16 %v6885_v1, %v2165_v7  ;;  %v2166_v47 = vpack.c.bf16 %v2097_v45, %v2096_v35  ;;  %v6888_v7 = vld [vmem:[#allocation10 + $0xd8] sm:$0xff]   ;;  %v1434_v35 = vpack.c.bf16 %v1353_v18, %v1352_v57 }
 0x1a8   :  { %v6868_v45 = vld [vmem:[#allocation9 + $0x70] sm:$0xff]  }
 0x1a9   :  { %v6514_v42 = vpop.f32.mrb[60].mxu0  ;;  %6613 = vmatmul.mubr.bf16.gmra.mrb[144].mxu0 %v2501_v39  ;;  %v2502_v43 = vmul.bf16 %v6887_v19, %v2166_v47  ;;  %v6890_v47 = vld [vmem:[#allocation10 + $0xe0] sm:$0xff]   ;;  %v1770_v57 = vmul.bf16 %v6868_v45, %v1434_v35  ;;  %v1355_v18 = vld [vmem:[#allocation2 + $0xff] sm:$0xff] }
 0x1aa   :  { %v7881_v12 = vadd.f32 %v6514_v42, %v7562_v16  ;;  %v893_v56 = vpop.f32.mrb[61].mxu0  ;;  %v7913_v35 = vld [vmem:[%s8644_s2] ss:$0 sm:$0xff] }
 0x1ab   :  { %3052 = vmatmul.mubr.bf16.gmra.mrb[52].mxu1 %v1769_v30  ;;  %v7884_v2 = vadd.f32 %v7562_v16, %v893_v56  ;;  %v6515_v1 = vpop.f32.mrb[62].mxu0  ;;  %6616 = vmatprep.mubr.bf16.mxu0 %v2502_v43 }
 0x1ac   :  { %3059 = vmatprep.mubr.bf16.mxu1 %v1962_v27  ;;  %1098 = vst [vmem:[#allocation2 + $0x1f8] sm:$0xff] %v7881_v12  ;;  %v7891_v41 = vadd.f32 %v6515_v1, %v7562_v16  ;;  %v896_v53 = vpop.f32.mrb[63].mxu0  ;;  %v2099_v19 = vld [vmem:[#allocation2 + $0x1c1] sm:$0xff] }
 0x1ad   :  { %1096 = vst [vmem:[#allocation2 + $0x1e8] sm:$0xff] %v7884_v2  ;;  %v7895_v56 = vadd.f32 %v7562_v16, %v896_v53  ;;  %v2167_v39 = vpack.c.bf16 %v2099_v19, %v2098_v14  ;;  %v6911_v53 = vld [vmem:[%s8645_s3 + $0x100] sm:$0xff]   ;;  %v1354_v19 = vld [vmem:[#allocation2 + $0xf7] sm:$0xff] }
 0x1ae   :  { %1099 = vst [vmem:[#allocation2 + $0x200] sm:$0xff] %v7891_v41  ;;  %v2100_v9 = vld [vmem:[#allocation2 + $0x1c9] sm:$0xff]  ;;  %v2101_v59 = vld [vmem:[#allocation2 + $0x1d1] sm:$0xff]  ;;  %v2102_v5 = vld [vmem:[#allocation2 + $0x1d9] sm:$0xff]  ;;  %6279 = vmatprep.subr.bf16.mxu0 %v6911_v53 }
 0x1af   :  { %1097 = vst [vmem:[#allocation2 + $0x1f0] sm:$0xff] %v7895_v56  ;;  %v2503_v30 = vmul.bf16 %v6888_v7, %v2167_v39  ;;  %v2168_v42 = vpack.c.bf16 %v2101_v59, %v2100_v9  ;;  %v1978_v43 = vpack.c.bf16 %v7895_v56, %v7884_v2  ;;  %v6912_v7 = vld [vmem:[%s8645_s3 + $0xc0] sm:$0xff]  }
 0x1b0   :  { %6280 = vmatpush3.bf16.msra.mxu0 %v6912_v7 }
 0x1b1   :  { %v6518_v1 = vpop.f32.mrb[64].mxu0  ;;  %6617 = vmatmul.mubr.bf16.gmra.mrb[148].mxu0 %v2503_v30  ;;  %v2504_v14 = vmul.bf16 %v6890_v47, %v2168_v42  ;;  %v6891_v47 = vld [vmem:[#allocation10 + $0xe8] sm:$0xff]   ;;  %v1435_v30 = vpack.c.bf16 %v1355_v18, %v1354_v19  ;;  %v6869_v42 = vld [vmem:[#allocation9 + $0x78] sm:$0xff]   ;;  %6281 = vmatprep.subr.bf16.mxu0 %v6914_v3 }
 0x1b2   :  { %v918_v13 = vadd.f32 %v6518_v1, %v7562_v16  ;;  %v909_v27 = vpop.f32.mrb[65].mxu0  ;;  %v6893_v1 = vld [vmem:[#allocation10 + $0xf0] sm:$0xff]   ;;  %v1356_v19 = vld [vmem:[#allocation2 + $0x107] sm:$0xff] }
 0x1b3   :  { %3060 = vmatmul.mubr.bf16.gmra.mrb[56].mxu1 %v1770_v57  ;;  %v7916_v45 = vadd.f32 %v7913_v35, %v909_v27  ;;  %v6519_v39 = vpop.f32.mrb[66].mxu0  ;;  %6620 = vmatprep.mubr.bf16.mxu0 %v2504_v14  ;;  %v6915_v14 = vld [vmem:[%s8645_s3 + $0xc8] sm:$0xff]   ;;  %v1771_v53 = vmul.bf16 %v6869_v42, %v1435_v30 }
 0x1b4   :  { %3067 = vmatprep.mubr.bf16.mxu1 %v1963_v33  ;;  %1102 = vst [vmem:[#allocation2 + $0x218] sm:$0xff] %v918_v13  ;;  %v7922_v16 = vadd.f32 %v7913_v35, %v6519_v39  ;;  %v912_v9 = vpop.f32.mrb[67].mxu0  ;;  %v2103_v59 = vld [vmem:[#allocation2 + $0x1e1] sm:$0xff]  ;;  %6282 = vmatpush3.bf16.msra.mxu0 %v6915_v14 }
 0x1b5   :  { %1100 = vst [vmem:[#allocation2 + $0x208] sm:$0xff] %v7916_v45  ;;  %v7926_v27 = vadd.f32 %v7913_v35, %v912_v9  ;;  %v2169_v57 = vpack.c.bf16 %v2103_v59, %v2102_v5  ;;  %v6918_v9 = vld [vmem:[%s8645_s3 + $0x110] sm:$0xff]   ;;  %v2106_v3 = vld [vmem:[#allocation2 + $0x1f9] sm:$0xff] }
 0x1b6   :  { %1103 = vst [vmem:[#allocation2 + $0x220] sm:$0xff] %v7922_v16  ;;  %v2104_v15 = vld [vmem:[#allocation2 + $0x1e9] sm:$0xff]  ;;  %v2105_v33 = vld [vmem:[#allocation2 + $0x1f1] sm:$0xff]  ;;  %6283 = vmatprep.subr.bf16.mxu0 %v6918_v9 }
 0x1b7   :  { %1101 = vst [vmem:[#allocation2 + $0x210] sm:$0xff] %v7926_v27  ;;  %v2505_v13 = vmul.bf16 %v6891_v47, %v2169_v57  ;;  %v2170_v18 = vpack.c.bf16 %v2105_v33, %v2104_v15  ;;  %v1357_v59 = vld [vmem:[#allocation2 + $0x10f] sm:$0xff] }
 0x1b8   :  { %v6919_v15 = vld [vmem:[%s8645_s3 + $0xd0] sm:$0xff]   ;;  %v1436_v14 = vpack.c.bf16 %v1357_v59, %v1356_v19  ;;  %v6921_v59 = vld [vmem:[%s8645_s3 + $0x148] sm:$0xff]  }
 0x1b9   :  { %v6522_v7 = vpop.f32.mrb[68].mxu0  ;;  %6621 = vmatmul.mubr.bf16.gmra.mrb[152].mxu0 %v2505_v13  ;;  %v2506_v39 = vmul.bf16 %v6893_v1, %v2170_v18  ;;  %v6894_v1 = vld [vmem:[#allocation10 + $0xf8] sm:$0xff]   ;;  %6662 = vmatprep.subr.bf16.mxu1 %v6921_v59 }
 0x1ba   :  { %v934_v47 = vadd.f32 %v7913_v35, %v6522_v7  ;;  %v925_v57 = vpop.f32.mrb[69].mxu0  ;;  %v6872_v7 = vld [vmem:[#allocation9 + $0x80] sm:$0xff]   ;;  %6284 = vmatpush3.bf16.msra.mxu0 %v6919_v15  ;;  %v6926_v15 = vld [vmem:[%s8645_s3 + $0x120] sm:$0xff]   ;;  %6663 = vmatpush3.bf16.msra.mxu1 %v6921_v59 }
 0x1bb   :  { %3068 = vmatmul.mubr.bf16.gmra.mrb[60].mxu1 %v1771_v53  ;;  %v926_v30 = vadd.f32 %v7913_v35, %v925_v57  ;;  %v6523_v42 = vpop.f32.mrb[70].mxu0  ;;  %6624 = vmatprep.mubr.bf16.mxu0 %v2506_v39  ;;  %v6897_v57 = vld [vmem:[#allocation10 + $0x100] sm:$0xff]   ;;  %v6922_v39 = vld [vmem:[%s8645_s3 + $0x118] sm:$0xff]  }
 0x1bc   :  { %3075 = vmatprep.mubr.bf16.mxu1 %v1964_v0  ;;  %1106 = vst [vmem:[#allocation2 + $0x238] sm:$0xff] %v934_v47  ;;  %v937_v33 = vadd.f32 %v7913_v35, %v6523_v42  ;;  %v928_v13 = vpop.f32.mrb[71].mxu0  ;;  %v2107_v18 = vld [vmem:[#allocation2 + $0x201] sm:$0xff]  ;;  %v6923_v0 = vld [vmem:[%s8645_s3 + $0xd8] sm:$0xff]   ;;  %6285 = vmatprep.subr.bf16.mxu0 %v6922_v39  ;;  %v1772_v47 = vmul.bf16 %v6872_v7, %v1436_v14 }
 0x1bd   :  { %1104 = vst [vmem:[#allocation2 + $0x228] sm:$0xff] %v926_v30  ;;  %v929_v53 = vadd.f32 %v7913_v35, %v928_v13  ;;  %v2171_v5 = vpack.c.bf16 %v2107_v18, %v2106_v3  ;;  %v1359_v3 = vld [vmem:[#allocation2 + $0x11f] sm:$0xff] }
 0x1be   :  { %1107 = vst [vmem:[#allocation2 + $0x240] sm:$0xff] %v937_v33  ;;  %v2108_v48 = vld [vmem:[#allocation2 + $0x209] sm:$0xff]  ;;  %v2109_v58 = vld [vmem:[#allocation2 + $0x211] sm:$0xff]  ;;  %6286 = vmatpush3.bf16.msra.mxu0 %v6923_v0  ;;  %v6873_v0 = vld [vmem:[#allocation9 + $0x88] sm:$0xff]  }
 0x1bf   :  { %1105 = vst [vmem:[#allocation2 + $0x230] sm:$0xff] %v929_v53  ;;  %v2507_v19 = vmul.bf16 %v6894_v1, %v2171_v5  ;;  %v2172_v9 = vpack.c.bf16 %v2109_v58, %v2108_v48  ;;  %v1358_v33 = vld [vmem:[#allocation2 + $0x117] sm:$0xff]  ;;  %v6927_v1 = vld [vmem:[%s8645_s3 + $0xe0] sm:$0xff]   ;;  %6287 = vmatprep.subr.bf16.mxu0 %v6926_v15 }
 0x1c0   :  { %v2110_v5 = vld [vmem:[#allocation2 + $0x219] sm:$0xff]  ;;  %v1437_v58 = vpack.c.bf16 %v1359_v3, %v1358_v33  ;;  %v1360_v33 = vld [vmem:[#allocation2 + $0x127] sm:$0xff] }
 0x1c1   :  { %v6526_v30 = vpop.f32.mrb[72].mxu0  ;;  %6625 = vmatmul.mubr.bf16.gmra.mrb[156].mxu0 %v2507_v19  ;;  %v2508_v42 = vmul.bf16 %v6897_v57, %v2172_v9  ;;  %v6898_v53 = vld [vmem:[#allocation10 + $0x108] sm:$0xff]  }
 0x1c2   :  { %v950_v13 = vadd.f32 %v7913_v35, %v6526_v30  ;;  %v941_v18 = vpop.f32.mrb[73].mxu0  ;;  %v6929_v30 = vld [vmem:[%s8645_s3 + $0x128] sm:$0xff]   ;;  %6288 = vmatpush3.bf16.msra.mxu0 %v6927_v1 }
 0x1c3   :  { %3076 = vmatmul.mubr.bf16.gmra.mrb[64].mxu1 %v1772_v47  ;;  %v942_v14 = vadd.f32 %v7913_v35, %v941_v18  ;;  %v6527_v7 = vpop.f32.mrb[74].mxu0  ;;  %6628 = vmatprep.mubr.bf16.mxu0 %v2508_v42  ;;  %v6900_v47 = vld [vmem:[#allocation10 + $0x110] sm:$0xff]   ;;  %v1773_v42 = vmul.bf16 %v6873_v0, %v1437_v58  ;;  %v6933_v18 = vld [vmem:[%s8645_s3 + $0x130] sm:$0xff]  }
 0x1c4   :  { %3083 = vmatprep.mubr.bf16.mxu1 %v1965_v29  ;;  %1110 = vst [vmem:[#allocation2 + $0x258] sm:$0xff] %v950_v13  ;;  %v953_v57 = vadd.f32 %v7913_v35, %v6527_v7  ;;  %v944_v39 = vpop.f32.mrb[75].mxu0  ;;  %v2111_v48 = vld [vmem:[#allocation2 + $0x221] sm:$0xff]  ;;  %6289 = vmatprep.subr.bf16.mxu0 %v6929_v30 }
 0x1c5   :  { %1108 = vst [vmem:[#allocation2 + $0x248] sm:$0xff] %v942_v14  ;;  %v945_v19 = vadd.f32 %v7913_v35, %v944_v39  ;;  %v2173_v9 = vpack.c.bf16 %v2111_v48, %v2110_v5  ;;  %v6930_v29 = vld [vmem:[%s8645_s3 + $0xe8] sm:$0xff]   ;;  %v2114_v7 = vld [vmem:[#allocation2 + $0x239] sm:$0xff] }
 0x1c6   :  { %1111 = vst [vmem:[#allocation2 + $0x260] sm:$0xff] %v953_v57  ;;  %v2112_v38 = vld [vmem:[#allocation2 + $0x229] sm:$0xff]  ;;  %v2113_v55 = vld [vmem:[#allocation2 + $0x231] sm:$0xff]  ;;  %6290 = vmatpush3.bf16.msra.mxu0 %v6930_v29 }
 0x1c7   :  { %1109 = vst [vmem:[#allocation2 + $0x250] sm:$0xff] %v945_v19  ;;  %v2509_v59 = vmul.bf16 %v6898_v53, %v2173_v9  ;;  %v2174_v3 = vpack.c.bf16 %v2113_v55, %v2112_v38  ;;  %v1361_v5 = vld [vmem:[#allocation2 + $0x12f] sm:$0xff]  ;;  %v6901_v48 = vld [vmem:[#allocation10 + $0x118] sm:$0xff]   ;;  %6291 = vmatprep.subr.bf16.mxu0 %v6933_v18  ;;  %v6936_v29 = vld [vmem:[%s8645_s3 + $0x138] sm:$0xff]  }
 0x1c8   :  { %v6934_v53 = vld [vmem:[%s8645_s3 + $0xf0] sm:$0xff]   ;;  %v1438_v9 = vpack.c.bf16 %v1361_v5, %v1360_v33  ;;  %v1363_v18 = vld [vmem:[#allocation2 + $0x13f] sm:$0xff] }
 0x1c9   :  { %v6530_v13 = vpop.f32.mrb[76].mxu0  ;;  %6629 = vmatmul.mubr.bf16.gmra.mrb[160].mxu0 %v2509_v59  ;;  %v2510_v15 = vmul.bf16 %v6900_v47, %v2174_v3  ;;  %v6876_v47 = vld [vmem:[#allocation9 + $0x90] sm:$0xff]   ;;  %v6903_v55 = vld [vmem:[#allocation10 + $0x120] sm:$0xff]   ;;  %v6937_v3 = vld [vmem:[%s8645_s3 + $0xf8] sm:$0xff]  }
 0x1ca   :  { %v966_v1 = vadd.f32 %v7913_v35, %v6530_v13  ;;  %v957_v14 = vpop.f32.mrb[77].mxu0  ;;  %6292 = vmatpush3.bf16.msra.mxu0 %v6934_v53 }
 0x1cb   :  { %3084 = vmatmul.mubr.bf16.gmra.mrb[68].mxu1 %v1773_v42  ;;  %v958_v57 = vadd.f32 %v7913_v35, %v957_v14  ;;  %v6531_v39 = vpop.f32.mrb[78].mxu0  ;;  %6632 = vmatprep.mubr.bf16.mxu0 %v2510_v15  ;;  %v1774_v42 = vmul.bf16 %v6876_v47, %v1438_v9  ;;  %v1362_v15 = vld [vmem:[#allocation2 + $0x137] sm:$0xff]  ;;  %v6877_v9 = vld [vmem:[#allocation9 + $0x98] sm:$0xff]  }
 0x1cc   :  { %3091 = vmatprep.mubr.bf16.mxu1 %v1966_v46  ;;  %1114 = vst [vmem:[#allocation2 + $0x278] sm:$0xff] %v966_v1  ;;  %v969_v58 = vadd.f32 %v7913_v35, %v6531_v39  ;;  %v960_v0 = vpop.f32.mrb[79].mxu0  ;;  %v2115_v19 = vld [vmem:[#allocation2 + $0x241] sm:$0xff]  ;;  %6293 = vmatprep.subr.bf16.mxu0 %v6936_v29 }
 0x1cd   :  { %1112 = vst [vmem:[#allocation2 + $0x268] sm:$0xff] %v958_v57  ;;  %v961_v30 = vadd.f32 %v7913_v35, %v960_v0  ;;  %v2175_v38 = vpack.c.bf16 %v2115_v19, %v2114_v7  ;;  %v2118_v14 = vld [vmem:[#allocation2 + $0x259] sm:$0xff]  ;;  %v1439_v19 = vpack.c.bf16 %v1363_v18, %v1362_v15  ;;  %v6907_v18 = vld [vmem:[#allocation10 + $0x138] sm:$0xff]  }
 0x1ce   :  { %1115 = vst [vmem:[#allocation2 + $0x280] sm:$0xff] %v969_v58  ;;  %v2116_v23 = vld [vmem:[#allocation2 + $0x249] sm:$0xff]  ;;  %v2117_v36 = vld [vmem:[#allocation2 + $0x251] sm:$0xff]  ;;  %6294 = vmatpush3.bf16.msra.mxu0 %v6937_v3  ;;  %v7021_v0 = vld [vmem:[#allocation2] sm:$0xff] }
 0x1cf   :  { %1113 = vst [vmem:[#allocation2 + $0x270] sm:$0xff] %v961_v30  ;;  %v2511_v46 = vmul.bf16 %v6901_v48, %v2175_v38  ;;  %v2176_v59 = vpack.c.bf16 %v2117_v36, %v2116_v23  ;;  %v6904_v57 = vld [vmem:[#allocation10 + $0x128] sm:$0xff]   ;;  %6700 = vmatprep.subr.bf16.mxu0 %v7021_v0  ;;  %v6906_v38 = vld [vmem:[#allocation10 + $0x130] sm:$0xff]  }
 0x1d1   :  { %v6534_v33 = vpop.f32.mrb[80].mxu0  ;;  %6633 = vmatmul.mubr.bf16.gmra.mrb[164].mxu0 %v2511_v46  ;;  %v2512_v13 = vmul.bf16 %v6903_v55, %v2176_v59  ;;  %v1364_v46 = vld [vmem:[#allocation2 + $0x147] sm:$0xff]  ;;  %v1365_v59 = vld [vmem:[#allocation2 + $0x14f] sm:$0xff] }
 0x1d2   :  { %v982_v5 = vadd.f32 %v7913_v35, %v6534_v33  ;;  %v973_v1 = vpop.f32.mrb[81].mxu0 }
 0x1d3   :  { %3092 = vmatmul.mubr.bf16.gmra.mrb[72].mxu1 %v1774_v42  ;;  %v974_v7 = vadd.f32 %v7913_v35, %v973_v1  ;;  %v6535_v53 = vpop.f32.mrb[82].mxu0  ;;  %6636 = vmatprep.mubr.bf16.mxu0 %v2512_v13 }
 0x1d4   :  { %3099 = vmatprep.mubr.bf16.mxu1 %v1967_v60  ;;  %1118 = vst [vmem:[#allocation2 + $0x298] sm:$0xff] %v982_v5  ;;  %v985_v39 = vadd.f32 %v7913_v35, %v6535_v53  ;;  %v976_v48 = vpop.f32.mrb[83].mxu0  ;;  %v2119_v58 = vld [vmem:[#allocation2 + $0x261] sm:$0xff]  ;;  %v1775_v60 = vmul.bf16 %v6877_v9, %v1439_v19  ;;  %v6880_v53 = vld [vmem:[#allocation9 + $0xa0] sm:$0xff]  }
 0x1d5   :  { %1116 = vst [vmem:[#allocation2 + $0x288] sm:$0xff] %v974_v7  ;;  %v977_v47 = vadd.f32 %v7913_v35, %v976_v48  ;;  %v2177_v30 = vpack.c.bf16 %v2119_v58, %v2118_v14  ;;  %v2122_v33 = vld [vmem:[#allocation2 + $0x279] sm:$0xff]  ;;  %v1440_v7 = vpack.c.bf16 %v1365_v59, %v1364_v46  ;;  %v6909_v48 = vld [vmem:[#allocation10 + $0x140] sm:$0xff]  }
 0x1d6   :  { %1119 = vst [vmem:[#allocation2 + $0x2a0] sm:$0xff] %v985_v39  ;;  %v2120_v55 = vld [vmem:[#allocation2 + $0x269] sm:$0xff]  ;;  %v2121_v29 = vld [vmem:[#allocation2 + $0x271] sm:$0xff] }
 0x1d7   :  { %1117 = vst [vmem:[#allocation2 + $0x290] sm:$0xff] %v977_v47  ;;  %v2513_v17 = vmul.bf16 %v6904_v57, %v2177_v30  ;;  %v2178_v24 = vpack.c.bf16 %v2121_v29, %v2120_v55  ;;  %v1776_v62 = vmul.bf16 %v6880_v53, %v1440_v7  ;;  %v1366_v47 = vld [vmem:[#allocation2 + $0x157] sm:$0xff]  ;;  %v1367_v30 = vld [vmem:[#allocation2 + $0x15f] sm:$0xff]  ;;  %v1369_v7 = vld [vmem:[#allocation2 + $0x16f] sm:$0xff] }
 0x1d8   :  { %v1441_v59 = vpack.c.bf16 %v1367_v30, %v1366_v47 }
 0x1d9   :  { %v6538_v23 = vpop.f32.mrb[84].mxu0  ;;  %6637 = vmatmul.mubr.bf16.gmra.mrb[168].mxu0 %v2513_v17  ;;  %v2514_v36 = vmul.bf16 %v6906_v38, %v2178_v24 }
 0x1da   :  { %v998_v3 = vadd.f32 %v7913_v35, %v6538_v23  ;;  %v989_v42 = vpop.f32.mrb[85].mxu0 }
 0x1db   :  { %3100 = vmatmul.mubr.bf16.gmra.mrb[76].mxu1 %v1775_v60  ;;  %v990_v13 = vadd.f32 %v7913_v35, %v989_v42  ;;  %v6539_v15 = vpop.f32.mrb[86].mxu0  ;;  %6640 = vmatprep.mubr.bf16.mxu0 %v2514_v36  ;;  %v6910_v60 = vld [vmem:[#allocation10 + $0x148] sm:$0xff]  }
 0x1dc   :  { %3107 = vmatprep.mubr.bf16.mxu1 %v1968_v26  ;;  %1122 = vst [vmem:[#allocation2 + $0x2b8] sm:$0xff] %v998_v3  ;;  %v1001_v5 = vadd.f32 %v7913_v35, %v6539_v15  ;;  %v992_v1 = vpop.f32.mrb[87].mxu0  ;;  %v2123_v14 = vld [vmem:[#allocation2 + $0x281] sm:$0xff] }
 0x1dd   :  { %1120 = vst [vmem:[#allocation2 + $0x2a8] sm:$0xff] %v990_v13  ;;  %v993_v57 = vadd.f32 %v7913_v35, %v992_v1  ;;  %v2179_v39 = vpack.c.bf16 %v2123_v14, %v2122_v33  ;;  %v2126_v29 = vld [vmem:[#allocation2 + $0x299] sm:$0xff]  ;;  %v1368_v14 = vld [vmem:[#allocation2 + $0x167] sm:$0xff] }
 0x1de   :  { %1123 = vst [vmem:[#allocation2 + $0x2c0] sm:$0xff] %v1001_v5  ;;  %v2124_v58 = vld [vmem:[#allocation2 + $0x289] sm:$0xff]  ;;  %v2125_v0 = vld [vmem:[#allocation2 + $0x291] sm:$0xff]  ;;  %v6883_v3 = vld [vmem:[#allocation9 + $0xa8] sm:$0xff]  }
 0x1df   :  { %1121 = vst [vmem:[#allocation2 + $0x2b0] sm:$0xff] %v993_v57  ;;  %v2515_v19 = vmul.bf16 %v6907_v18, %v2179_v39  ;;  %v2180_v9 = vpack.c.bf16 %v2125_v0, %v2124_v58  ;;  %v6916_v13 = vld [vmem:[#allocation10 + $0x150] sm:$0xff]   ;;  %v1777_v32 = vmul.bf16 %v6883_v3, %v1441_v59  ;;  %v6917_v0 = vld [vmem:[#allocation10 + $0x158] sm:$0xff]  }
 0x1e1   :  { %v6542_v22 = vpop.f32.mrb[88].mxu0  ;;  %6641 = vmatmul.mubr.bf16.gmra.mrb[172].mxu0 %v2515_v19  ;;  %v2516_v26 = vmul.bf16 %v6909_v48, %v2180_v9 }
 0x1e2   :  { %v1014_v38 = vadd.f32 %v7913_v35, %v6542_v22  ;;  %v1005_v55 = vpop.f32.mrb[89].mxu0  ;;  %v1442_v22 = vpack.c.bf16 %v1369_v7, %v1368_v14  ;;  %v1373_v14 = vld [vmem:[#allocation2 + $0x18f] sm:$0xff] }
 0x1e3   :  { %3108 = vmatmul.mubr.bf16.gmra.mrb[80].mxu1 %v1776_v62  ;;  %v1006_v17 = vadd.f32 %v7913_v35, %v1005_v55  ;;  %v6543_v24 = vpop.f32.mrb[90].mxu0  ;;  %6644 = vmatprep.mubr.bf16.mxu0 %v2516_v26  ;;  %v6886_v26 = vld [vmem:[#allocation9 + $0xb0] sm:$0xff]  }
 0x1e4   :  { %3115 = vmatprep.mubr.bf16.mxu1 %v1969_v40  ;;  %1126 = vst [vmem:[#allocation2 + $0x2d8] sm:$0xff] %v1014_v38  ;;  %v1017_v23 = vadd.f32 %v7913_v35, %v6543_v24  ;;  %v1008_v36 = vpop.f32.mrb[91].mxu0  ;;  %v2127_v46 = vld [vmem:[#allocation2 + $0x2a1] sm:$0xff]  ;;  %v6924_v38 = vld [vmem:[#allocation10 + $0x160] sm:$0xff]   ;;  %v1778_v51 = vmul.bf16 %v6886_v26, %v1442_v22 }
 0x1e5   :  { %1124 = vst [vmem:[#allocation2 + $0x2c8] sm:$0xff] %v1006_v17  ;;  %v1009_v42 = vadd.f32 %v7913_v35, %v1008_v36  ;;  %v2181_v33 = vpack.c.bf16 %v2127_v46, %v2126_v29  ;;  %v2130_v39 = vld [vmem:[#allocation2 + $0x2b9] sm:$0xff]  ;;  %v1376_v22 = vld [vmem:[#allocation2 + $0x1a7] sm:$0xff]  ;;  %v1377_v26 = vld [vmem:[#allocation2 + $0x1af] sm:$0xff] }
 0x1e6   :  { %1127 = vst [vmem:[#allocation2 + $0x2e0] sm:$0xff] %v1017_v23  ;;  %v2128_v15 = vld [vmem:[#allocation2 + $0x2a9] sm:$0xff]  ;;  %v2129_v18 = vld [vmem:[#allocation2 + $0x2b1] sm:$0xff]  ;;  %v1446_v63 = vpack.c.bf16 %v1377_v26, %v1376_v22 }
 0x1e7   :  { %1125 = vst [vmem:[#allocation2 + $0x2d0] sm:$0xff] %v1009_v42  ;;  %v2517_v5 = vmul.bf16 %v6910_v60, %v2181_v33  ;;  %v2182_v1 = vpack.c.bf16 %v2129_v18, %v2128_v15  ;;  %v1371_v60 = vld [vmem:[#allocation2 + $0x17f] sm:$0xff]  ;;  %v6925_v36 = vld [vmem:[#allocation10 + $0x168] sm:$0xff]  }
 0x1e8   :  { %v6931_v42 = vld [vmem:[#allocation10 + $0x170] sm:$0xff]  }
 0x1e9   :  { %v6546_v6 = vpop.f32.mrb[92].mxu0  ;;  %6645 = vmatmul.mubr.bf16.gmra.mrb[176].mxu0 %v2517_v5  ;;  %v2518_v40 = vmul.bf16 %v6916_v13, %v2182_v1  ;;  %v6943_v5 = vld [vmem:[%s8645_s3 + $0x150] sm:$0xff]  }
 0x1ea   :  { %v1030_v53 = vadd.f32 %v7913_v35, %v6546_v6  ;;  %v1021_v57 = vpop.f32.mrb[93].mxu0  ;;  %6664 = vmatprep.subr.bf16.mxu1 %v6943_v5 }
 0x1eb   :  { %3116 = vmatmul.mubr.bf16.gmra.mrb[84].mxu1 %v1777_v32  ;;  %v1022_v48 = vadd.f32 %v7913_v35, %v1021_v57  ;;  %v6547_v58 = vpop.f32.mrb[94].mxu0  ;;  %6648 = vmatprep.mubr.bf16.mxu0 %v2518_v40  ;;  %v1372_v40 = vld [vmem:[#allocation2 + $0x187] sm:$0xff] }
 0x1ec   :  { %3123 = vmatprep.mubr.bf16.mxu1 %v1970_v52  ;;  %1130 = vst [vmem:[#allocation2 + $0x2f8] sm:$0xff] %v1030_v53  ;;  %v1033_v19 = vadd.f32 %v7913_v35, %v6547_v58  ;;  %v1024_v9 = vpop.f32.mrb[95].mxu0  ;;  %v2131_v62 = vld [vmem:[#allocation2 + $0x2c1] sm:$0xff]  ;;  %v1370_v52 = vld [vmem:[#allocation2 + $0x177] sm:$0xff]  ;;  %6665 = vmatpush3.bf16.msra.mxu1 %v6943_v5  ;;  %v1444_v7 = vpack.c.bf16 %v1373_v14, %v1372_v40 }
 0x1ed   :  { %1128 = vst [vmem:[#allocation2 + $0x2e8] sm:$0xff] %v1022_v48  ;;  %v1025_v47 = vadd.f32 %v7913_v35, %v1024_v9  ;;  %v2183_v30 = vpack.c.bf16 %v2131_v62, %v2130_v39  ;;  %v2134_v23 = vld [vmem:[#allocation2 + $0x2d9] sm:$0xff]  ;;  %v6889_v35 = vld [vmem:[#allocation9 + $0xb8] sm:$0xff]   ;;  %v1443_v59 = vpack.c.bf16 %v1371_v60, %v1370_v52 }
 0x1ee   :  { %1131 = vst [vmem:[#allocation2 + $0x300] sm:$0xff] %v1033_v19  ;;  %v2132_v55 = vld [vmem:[#allocation2 + $0x2c9] sm:$0xff]  ;;  %v2133_v29 = vld [vmem:[#allocation2 + $0x2d1] sm:$0xff]  ;;  %v1375_v58 = vld [vmem:[#allocation2 + $0x19f] sm:$0xff] }
 0x1ef   :  { %1129 = vst [vmem:[#allocation2 + $0x2f0] sm:$0xff] %v1025_v47  ;;  %v2519_v17 = vmul.bf16 %v6917_v0, %v2183_v30  ;;  %v2184_v24 = vpack.c.bf16 %v2133_v29, %v2132_v55  ;;  %v1779_v6 = vmul.bf16 %v6889_v35, %v1443_v59  ;;  %v6892_v53 = vld [vmem:[#allocation9 + $0xc0] sm:$0xff]   ;;  %v8652_v0 = vpack.c.bf16 %v7822_v49, %v7812_v31  ;;  %v6895_v9 = vld [vmem:[#allocation9 + $0xc8] sm:$0xff]   ;;  %v6902_v55 = vld [vmem:[#allocation9 + $0xd8] sm:$0xff]  }
 0x1f0   :  { %v1780_v39 = vmul.bf16 %v6892_v53, %v1444_v7  ;;  %v1374_v48 = vld [vmem:[#allocation2 + $0x197] sm:$0xff]  ;;  %v8654_v31 = vpack.c.bf16 %v7845_v50, %v7835_v21  ;;  %v1381_v52 = vld [vmem:[#allocation2 + $0x1cf] sm:$0xff]  ;;  %v8655_v21 = vpack.c.bf16 %v7872_v11, %v7861_v28  ;;  %v8656_v7 = vpack.c.bf16 %v7868_v10, %v7858_v34 }
 0x1f1   :  { %6649 = vmatmul.mubr.bf16.gmra.mrb[180].mxu0 %v2519_v17  ;;  %v2520_v8 = vmul.bf16 %v6924_v38, %v2184_v24  ;;  %v1445_v19 = vpack.c.bf16 %v1375_v58, %v1374_v48  ;;  %v1378_v30 = vld [vmem:[#allocation2 + $0x1b7] sm:$0xff]  ;;  %v1379_v38 = vld [vmem:[#allocation2 + $0x1bf] sm:$0xff] }
 0x1f2   :  { %v1447_v49 = vpack.c.bf16 %v1379_v38, %v1378_v30  ;;  %v6905_v35 = vld [vmem:[#allocation9 + $0xe0] sm:$0xff]   ;;  %v6908_v58 = vld [vmem:[#allocation9 + $0xe8] sm:$0xff]  }
 0x1f3   :  { %3124 = vmatmul.mubr.bf16.gmra.mrb[88].mxu1 %v1778_v51  ;;  %6652 = vmatprep.mubr.bf16.mxu0 %v2520_v8  ;;  %v1781_v62 = vmul.bf16 %v6895_v9, %v1445_v19  ;;  %v1380_v8 = vld [vmem:[#allocation2 + $0x1c7] sm:$0xff]  ;;  %v6952_v9 = vld [vmem:[%s8645_s3 + $0x158] sm:$0xff]   ;;  %v1385_v30 = vld [vmem:[#allocation2 + $0x1ef] sm:$0xff] }
 0x1f4   :  { %3131 = vmatprep.mubr.bf16.mxu1 %v1971_v25  ;;  %v2135_v46 = vld [vmem:[#allocation2 + $0x2e1] sm:$0xff]  ;;  %v1783_v51 = vmul.bf16 %v6902_v55, %v1447_v49  ;;  %6666 = vmatprep.subr.bf16.mxu1 %v6952_v9 }
 0x1f5   :  { %v2185_v3 = vpack.c.bf16 %v2135_v46, %v2134_v23  ;;  %v2138_v33 = vld [vmem:[#allocation2 + $0x2f9] sm:$0xff]  ;;  %v2139_v13 = vld [vmem:[#allocation2 + $0x301] sm:$0xff]  ;;  %6667 = vmatpush3.bf16.msra.mxu1 %v6952_v9 }
 0x1f6   :  { %v2136_v15 = vld [vmem:[#allocation2 + $0x2e9] sm:$0xff]  ;;  %v2137_v18 = vld [vmem:[#allocation2 + $0x2f1] sm:$0xff]  ;;  %v2187_v61 = vpack.c.bf16 %v2139_v13, %v2138_v33 }
 0x1f7   :  { %v2521_v1 = vmul.bf16 %v6925_v36, %v2185_v3  ;;  %v2186_v32 = vpack.c.bf16 %v2137_v18, %v2136_v15  ;;  %v6932_v25 = vld [vmem:[#allocation10 + $0x178] sm:$0xff]   ;;  %v1448_v36 = vpack.c.bf16 %v1381_v52, %v1380_v8 }
 0x1f8   :  { %v2523_v57 = vmul.bf16 %v6932_v25, %v2187_v61  ;;  %v1382_v61 = vld [vmem:[#allocation2 + $0x1d7] sm:$0xff]  ;;  %v1383_v25 = vld [vmem:[#allocation2 + $0x1df] sm:$0xff] }
 0x1f9   :  { %6653 = vmatmul.mubr.bf16.gmra.mrb[184].mxu0 %v2521_v1  ;;  %v2522_v54 = vmul.bf16 %v6931_v42, %v2186_v32  ;;  %v1784_v11 = vmul.bf16 %v6905_v35, %v1448_v36  ;;  %v1449_v48 = vpack.c.bf16 %v1383_v25, %v1382_v61 }
 0x1fb   :  { %3132 = vmatmul.mubr.bf16.gmra.mrb[92].mxu1 %v1779_v6  ;;  %6656 = vmatprep.mubr.bf16.mxu0 %v2522_v54 }
 0x1fc   :  { %3139 = vmatprep.mubr.bf16.mxu1 %v1972_v20  ;;  %v6899_v20 = vld [vmem:[#allocation9 + $0xd0] sm:$0xff]  }
 0x1fd   :  { %v1782_v47 = vmul.bf16 %v6899_v20, %v1446_v63  ;;  %v1785_v20 = vmul.bf16 %v6908_v58, %v1449_v48  ;;  %v1388_v58 = vld [vmem:[#allocation2 + $0x207] sm:$0xff] }
 0x201   :  { %6657 = vmatmul.mubr.bf16.gmra.mrb[188].mxu0 %v2523_v57 }
 0x203   :  { %3140 = vmatmul.mubr.bf16.gmra.mrb[96].mxu1 %v1780_v39 }
 0x204   :  { %3147 = vmatprep.mubr.bf16.mxu1 %v8652_v0 }
 0x20b   :  { %3148 = vmatmul.mubr.bf16.gmra.mrb[100].mxu1 %v1781_v62 }
 0x20c   :  { %3155 = vmatprep.mubr.bf16.mxu1 %v8653_v44 }
 0x213   :  { %3156 = vmatmul.mubr.bf16.gmra.mrb[104].mxu1 %v1782_v47  ;;  %v1384_v47 = vld [vmem:[#allocation2 + $0x1e7] sm:$0xff] }
 0x214   :  { %3163 = vmatprep.mubr.bf16.mxu1 %v8654_v31 }
 0x216   :  { %v2949_v29 = vpop.f32.mrb[0].mxu1 }
 0x217   :  { %v2951_v17 = vpop.f32.mrb[1].mxu1  ;;  %v2950_v60 = vadd.f32 %v8047_v37, %v2949_v29 }
 0x218   :  { %v2952_v24 = vpop.f32.mrb[2].mxu1  ;;  %v1450_v17 = vpack.c.bf16 %v1385_v30, %v1384_v47 }
 0x219   :  { %v2954_v4 = vpop.f32.mrb[3].mxu1  ;;  %v2953_v46 = vadd.f32 %v8047_v37, %v2952_v24  ;;  %v6913_v24 = vld [vmem:[#allocation9 + $0xf0] sm:$0xff]  }
 0x21b   :  { %3164 = vmatmul.mubr.bf16.gmra.mrb[108].mxu1 %v1783_v51 }
 0x21c   :  { %v6566_v23 = vpop.f32.mrb[96].mxu0  ;;  %3171 = vmatprep.mubr.bf16.mxu1 %v8655_v21 }
 0x21d   :  { %v3366_v50 = vpop.f32.mrb[97].mxu0 }
 0x21e   :  { %v3367_v59 = vadd.f32 %v3366_v50, %v2950_v60  ;;  %v2957_v3 = vpop.f32.mrb[4].mxu1  ;;  %v6567_v42 = vpop.f32.mrb[98].mxu0 }
 0x21f   :  { %v2958_v33 = vadd.f32 %v8047_v37, %v2957_v3  ;;  %v2959_v13 = vpop.f32.mrb[5].mxu1  ;;  %v3369_v15 = vpop.f32.mrb[99].mxu0 }
 0x220   :  { %v3749_v18 = vmax.f32 %v3367_v59, 0.0  ;;  %v3370_v5 = vadd.f32 %v3369_v15, %v2953_v46  ;;  %v2960_v1 = vpop.f32.mrb[6].mxu1  ;;  %v6957_v15 = vld [vmem:[%s8645_s3 + $0x160] sm:$0xff]  }
 0x221   :  { %v3375_v32 = vadd.f32 %v6566_v23, %v2958_v33  ;;  %v2961_v6 = vadd.f32 %v8047_v37, %v2960_v1  ;;  %v2962_v28 = vpop.f32.mrb[7].mxu1  ;;  %v1387_v33 = vld [vmem:[#allocation2 + $0x1ff] sm:$0xff]  ;;  %v8657_v1 = vpack.c.bf16 %v7891_v41, %v7881_v12  ;;  %6668 = vmatprep.subr.bf16.mxu1 %v6957_v15  ;;  %v6958_v41 = vld [vmem:[%s8645_s3 + $0x168] sm:$0xff]  }
 0x222   :  { %3845 = vst [vmem:[#allocation2 + $0x8] sm:$0xff] %v3749_v18  ;;  %v3750_v54 = vmax.f32 %v3370_v5, 0.0  ;;  %v6920_v28 = vld [vmem:[#allocation9 + $0xf8] sm:$0xff]   ;;  %6669 = vmatpush3.bf16.msra.mxu1 %v6957_v15 }
 0x223   :  { %v3751_v40 = vmax.f32 %v3375_v32, 0.0  ;;  %v3378_v14 = vadd.f32 %v6567_v42, %v2961_v6  ;;  %3172 = vmatmul.mubr.bf16.gmra.mrb[112].mxu1 %v1784_v11  ;;  %v1386_v42 = vld [vmem:[#allocation2 + $0x1f7] sm:$0xff]  ;;  %6670 = vmatprep.subr.bf16.mxu1 %v6958_v41 }
 0x224   :  { %3846 = vst [vmem:[#allocation2 + $0x10] sm:$0xff] %v3750_v54  ;;  %3179 = vmatprep.mubr.bf16.mxu1 %v8656_v7  ;;  %v6570_v53 = vpop.f32.mrb[100].mxu0  ;;  %v1451_v6 = vpack.c.bf16 %v1387_v33, %v1386_v42  ;;  %v1920_v42 = vld [vmem:[#allocation2 + $0x228] sm:$0xff]  ;;  %v1921_v33 = vld [vmem:[#allocation2 + $0x230] sm:$0xff] }
 0x225   :  { %3847 = vst [vmem:[#allocation2 + $0x18] sm:$0xff] %v3751_v40  ;;  %v3752_v57 = vmax.f32 %v3378_v14, 0.0  ;;  %v3382_v39 = vpop.f32.mrb[101].mxu0 }
 0x226   :  { %v2965_v0 = vpop.f32.mrb[8].mxu1  ;;  %v6571_v19 = vpop.f32.mrb[102].mxu0  ;;  %v1787_v48 = vmul.bf16 %v6920_v28, %v1451_v6  ;;  %6671 = vmatpush3.bf16.msra.mxu1 %v6958_v41 }
 0x227   :  { %3848 = vst [vmem:[#allocation2 + $0x20] sm:$0xff] %v3752_v57  ;;  %v2966_v62 = vadd.f32 %v8047_v37, %v2965_v0  ;;  %v2967_v22 = vpop.f32.mrb[9].mxu1  ;;  %v3385_v26 = vpop.f32.mrb[103].mxu0  ;;  %v1389_v0 = vld [vmem:[#allocation2 + $0x20f] sm:$0xff] }
 0x228   :  { %v2968_v44 = vpop.f32.mrb[10].mxu1  ;;  %v8658_v22 = vpack.c.bf16 %v7926_v27, %v7916_v45  ;;  %v1918_v45 = vld [vmem:[#allocation2 + $0x218] sm:$0xff] }
 0x229   :  { %v3383_v34 = vadd.f32 %v3382_v39, %v2966_v62  ;;  %v2969_v10 = vadd.f32 %v8047_v37, %v2968_v44  ;;  %v2970_v63 = vpop.f32.mrb[11].mxu1  ;;  %v6960_v62 = vld [vmem:[%s8645_s3 + $0x170] sm:$0xff]  }
 0x22a   :  { %6672 = vmatprep.subr.bf16.mxu1 %v6960_v62 }
 0x22b   :  { %v3753_v38 = vmax.f32 %v3383_v34, 0.0  ;;  %v3386_v31 = vadd.f32 %v3385_v26, %v2969_v10  ;;  %3180 = vmatmul.mubr.bf16.gmra.mrb[116].mxu1 %v1785_v20  ;;  %v1452_v34 = vpack.c.bf16 %v1389_v0, %v1388_v58  ;;  %v6928_v10 = vld [vmem:[#allocation9 + $0x100] sm:$0xff]  }
 0x22c   :  { %3187 = vmatprep.mubr.bf16.mxu1 %v1978_v43  ;;  %v8067_v49 = vpop.f32.mrb[104].mxu0  ;;  %v1786_v43 = vmul.bf16 %v6913_v24, %v1450_v17  ;;  %6673 = vmatpush3.bf16.msra.mxu1 %v6960_v62  ;;  %v6962_v17 = vld [vmem:[%s8645_s3 + $0x178] sm:$0xff]  }
 0x22d   :  { %3849 = vst [vmem:[#allocation2 + $0x28] sm:$0xff] %v3753_v38  ;;  %v3754_v55 = vmax.f32 %v3386_v31, 0.0  ;;  %v3398_v29 = vpop.f32.mrb[105].mxu0  ;;  %6674 = vmatprep.subr.bf16.mxu1 %v6962_v17 }
 0x22e   :  { %v3942_v4 = vld [vmem:[#allocation2 + $0x8] ss:$4 sm:$0xff]  ;;  %v3990_v51 = vld [vmem:[#allocation2 + $0x9] ss:$4 sm:$0xff]  ;;  %v2973_v8 = vpop.f32.mrb[12].mxu1  ;;  %v8069_v52 = vpop.f32.mrb[106].mxu0 }
 0x22f   :  { %3850 = vst [vmem:[#allocation2 + $0x30] sm:$0xff] %v3754_v55  ;;  %v4037_v60 = vmax.f32 %v3942_v4, %v3990_v51  ;;  %v4062_v23 = vld [vmem:[#allocation2 + $0xa] ss:$4 sm:$0xff]  ;;  %v2974_v21 = vadd.f32 %v8047_v37, %v2973_v8  ;;  %v2975_v50 = vpop.f32.mrb[13].mxu1  ;;  %v3401_v2 = vpop.f32.mrb[107].mxu0  ;;  %v1788_v8 = vmul.bf16 %v6928_v10, %v1452_v34 }
 0x230   :  { %v2976_v56 = vpop.f32.mrb[14].mxu1  ;;  %v4134_v35 = vld [vmem:[#allocation2 + $0xb] ss:$4 sm:$0xff]  ;;  %6675 = vmatpush3.bf16.msra.mxu1 %v6962_v17 }
 0x231   :  { %v4109_v36 = vmax.f32 %v4037_v60, %v4062_v23  ;;  %v3391_v46 = vadd.f32 %v6570_v53, %v2974_v21  ;;  %v2977_v59 = vadd.f32 %v8047_v37, %v2976_v56  ;;  %v2978_v3 = vpop.f32.mrb[15].mxu1  ;;  %v1981_v21 = vpack.c.bf16 %v7922_v16, %v1918_v45  ;;  %v1390_v50 = vld [vmem:[#allocation2 + $0x217] sm:$0xff] }
 0x232   :  { %v6935_v3 = vld [vmem:[#allocation9 + $0x108] sm:$0xff]  }
 0x233   :  { %3188 = vmatmul.mubr.bf16.gmra.mrb[120].mxu1 %v1786_v43  ;;  %v8073_v13 = vmax.f32 %v4109_v36, %v4134_v35  ;;  %v3755_v18 = vmax.f32 %v3391_v46, 0.0  ;;  %v3394_v5 = vadd.f32 %v6571_v19, %v2977_v59  ;;  %v1922_v10 = vld [vmem:[#allocation2 + $0x238] sm:$0xff] }
 0x234   :  { %3195 = vmatprep.mubr.bf16.mxu1 %v8657_v1  ;;  %v8081_v32 = vpop.f32.mrb[108].mxu0 }
 0x235   :  { %v8083_v11 = vpop.f32.mrb[109].mxu0  ;;  %4205 = vst [vmem:[#allocation2 + $0x8] sm:$0xff] %v8073_v13  ;;  %3851 = vst [vmem:[#allocation2 + $0x38] sm:$0xff] %v3755_v18  ;;  %v3756_v54 = vmax.f32 %v3394_v5, 0.0 }
 0x236   :  { %v2981_v61 = vpop.f32.mrb[16].mxu1  ;;  %v8086_v25 = vpop.f32.mrb[110].mxu0 }
 0x237   :  { %v2982_v40 = vadd.f32 %v8047_v37, %v2981_v61  ;;  %v2983_v14 = vpop.f32.mrb[17].mxu1  ;;  %v8089_v12 = vpop.f32.mrb[111].mxu0  ;;  %3852 = vst [vmem:[#allocation2 + $0x40] sm:$0xff] %v3756_v54  ;;  %v1982_v61 = vpack.c.bf16 %v1921_v33, %v1920_v42  ;;  %v1924_v42 = vld [vmem:[#allocation2 + $0x248] sm:$0xff]  ;;  %v1925_v33 = vld [vmem:[#allocation2 + $0x250] sm:$0xff] }
 0x238   :  { %v2984_v7 = vpop.f32.mrb[18].mxu1 }
 0x239   :  { %v3399_v53 = vadd.f32 %v3398_v29, %v2982_v40  ;;  %v2985_v57 = vadd.f32 %v8047_v37, %v2984_v7  ;;  %v2986_v39 = vpop.f32.mrb[19].mxu1 }
 0x23b   :  { %v3757_v19 = vmax.f32 %v3399_v53, 0.0  ;;  %v3402_v9 = vadd.f32 %v3401_v2, %v2985_v57  ;;  %3196 = vmatmul.mubr.bf16.gmra.mrb[124].mxu1 %v1787_v48  ;;  %v1391_v2 = vld [vmem:[#allocation2 + $0x21f] sm:$0xff]  ;;  %v1392_v53 = vld [vmem:[#allocation2 + $0x227] sm:$0xff]  ;;  %v1393_v57 = vld [vmem:[#allocation2 + $0x22f] sm:$0xff] }
 0x23c   :  { %3203 = vmatprep.mubr.bf16.mxu1 %v8658_v22  ;;  %v8101_v26 = vpop.f32.mrb[112].mxu0  ;;  %v6938_v48 = vld [vmem:[#allocation9 + $0x180] sm:$0xff]   ;;  %v1454_v62 = vpack.c.bf16 %v1393_v57, %v1392_v53  ;;  %v1396_v57 = vld [vmem:[#allocation2 + $0x247] sm:$0xff] }
 0x23d   :  { %3853 = vst [vmem:[#allocation2 + $0x48] sm:$0xff] %v3757_v19  ;;  %v3758_v44 = vmax.f32 %v3402_v9, 0.0  ;;  %v8103_v63 = vpop.f32.mrb[113].mxu0  ;;  %v4277_v19 = vld [vmem:[#allocation2 + $0x7] sm:$0xff] }
 0x23e   :  { %v2989_v20 = vpop.f32.mrb[20].mxu1  ;;  %v8105_v47 = vpop.f32.mrb[114].mxu0  ;;  %v3944_v30 = vld [vmem:[#allocation2 + $0x28] ss:$4 sm:$0xff]  ;;  %v3992_v38 = vld [vmem:[#allocation2 + $0x29] ss:$4 sm:$0xff] }
 0x23f   :  { %3854 = vst [vmem:[#allocation2 + $0x50] sm:$0xff] %v3758_v44  ;;  %v2990_v31 = vadd.f32 %v8047_v37, %v2989_v20  ;;  %v2991_v27 = vpop.f32.mrb[21].mxu1  ;;  %v4038_v55 = vmax.f32 %v3944_v30, %v3992_v38  ;;  %v8108_v29 = vpop.f32.mrb[115].mxu0  ;;  %v4064_v24 = vld [vmem:[#allocation2 + $0x2a] ss:$4 sm:$0xff] }
 0x240   :  { %v2992_v51 = vpop.f32.mrb[22].mxu1  ;;  %v4136_v43 = vld [vmem:[#allocation2 + $0x2b] ss:$4 sm:$0xff] }
 0x241   :  { %v3407_v4 = vadd.f32 %v8067_v49, %v2990_v31  ;;  %v2993_v60 = vadd.f32 %v8047_v37, %v2992_v51  ;;  %v2994_v23 = vpop.f32.mrb[23].mxu1  ;;  %v4110_v56 = vmax.f32 %v4038_v55, %v4064_v24  ;;  %v1453_v49 = vpack.c.bf16 %v1391_v2, %v1390_v50  ;;  %v1923_v31 = vld [vmem:[#allocation2 + $0x240] sm:$0xff]  ;;  %v1394_v2 = vld [vmem:[#allocation2 + $0x237] sm:$0xff] }
 0x242   :  { %v1983_v50 = vpack.c.bf16 %v1923_v31, %v1922_v10 }
 0x243   :  { %v3759_v36 = vmax.f32 %v3407_v4, 0.0  ;;  %3204 = vmatmul.mubr.bf16.gmra.mrb[128].mxu1 %v1788_v8  ;;  %v3410_v35 = vadd.f32 %v8069_v52, %v2993_v60  ;;  %v4182_v46 = vmax.f32 %v4110_v56, %v4136_v43  ;;  %v1789_v7 = vmul.bf16 %v6935_v3, %v1453_v49  ;;  %v1395_v56 = vld [vmem:[#allocation2 + $0x23f] sm:$0xff]  ;;  %v6940_v3 = vld [vmem:[#allocation9 + $0x118] sm:$0xff]  }
 0x244   :  { %3211 = vmatprep.mubr.bf16.mxu1 %v1981_v21  ;;  %v8117_v59 = vpop.f32.mrb[116].mxu0 }
 0x245   :  { %3855 = vst [vmem:[#allocation2 + $0x58] sm:$0xff] %v3759_v36  ;;  %v8119_v16 = vpop.f32.mrb[117].mxu0  ;;  %v3760_v15 = vmax.f32 %v3410_v35, 0.0  ;;  %4206 = vst [vmem:[#allocation2 + $0x10] sm:$0xff] %v4182_v46  ;;  %v4433_v5 = vpack.c.bf16 %v4182_v46, %v8073_v13 }
 0x246   :  { %v2997_v18 = vpop.f32.mrb[24].mxu1  ;;  %v8122_v1 = vpop.f32.mrb[118].mxu0 }
 0x247   :  { %v2998_v52 = vadd.f32 %v8047_v37, %v2997_v18  ;;  %v2999_v6 = vpop.f32.mrb[25].mxu1  ;;  %v8125_v28 = vpop.f32.mrb[119].mxu0  ;;  %3856 = vst [vmem:[#allocation2 + $0x60] sm:$0xff] %v3760_v15  ;;  %4858 = vmatprep.mubr.bf16.mxu0 %v4433_v5 }
 0x248   :  { %v3000_v54 = vpop.f32.mrb[26].mxu1 }
 0x249   :  { %v3415_v40 = vadd.f32 %v8083_v11, %v2998_v52  ;;  %v3001_v14 = vadd.f32 %v8047_v37, %v3000_v54  ;;  %v3002_v41 = vpop.f32.mrb[27].mxu1  ;;  %v6939_v11 = vld [vmem:[#allocation9 + $0x110] sm:$0xff]  }
 0x24a   :  { %v1790_v8 = vmul.bf16 %v6939_v11, %v1454_v62  ;;  %v6941_v62 = vld [vmem:[#allocation9 + $0x120] sm:$0xff]  }
 0x24b   :  { %v3761_v13 = vmax.f32 %v3415_v40, 0.0  ;;  %v3418_v39 = vadd.f32 %v8089_v12, %v3001_v14  ;;  %3212 = vmatmul.mubr.bf16.gmra.mrb[132].mxu1 %v1789_v7  ;;  %v1984_v40 = vpack.c.bf16 %v1925_v33, %v1924_v42  ;;  %v1929_v42 = vld [vmem:[#allocation2 + $0x270] sm:$0xff] }
 0x24c   :  { %3219 = vmatprep.mubr.bf16.mxu1 %v1982_v61  ;;  %v8130_v58 = vpop.f32.mrb[120].mxu0  ;;  %v4278_v9 = vld [vmem:[#allocation2 + $0xf] sm:$0xff] }
 0x24d   :  { %3857 = vst [vmem:[#allocation2 + $0x68] sm:$0xff] %v3761_v13  ;;  %v3762_v0 = vmax.f32 %v3418_v39, 0.0  ;;  %v8132_v22 = vpop.f32.mrb[121].mxu0  ;;  %v4301_v34 = vpack.c.bf16 %v4278_v9, %v4277_v19  ;;  %v1397_v13 = vld [vmem:[#allocation2 + $0x24f] sm:$0xff] }
 0x24e   :  { %v3005_v44 = vpop.f32.mrb[28].mxu1  ;;  %v8134_v20 = vpop.f32.mrb[122].mxu0  ;;  %v3946_v30 = vld [vmem:[#allocation2 + $0x48] ss:$4 sm:$0xff]  ;;  %v3994_v12 = vld [vmem:[#allocation2 + $0x49] ss:$4 sm:$0xff]  ;;  %v1456_v9 = vpack.c.bf16 %v1397_v13, %v1396_v57 }
 0x24f   :  { %3858 = vst [vmem:[#allocation2 + $0x70] sm:$0xff] %v3762_v0  ;;  %v3006_v38 = vadd.f32 %v8047_v37, %v3005_v44  ;;  %v4039_v45 = vmax.f32 %v3946_v30, %v3994_v12  ;;  %v3007_v27 = vpop.f32.mrb[29].mxu1  ;;  %v4385_v55 = vmul.bf16 %v6938_v48, %v4301_v34  ;;  %v8137_v17 = vpop.f32.mrb[123].mxu0  ;;  %v4066_v24 = vld [vmem:[#allocation2 + $0x4a] ss:$4 sm:$0xff] }
 0x250   :  { %v3008_v51 = vpop.f32.mrb[30].mxu1  ;;  %v4138_v43 = vld [vmem:[#allocation2 + $0x4b] ss:$4 sm:$0xff] }
 0x251   :  { %v3423_v4 = vadd.f32 %v8081_v32, %v3006_v38  ;;  %v4111_v60 = vmax.f32 %v4039_v45, %v4066_v24  ;;  %v3009_v23 = vadd.f32 %v8047_v37, %v3008_v51  ;;  %v3010_v21 = vpop.f32.mrb[31].mxu1  ;;  %4859 = vmatmul.mubr.bf16.vlgmr.msra.gmra.mrb[192].mxu0 %v4385_v55  ;;  %v1455_v32 = vpack.c.bf16 %v1395_v56, %v1394_v2  ;;  %v1926_v44 = vld [vmem:[#allocation2 + $0x258] sm:$0xff] }
 0x252   :  { %v1398_v21 = vld [vmem:[#allocation2 + $0x257] sm:$0xff] }
 0x253   :  { %v3763_v36 = vmax.f32 %v3423_v4, 0.0  ;;  %3220 = vmatmul.mubr.bf16.gmra.mrb[136].mxu1 %v1790_v8  ;;  %v8141_v35 = vmax.f32 %v4111_v60, %v4138_v43  ;;  %v3426_v46 = vadd.f32 %v8086_v25, %v3009_v23  ;;  %v1791_v53 = vmul.bf16 %v6940_v3, %v1455_v32  ;;  %v6942_v32 = vld [vmem:[#allocation9 + $0x128] sm:$0xff]   ;;  %v1928_v3 = vld [vmem:[#allocation2 + $0x268] sm:$0xff] }
 0x254   :  { %3227 = vmatprep.mubr.bf16.mxu1 %v1983_v50  ;;  %v8144_v49 = vpop.f32.mrb[124].mxu0  ;;  %v1792_v4 = vmul.bf16 %v6941_v62, %v1456_v9  ;;  %v1399_v50 = vld [vmem:[#allocation2 + $0x25f] sm:$0xff] }
 0x255   :  { %3859 = vst [vmem:[#allocation2 + $0x78] sm:$0xff] %v3763_v36  ;;  %v8146_v15 = vpop.f32.mrb[125].mxu0  ;;  %4207 = vst [vmem:[#allocation2 + $0x18] sm:$0xff] %v8141_v35  ;;  %v3764_v18 = vmax.f32 %v3426_v46, 0.0  ;;  %v6944_v9 = vld [vmem:[#allocation9 + $0x188] sm:$0xff]  }
 0x256   :  { %v3013_v5 = vpop.f32.mrb[32].mxu1  ;;  %v8149_v52 = vpop.f32.mrb[126].mxu0 }
 0x257   :  { %v3014_v6 = vadd.f32 %v8047_v37, %v3013_v5  ;;  %v3015_v54 = vpop.f32.mrb[33].mxu1  ;;  %v8152_v25 = vpop.f32.mrb[127].mxu0  ;;  %3860 = vst [vmem:[#allocation2 + $0x80] sm:$0xff] %v3764_v18 }
 0x258   :  { %v3016_v61 = vpop.f32.mrb[34].mxu1 }
 0x259   :  { %v3431_v14 = vadd.f32 %v8103_v63, %v3014_v6  ;;  %v3017_v41 = vadd.f32 %v8047_v37, %v3016_v61  ;;  %v3018_v7 = vpop.f32.mrb[35].mxu1 }
 0x25b   :  { %v3765_v39 = vmax.f32 %v3431_v14, 0.0  ;;  %v3434_v48 = vadd.f32 %v8108_v29, %v3017_v41  ;;  %3228 = vmatmul.mubr.bf16.gmra.mrb[140].mxu1 %v1791_v53  ;;  %v1927_v29 = vld [vmem:[#allocation2 + $0x260] sm:$0xff]  ;;  %v1986_v41 = vpack.c.bf16 %v1929_v42, %v1928_v3  ;;  %v1402_v3 = vld [vmem:[#allocation2 + $0x277] sm:$0xff] }
 0x25c   :  { %3235 = vmatprep.mubr.bf16.mxu1 %v1984_v40  ;;  %v8157_v0 = vpop.f32.mrb[128].mxu0  ;;  %v1985_v23 = vpack.c.bf16 %v1927_v29, %v1926_v44  ;;  %v4279_v44 = vld [vmem:[#allocation2 + $0x17] sm:$0xff]  ;;  %v1403_v42 = vld [vmem:[#allocation2 + $0x27f] sm:$0xff] }
 0x25d   :  { %3861 = vst [vmem:[#allocation2 + $0x88] sm:$0xff] %v3765_v39  ;;  %v3766_v19 = vmax.f32 %v3434_v48, 0.0  ;;  %v8159_v11 = vpop.f32.mrb[129].mxu0  ;;  %v1400_v39 = vld [vmem:[#allocation2 + $0x267] sm:$0xff]  ;;  %v1401_v48 = vld [vmem:[#allocation2 + $0x26f] sm:$0xff] }
 0x25e   :  { %v3021_v63 = vpop.f32.mrb[36].mxu1  ;;  %v8161_v34 = vpop.f32.mrb[130].mxu0  ;;  %v3948_v10 = vld [vmem:[#allocation2 + $0x68] ss:$4 sm:$0xff]  ;;  %v3996_v30 = vld [vmem:[#allocation2 + $0x69] ss:$4 sm:$0xff] }
 0x25f   :  { %3862 = vst [vmem:[#allocation2 + $0x90] sm:$0xff] %v3766_v19  ;;  %v3022_v12 = vadd.f32 %v8047_v37, %v3021_v63  ;;  %v4040_v38 = vmax.f32 %v3948_v10, %v3996_v30  ;;  %v3023_v31 = vpop.f32.mrb[37].mxu1  ;;  %v8164_v45 = vpop.f32.mrb[131].mxu0  ;;  %v4068_v27 = vld [vmem:[#allocation2 + $0x6a] ss:$4 sm:$0xff]  ;;  %v1458_v30 = vpack.c.bf16 %v1401_v48, %v1400_v39 }
 0x260   :  { %v3024_v24 = vpop.f32.mrb[38].mxu1  ;;  %v4140_v2 = vld [vmem:[#allocation2 + $0x6b] ss:$4 sm:$0xff] }
 0x261   :  { %v3439_v55 = vadd.f32 %v8101_v26, %v3022_v12  ;;  %v4112_v51 = vmax.f32 %v4040_v38, %v4068_v27  ;;  %v3025_v8 = vadd.f32 %v8047_v37, %v3024_v24  ;;  %v3026_v60 = vpop.f32.mrb[39].mxu1  ;;  %v1457_v26 = vpack.c.bf16 %v1399_v50, %v1398_v21  ;;  %v1930_v31 = vld [vmem:[#allocation2 + $0x278] sm:$0xff] }
 0x263   :  { %v3767_v56 = vmax.f32 %v3439_v55, 0.0  ;;  %3236 = vmatmul.mubr.bf16.gmra.mrb[144].mxu1 %v1792_v4  ;;  %v4184_v43 = vmax.f32 %v4112_v51, %v4140_v2  ;;  %v3442_v36 = vadd.f32 %v8105_v47, %v3025_v8  ;;  %v1793_v13 = vmul.bf16 %v6942_v32, %v1457_v26  ;;  %v1931_v4 = vld [vmem:[#allocation2 + $0x280] sm:$0xff] }
 0x264   :  { %3243 = vmatprep.mubr.bf16.mxu1 %v1985_v23  ;;  %v8169_v46 = vpop.f32.mrb[132].mxu0  ;;  %v1987_v32 = vpack.c.bf16 %v1931_v4, %v1930_v31  ;;  %v6947_v4 = vld [vmem:[#allocation9 + $0x140] sm:$0xff]  }
 0x265   :  { %3863 = vst [vmem:[#allocation2 + $0x98] sm:$0xff] %v3767_v56  ;;  %v8171_v33 = vpop.f32.mrb[133].mxu0  ;;  %4208 = vst [vmem:[#allocation2 + $0x20] sm:$0xff] %v4184_v43  ;;  %v3768_v18 = vmax.f32 %v3442_v36, 0.0  ;;  %v4434_v6 = vpack.c.bf16 %v4184_v43, %v8141_v35 }
 0x266   :  { %v3029_v5 = vpop.f32.mrb[40].mxu1  ;;  %v8174_v54 = vpop.f32.mrb[134].mxu0 }
 0x267   :  { %v3030_v61 = vadd.f32 %v8047_v37, %v3029_v5  ;;  %v3031_v47 = vpop.f32.mrb[41].mxu1  ;;  %v8177_v40 = vpop.f32.mrb[135].mxu0  ;;  %3864 = vst [vmem:[#allocation2 + $0xa0] sm:$0xff] %v3768_v18  ;;  %4866 = vmatprep.mubr.bf16.mxu0 %v4434_v6 }
 0x268   :  { %v3032_v14 = vpop.f32.mrb[42].mxu1 }
 0x269   :  { %v3447_v7 = vadd.f32 %v8119_v16, %v3030_v61  ;;  %v3033_v53 = vadd.f32 %v8047_v37, %v3032_v14  ;;  %v3034_v57 = vpop.f32.mrb[43].mxu1  ;;  %v6945_v16 = vld [vmem:[#allocation9 + $0x130] sm:$0xff]   ;;  %v6946_v14 = vld [vmem:[#allocation9 + $0x138] sm:$0xff]  }
 0x26a   :  { %v1794_v56 = vmul.bf16 %v6945_v16, %v1458_v30  ;;  %v1404_v16 = vld [vmem:[#allocation2 + $0x287] sm:$0xff] }
 0x26b   :  { %v3769_v35 = vmax.f32 %v3447_v7, 0.0  ;;  %v3450_v19 = vadd.f32 %v8125_v28, %v3033_v53  ;;  %3244 = vmatmul.mubr.bf16.gmra.mrb[148].mxu1 %v1793_v13  ;;  %v1933_v7 = vld [vmem:[#allocation2 + $0x290] sm:$0xff] }
 0x26c   :  { %3251 = vmatprep.mubr.bf16.mxu1 %v1986_v41  ;;  %v8182_v62 = vpop.f32.mrb[136].mxu0  ;;  %v4280_v10 = vld [vmem:[#allocation2 + $0x1f] sm:$0xff]  ;;  %v1932_v41 = vld [vmem:[#allocation2 + $0x288] sm:$0xff] }
 0x26d   :  { %3865 = vst [vmem:[#allocation2 + $0xa8] sm:$0xff] %v3769_v35  ;;  %v3770_v63 = vmax.f32 %v3450_v19, 0.0  ;;  %v8184_v12 = vpop.f32.mrb[137].mxu0  ;;  %v4302_v38 = vpack.c.bf16 %v4280_v10, %v4279_v44 }
 0x26e   :  { %v3037_v29 = vpop.f32.mrb[44].mxu1  ;;  %v8186_v27 = vpop.f32.mrb[138].mxu0  ;;  %v3950_v55 = vld [vmem:[#allocation2 + $0x88] ss:$4 sm:$0xff]  ;;  %v3998_v28 = vld [vmem:[#allocation2 + $0x89] ss:$4 sm:$0xff] }
 0x26f   :  { %3866 = vst [vmem:[#allocation2 + $0xb0] sm:$0xff] %v3770_v63  ;;  %v3038_v24 = vadd.f32 %v8047_v37, %v3037_v29  ;;  %v4041_v51 = vmax.f32 %v3950_v55, %v3998_v28  ;;  %v3039_v8 = vpop.f32.mrb[45].mxu1  ;;  %v4386_v60 = vmul.bf16 %v6944_v9, %v4302_v38  ;;  %v8189_v23 = vpop.f32.mrb[139].mxu0  ;;  %v4070_v21 = vld [vmem:[#allocation2 + $0x8a] ss:$4 sm:$0xff]  ;;  %v1988_v9 = vpack.c.bf16 %v1933_v7, %v1932_v41 }
 0x270   :  { %v3040_v2 = vpop.f32.mrb[46].mxu1  ;;  %v4142_v18 = vld [vmem:[#allocation2 + $0x8b] ss:$4 sm:$0xff] }
 0x271   :  { %v3455_v50 = vadd.f32 %v8117_v59, %v3038_v24  ;;  %v4113_v43 = vmax.f32 %v4041_v51, %v4070_v21  ;;  %v3041_v36 = vadd.f32 %v8047_v37, %v3040_v2  ;;  %v3042_v26 = vpop.f32.mrb[47].mxu1  ;;  %4867 = vmatmul.mubr.bf16.gmra.mrb[196].mxu0 %v4386_v60  ;;  %v1459_v59 = vpack.c.bf16 %v1403_v42, %v1402_v3  ;;  %v1405_v29 = vld [vmem:[#allocation2 + $0x28f] sm:$0xff]  ;;  %v1934_v8 = vld [vmem:[#allocation2 + $0x298] sm:$0xff] }
 0x272   :  { %v1460_v24 = vpack.c.bf16 %v1405_v29, %v1404_v16  ;;  %v1407_v41 = vld [vmem:[#allocation2 + $0x29f] sm:$0xff] }
 0x273   :  { %v3771_v5 = vmax.f32 %v3455_v50, 0.0  ;;  %3252 = vmatmul.mubr.bf16.gmra.mrb[152].mxu1 %v1794_v56  ;;  %v8193_v6 = vmax.f32 %v4113_v43, %v4142_v18  ;;  %v3458_v61 = vadd.f32 %v8122_v1, %v3041_v36  ;;  %v1795_v30 = vmul.bf16 %v6946_v14, %v1459_v59  ;;  %v1406_v14 = vld [vmem:[#allocation2 + $0x297] sm:$0xff] }
 0x274   :  { %3259 = vmatprep.mubr.bf16.mxu1 %v1987_v32  ;;  %v8196_v47 = vpop.f32.mrb[140].mxu0  ;;  %v1796_v42 = vmul.bf16 %v6947_v4, %v1460_v24 }
 0x275   :  { %3867 = vst [vmem:[#allocation2 + $0xb8] sm:$0xff] %v3771_v5  ;;  %v8198_v53 = vpop.f32.mrb[141].mxu0  ;;  %4209 = vst [vmem:[#allocation2 + $0x28] sm:$0xff] %v8193_v6  ;;  %v3772_v57 = vmax.f32 %v3458_v61, 0.0 }
 0x276   :  { %v3045_v13 = vpop.f32.mrb[48].mxu1  ;;  %v8201_v39 = vpop.f32.mrb[142].mxu0 }
 0x277   :  { %v3046_v48 = vadd.f32 %v8047_v37, %v3045_v13  ;;  %v3047_v35 = vpop.f32.mrb[49].mxu1  ;;  %v8204_v1 = vpop.f32.mrb[143].mxu0  ;;  %3868 = vst [vmem:[#allocation2 + $0xc0] sm:$0xff] %v3772_v57 }
 0x278   :  { %v3048_v19 = vpop.f32.mrb[50].mxu1 }
 0x279   :  { %v3463_v63 = vadd.f32 %v8132_v22, %v3046_v48  ;;  %v3049_v44 = vadd.f32 %v8047_v37, %v3048_v19  ;;  %v3050_v10 = vpop.f32.mrb[51].mxu1  ;;  %v6948_v19 = vld [vmem:[#allocation9 + $0x148] sm:$0xff]  }
 0x27b   :  { %v3773_v38 = vmax.f32 %v3463_v63, 0.0  ;;  %v3466_v31 = vadd.f32 %v8137_v17, %v3049_v44  ;;  %3260 = vmatmul.mubr.bf16.gmra.mrb[156].mxu1 %v1795_v30  ;;  %v1935_v17 = vld [vmem:[#allocation2 + $0x2a0] sm:$0xff]  ;;  %v1937_v63 = vld [vmem:[#allocation2 + $0x2b0] sm:$0xff] }
 0x27c   :  { %3267 = vmatprep.mubr.bf16.mxu1 %v1988_v9  ;;  %v8209_v55 = vpop.f32.mrb[144].mxu0  ;;  %v1989_v59 = vpack.c.bf16 %v1935_v17, %v1934_v8  ;;  %v1936_v9 = vld [vmem:[#allocation2 + $0x2a8] sm:$0xff] }
 0x27d   :  { %3869 = vst [vmem:[#allocation2 + $0xc8] sm:$0xff] %v3773_v38  ;;  %v3774_v28 = vmax.f32 %v3466_v31, 0.0  ;;  %v8211_v51 = vpop.f32.mrb[145].mxu0  ;;  %v1990_v24 = vpack.c.bf16 %v1937_v63, %v1936_v9 }
 0x27e   :  { %v3053_v22 = vpop.f32.mrb[52].mxu1  ;;  %v8213_v60 = vpop.f32.mrb[146].mxu0  ;;  %v3952_v21 = vld [vmem:[#allocation2 + $0xa8] ss:$4 sm:$0xff]  ;;  %v4000_v50 = vld [vmem:[#allocation2 + $0xa9] ss:$4 sm:$0xff] }
 0x27f   :  { %3870 = vst [vmem:[#allocation2 + $0xd0] sm:$0xff] %v3774_v28  ;;  %v3054_v2 = vadd.f32 %v8047_v37, %v3053_v22  ;;  %v4042_v56 = vmax.f32 %v3952_v21, %v4000_v50  ;;  %v3055_v43 = vpop.f32.mrb[53].mxu1  ;;  %v8216_v36 = vpop.f32.mrb[147].mxu0  ;;  %v4072_v26 = vld [vmem:[#allocation2 + $0xaa] ss:$4 sm:$0xff] }
 0x280   :  { %v3056_v3 = vpop.f32.mrb[54].mxu1  ;;  %v4144_v7 = vld [vmem:[#allocation2 + $0xab] ss:$4 sm:$0xff] }
 0x281   :  { %v3471_v32 = vadd.f32 %v8130_v58, %v3054_v2  ;;  %v4114_v18 = vmax.f32 %v4042_v56, %v4072_v26  ;;  %v3057_v5 = vadd.f32 %v8047_v37, %v3056_v3  ;;  %v3058_v61 = vpop.f32.mrb[55].mxu1  ;;  %v1461_v58 = vpack.c.bf16 %v1407_v41, %v1406_v14  ;;  %v1408_v50 = vld [vmem:[#allocation2 + $0x2a7] sm:$0xff]  ;;  %v1409_v2 = vld [vmem:[#allocation2 + $0x2af] sm:$0xff] }
 0x282   :  { %v6949_v56 = vld [vmem:[#allocation9 + $0x190] sm:$0xff]  }
 0x283   :  { %v3775_v57 = vmax.f32 %v3471_v32, 0.0  ;;  %3268 = vmatmul.mubr.bf16.gmra.mrb[160].mxu1 %v1796_v42  ;;  %v4186_v13 = vmax.f32 %v4114_v18, %v4144_v7  ;;  %v3474_v48 = vadd.f32 %v8134_v20, %v3057_v5  ;;  %v1797_v21 = vmul.bf16 %v6948_v19, %v1461_v58  ;;  %v4281_v32 = vld [vmem:[#allocation2 + $0x27] sm:$0xff] }
 0x284   :  { %3275 = vmatprep.mubr.bf16.mxu1 %v1989_v59  ;;  %v8221_v35 = vpop.f32.mrb[148].mxu0  ;;  %v1462_v42 = vpack.c.bf16 %v1409_v2, %v1408_v50  ;;  %v1938_v59 = vld [vmem:[#allocation2 + $0x2b8] sm:$0xff] }
 0x285   :  { %3871 = vst [vmem:[#allocation2 + $0xd8] sm:$0xff] %v3775_v57  ;;  %v8223_v44 = vpop.f32.mrb[149].mxu0  ;;  %4210 = vst [vmem:[#allocation2 + $0x30] sm:$0xff] %v4186_v13  ;;  %v3776_v10 = vmax.f32 %v3474_v48, 0.0  ;;  %v4435_v16 = vpack.c.bf16 %v4186_v13, %v8193_v6  ;;  %v1939_v57 = vld [vmem:[#allocation2 + $0x2c0] sm:$0xff] }
 0x286   :  { %v3061_v30 = vpop.f32.mrb[56].mxu1  ;;  %v8226_v29 = vpop.f32.mrb[150].mxu0 }
 0x287   :  { %v3062_v38 = vadd.f32 %v8047_v37, %v3061_v30  ;;  %v3063_v20 = vpop.f32.mrb[57].mxu1  ;;  %v8229_v31 = vpop.f32.mrb[151].mxu0  ;;  %3872 = vst [vmem:[#allocation2 + $0xe0] sm:$0xff] %v3776_v10  ;;  %4874 = vmatprep.mubr.bf16.mxu0 %v4435_v16 }
 0x288   :  { %v3064_v28 = vpop.f32.mrb[58].mxu1 }
 0x289   :  { %v3479_v4 = vadd.f32 %v8146_v15, %v3062_v38  ;;  %v3065_v22 = vadd.f32 %v8047_v37, %v3064_v28  ;;  %v3066_v8 = vpop.f32.mrb[59].mxu1  ;;  %v6950_v15 = vld [vmem:[#allocation9 + $0x150] sm:$0xff]   ;;  %v1991_v28 = vpack.c.bf16 %v1939_v57, %v1938_v59 }
 0x28a   :  { %v1798_v30 = vmul.bf16 %v6950_v15, %v1462_v42 }
 0x28b   :  { %v3777_v6 = vmax.f32 %v3479_v4, 0.0  ;;  %v3482_v17 = vadd.f32 %v8152_v25, %v3065_v22  ;;  %3276 = vmatmul.mubr.bf16.gmra.mrb[164].mxu1 %v1797_v21  ;;  %v1411_v4 = vld [vmem:[#allocation2 + $0x2bf] sm:$0xff] }
 0x28c   :  { %3283 = vmatprep.mubr.bf16.mxu1 %v1990_v24  ;;  %v8234_v43 = vpop.f32.mrb[152].mxu0  ;;  %v4282_v3 = vld [vmem:[#allocation2 + $0x2f] sm:$0xff]  ;;  %v1410_v24 = vld [vmem:[#allocation2 + $0x2b7] sm:$0xff] }
 0x28d   :  { %3873 = vst [vmem:[#allocation2 + $0xe8] sm:$0xff] %v3777_v6  ;;  %v3778_v26 = vmax.f32 %v3482_v17, 0.0  ;;  %v8236_v18 = vpop.f32.mrb[153].mxu0  ;;  %v4303_v61 = vpack.c.bf16 %v4282_v3, %v4281_v32  ;;  %v6951_v6 = vld [vmem:[#allocation9 + $0x158] sm:$0xff]  }
 0x28e   :  { %v3069_v5 = vpop.f32.mrb[60].mxu1  ;;  %v8238_v14 = vpop.f32.mrb[154].mxu0  ;;  %v3954_v41 = vld [vmem:[#allocation2 + $0xc8] ss:$4 sm:$0xff]  ;;  %v4002_v25 = vld [vmem:[#allocation2 + $0xc9] ss:$4 sm:$0xff] }
 0x28f   :  { %3874 = vst [vmem:[#allocation2 + $0xf0] sm:$0xff] %v3778_v26  ;;  %v3070_v7 = vadd.f32 %v8047_v37, %v3069_v5  ;;  %v4043_v13 = vmax.f32 %v3954_v41, %v4002_v25  ;;  %v3071_v48 = vpop.f32.mrb[61].mxu1  ;;  %v4387_v58 = vmul.bf16 %v6949_v56, %v4303_v61  ;;  %v8241_v19 = vpop.f32.mrb[155].mxu0  ;;  %v4074_v9 = vld [vmem:[#allocation2 + $0xca] ss:$4 sm:$0xff] }
 0x290   :  { %v3072_v10 = vpop.f32.mrb[62].mxu1  ;;  %v4146_v22 = vld [vmem:[#allocation2 + $0xcb] ss:$4 sm:$0xff] }
 0x291   :  { %v3487_v63 = vadd.f32 %v8144_v49, %v3070_v7  ;;  %v4115_v16 = vmax.f32 %v4043_v13, %v4074_v9  ;;  %v3073_v38 = vadd.f32 %v8047_v37, %v3072_v10  ;;  %v3074_v20 = vpop.f32.mrb[63].mxu1  ;;  %4875 = vmatmul.mubr.bf16.gmra.mrb[200].mxu0 %v4387_v58  ;;  %v1463_v49 = vpack.c.bf16 %v1411_v4, %v1410_v24  ;;  %v1940_v17 = vld [vmem:[#allocation2 + $0x2c8] sm:$0xff]  ;;  %v1941_v56 = vld [vmem:[#allocation2 + $0x2d0] sm:$0xff] }
 0x292   :  { %v1992_v59 = vpack.c.bf16 %v1941_v56, %v1940_v17  ;;  %v1412_v13 = vld [vmem:[#allocation2 + $0x2c7] sm:$0xff]  ;;  %v1413_v48 = vld [vmem:[#allocation2 + $0x2cf] sm:$0xff]  ;;  %v1942_v20 = vld [vmem:[#allocation2 + $0x2d8] sm:$0xff] }
 0x293   :  { %v3779_v8 = vmax.f32 %v3487_v63, 0.0  ;;  %3284 = vmatmul.mubr.bf16.gmra.mrb[168].mxu1 %v1798_v30  ;;  %v8245_v21 = vmax.f32 %v4115_v16, %v4146_v22  ;;  %v3490_v50 = vadd.f32 %v8149_v52, %v3073_v38  ;;  %v1799_v57 = vmul.bf16 %v6951_v6, %v1463_v49  ;;  %v6953_v16 = vld [vmem:[#allocation9 + $0x160] sm:$0xff]   ;;  %v1943_v22 = vld [vmem:[#allocation2 + $0x2e0] sm:$0xff] }
 0x294   :  { %3291 = vmatprep.mubr.bf16.mxu1 %v1991_v28  ;;  %v8248_v2 = vpop.f32.mrb[156].mxu0  ;;  %v1464_v30 = vpack.c.bf16 %v1413_v48, %v1412_v13 }
 0x295   :  { %3875 = vst [vmem:[#allocation2 + $0xf8] sm:$0xff] %v3779_v8  ;;  %v8250_v26 = vpop.f32.mrb[157].mxu0  ;;  %4211 = vst [vmem:[#allocation2 + $0x38] sm:$0xff] %v8245_v21  ;;  %v3780_v32 = vmax.f32 %v3490_v50, 0.0 }
 0x296   :  { %v3077_v3 = vpop.f32.mrb[64].mxu1  ;;  %v8253_v42 = vpop.f32.mrb[158].mxu0 }
 0x297   :  { %v3078_v15 = vadd.f32 %v8047_v37, %v3077_v3  ;;  %v3079_v5 = vpop.f32.mrb[65].mxu1  ;;  %v8256_v52 = vpop.f32.mrb[159].mxu0  ;;  %3876 = vst [vmem:[#allocation2 + $0x100] sm:$0xff] %v3780_v32  ;;  %v1800_v32 = vmul.bf16 %v6953_v16, %v1464_v30 }
 0x298   :  { %v3080_v61 = vpop.f32.mrb[66].mxu1 }
 0x299   :  { %v3495_v41 = vadd.f32 %v8159_v11, %v3078_v15  ;;  %v3081_v25 = vadd.f32 %v8047_v37, %v3080_v61  ;;  %v3082_v7 = vpop.f32.mrb[67].mxu1  ;;  %v1993_v61 = vpack.c.bf16 %v1943_v22, %v1942_v20 }
 0x29b   :  { %v3781_v58 = vmax.f32 %v3495_v41, 0.0  ;;  %v3498_v9 = vadd.f32 %v8164_v45, %v3081_v25  ;;  %3292 = vmatmul.mubr.bf16.gmra.mrb[172].mxu1 %v1799_v57  ;;  %v8270_v45 = vld [vmem:[%s8646_s4] ss:$0 sm:$0xff] }
 0x29c   :  { %3299 = vmatprep.mubr.bf16.mxu1 %v1992_v59  ;;  %v8261_v63 = vpop.f32.mrb[160].mxu0  ;;  %v1414_v59 = vld [vmem:[#allocation2 + $0x2d7] sm:$0xff]  ;;  %v1415_v41 = vld [vmem:[#allocation2 + $0x2df] sm:$0xff] }
 0x29d   :  { %3877 = vst [vmem:[#allocation2 + $0x108] sm:$0xff] %v3781_v58  ;;  %v3782_v10 = vmax.f32 %v3498_v9, 0.0  ;;  %v8263_v38 = vpop.f32.mrb[161].mxu0  ;;  %v6954_v58 = vld [vmem:[#allocation9 + $0x168] sm:$0xff]   ;;  %v1944_v9 = vld [vmem:[#allocation2 + $0x2e8] sm:$0xff] }
 0x29e   :  { %v3085_v11 = vpop.f32.mrb[68].mxu1  ;;  %v8265_v37 = vpop.f32.mrb[162].mxu0  ;;  %v3956_v28 = vld [vmem:[#allocation2 + $0xe8] ss:$4 sm:$0xff]  ;;  %v4004_v24 = vld [vmem:[#allocation2 + $0xe9] ss:$4 sm:$0xff] }
 0x29f   :  { %3878 = vst [vmem:[#allocation2 + $0x110] sm:$0xff] %v3782_v10  ;;  %v3086_v4 = vadd.f32 %v8270_v45, %v3085_v11  ;;  %v4044_v8 = vmax.f32 %v3956_v28, %v4004_v24  ;;  %v3087_v50 = vpop.f32.mrb[69].mxu1  ;;  %v8273_v49 = vpop.f32.mrb[163].mxu0  ;;  %v4076_v6 = vld [vmem:[#allocation2 + $0xea] ss:$4 sm:$0xff] }
 0x2a0   :  { %v3088_v56 = vpop.f32.mrb[70].mxu1  ;;  %v4148_v25 = vld [vmem:[#allocation2 + $0xeb] ss:$4 sm:$0xff] }
 0x2a1   :  { %v3503_v17 = vadd.f32 %v8157_v0, %v3086_v4  ;;  %v4116_v3 = vmax.f32 %v4044_v8, %v4076_v6  ;;  %v3089_v15 = vadd.f32 %v8270_v45, %v3088_v56  ;;  %v3090_v5 = vpop.f32.mrb[71].mxu1  ;;  %v1465_v0 = vpack.c.bf16 %v1415_v41, %v1414_v59  ;;  %v1945_v10 = vld [vmem:[#allocation2 + $0x2f0] sm:$0xff] }
 0x2a2   :  { %v1994_v8 = vpack.c.bf16 %v1945_v10, %v1944_v9  ;;  %v6955_v5 = vld [vmem:[#allocation9 + $0x198] sm:$0xff]   ;;  %v4283_v41 = vld [vmem:[#allocation2 + $0x37] sm:$0xff] }
 0x2a3   :  { %v3783_v7 = vmax.f32 %v3503_v17, 0.0  ;;  %3300 = vmatmul.mubr.bf16.gmra.mrb[176].mxu1 %v1800_v32  ;;  %v4188_v57 = vmax.f32 %v4116_v3, %v4148_v25  ;;  %v3506_v13 = vadd.f32 %v8161_v34, %v3089_v15  ;;  %v1801_v56 = vmul.bf16 %v6954_v58, %v1465_v0  ;;  %v1416_v32 = vld [vmem:[#allocation2 + $0x2e7] sm:$0xff]  ;;  %v1417_v3 = vld [vmem:[#allocation2 + $0x2ef] sm:$0xff]  ;;  %v1946_v58 = vld [vmem:[#allocation2 + $0x2f8] sm:$0xff] }
 0x2a4   :  { %3307 = vmatprep.mubr.bf16.mxu1 %v1993_v61  ;;  %v8278_v48 = vpop.f32.mrb[164].mxu0 }
 0x2a5   :  { %3879 = vst [vmem:[#allocation2 + $0x118] sm:$0xff] %v3783_v7  ;;  %v8280_v30 = vpop.f32.mrb[165].mxu0  ;;  %4212 = vst [vmem:[#allocation2 + $0x40] sm:$0xff] %v4188_v57  ;;  %v3784_v16 = vmax.f32 %v3506_v13, 0.0  ;;  %v4436_v20 = vpack.c.bf16 %v4188_v57, %v8245_v21  ;;  %v1466_v7 = vpack.c.bf16 %v1417_v3, %v1416_v32 }
 0x2a6   :  { %v3093_v11 = vpop.f32.mrb[72].mxu1  ;;  %v8283_v28 = vpop.f32.mrb[166].mxu0 }
 0x2a7   :  { %v3094_v24 = vadd.f32 %v8270_v45, %v3093_v11  ;;  %v3095_v34 = vpop.f32.mrb[73].mxu1  ;;  %v8286_v4 = vpop.f32.mrb[167].mxu0  ;;  %3880 = vst [vmem:[#allocation2 + $0x120] sm:$0xff] %v3784_v16  ;;  %4882 = vmatprep.mubr.bf16.mxu0 %v4436_v20  ;;  %v1947_v11 = vld [vmem:[#allocation2 + $0x300] sm:$0xff] }
 0x2a8   :  { %v3096_v22 = vpop.f32.mrb[74].mxu1 }
 0x2a9   :  { %v3511_v50 = vadd.f32 %v8171_v33, %v3094_v24  ;;  %v3097_v6 = vadd.f32 %v8270_v45, %v3096_v22  ;;  %v3098_v17 = vpop.f32.mrb[75].mxu1  ;;  %v6956_v33 = vld [vmem:[#allocation9 + $0x170] sm:$0xff]  }
 0x2aa   :  { %v1802_v17 = vmul.bf16 %v6956_v33, %v1466_v7  ;;  %v6959_v33 = vld [vmem:[#allocation9 + $0x178] sm:$0xff]  }
 0x2ab   :  { %v3785_v21 = vmax.f32 %v3511_v50, 0.0  ;;  %v3514_v15 = vadd.f32 %v8177_v40, %v3097_v6  ;;  %3308 = vmatmul.mubr.bf16.gmra.mrb[180].mxu1 %v1801_v56 }
 0x2ac   :  { %3315 = vmatprep.mubr.bf16.mxu1 %v1994_v8  ;;  %v8291_v61 = vpop.f32.mrb[168].mxu0  ;;  %v4284_v25 = vld [vmem:[#allocation2 + $0x3f] sm:$0xff] }
 0x2ad   :  { %3881 = vst [vmem:[#allocation2 + $0x128] sm:$0xff] %v3785_v21  ;;  %v3786_v59 = vmax.f32 %v3514_v15, 0.0  ;;  %v8293_v57 = vpop.f32.mrb[169].mxu0  ;;  %v4304_v0 = vpack.c.bf16 %v4284_v25, %v4283_v41  ;;  %v1995_v21 = vpack.c.bf16 %v1947_v11, %v1946_v58  ;;  %v1418_v15 = vld [vmem:[#allocation2 + $0x2f7] sm:$0xff] }
 0x2ae   :  { %v3101_v13 = vpop.f32.mrb[76].mxu1  ;;  %v8295_v9 = vpop.f32.mrb[170].mxu0  ;;  %v3958_v10 = vld [vmem:[#allocation2 + $0x108] ss:$4 sm:$0xff]  ;;  %v4006_v40 = vld [vmem:[#allocation2 + $0x109] ss:$4 sm:$0xff] }
 0x2af   :  { %3882 = vst [vmem:[#allocation2 + $0x130] sm:$0xff] %v3786_v59  ;;  %v3102_v16 = vadd.f32 %v8270_v45, %v3101_v13  ;;  %v4045_v20 = vmax.f32 %v3958_v10, %v4006_v40  ;;  %v3103_v24 = vpop.f32.mrb[77].mxu1  ;;  %v4388_v34 = vmul.bf16 %v6955_v5, %v4304_v0  ;;  %v8298_v22 = vpop.f32.mrb[171].mxu0  ;;  %v4078_v8 = vld [vmem:[#allocation2 + $0x10a] ss:$4 sm:$0xff] }
 0x2b0   :  { %v3104_v6 = vpop.f32.mrb[78].mxu1  ;;  %v1419_v59 = vld [vmem:[#allocation2 + $0x2ff] sm:$0xff]  ;;  %v4458_v13 = vld [vmem:[#allocation2 + $0x11] sm:$0xff]  ;;  %v4457_v10 = vld [vmem:[#allocation2 + $0x9] sm:$0xff] }
 0x2b1   :  { %v3519_v50 = vadd.f32 %v8169_v46, %v3102_v16  ;;  %v4117_v56 = vmax.f32 %v4045_v20, %v4078_v8  ;;  %v3105_v32 = vadd.f32 %v8270_v45, %v3104_v6  ;;  %v3106_v3 = vpop.f32.mrb[79].mxu1  ;;  %4883 = vmatmul.mubr.bf16.gmra.mrb[204].mxu0 %v4388_v34  ;;  %v4150_v41 = vld [vmem:[#allocation2 + $0x10b] ss:$4 sm:$0xff]  ;;  %v1467_v7 = vpack.c.bf16 %v1419_v59, %v1418_v15 }
 0x2b2   :  { %v4481_v11 = vpack.c.bf16 %v4458_v13, %v4457_v10  ;;  %v6961_v20 = vld [vmem:[#allocation10 + $0x180] sm:$0xff]  }
 0x2b3   :  { %v3787_v25 = vmax.f32 %v3519_v50, 0.0  ;;  %3316 = vmatmul.mubr.bf16.gmra.mrb[184].mxu1 %v1802_v17  ;;  %v8302_v5 = vmax.f32 %v4117_v56, %v4150_v41  ;;  %v3522_v0 = vadd.f32 %v8174_v54, %v3105_v32  ;;  %v1803_v32 = vmul.bf16 %v6959_v33, %v1467_v7  ;;  %v4462_v41 = vld [vmem:[#allocation2 + $0x31] sm:$0xff]  ;;  %v6964_v33 = vld [vmem:[#allocation10 + $0x190] sm:$0xff]  }
 0x2b4   :  { %3323 = vmatprep.mubr.bf16.mxu1 %v1995_v21  ;;  %v8305_v46 = vpop.f32.mrb[172].mxu0  ;;  %v4565_v3 = vmul.bf16 %v6961_v20, %v4481_v11  ;;  %v4460_v21 = vld [vmem:[#allocation2 + $0x21] sm:$0xff] }
 0x2b5   :  { %3883 = vst [vmem:[#allocation2 + $0x138] sm:$0xff] %v3787_v25  ;;  %v8307_v40 = vpop.f32.mrb[173].mxu0  ;;  %4213 = vst [vmem:[#allocation2 + $0x48] sm:$0xff] %v8302_v5  ;;  %v3788_v58 = vmax.f32 %v3522_v0, 0.0  ;;  %v4459_v25 = vld [vmem:[#allocation2 + $0x19] sm:$0xff] }
 0x2b6   :  { %v3109_v16 = vpop.f32.mrb[80].mxu1  ;;  %v8310_v24 = vpop.f32.mrb[174].mxu0  ;;  %v4482_v10 = vpack.c.bf16 %v4460_v21, %v4459_v25 }
 0x2b7   :  { %v3110_v34 = vadd.f32 %v8270_v45, %v3109_v16  ;;  %v3111_v54 = vpop.f32.mrb[81].mxu1  ;;  %v8313_v8 = vpop.f32.mrb[175].mxu0  ;;  %3884 = vst [vmem:[#allocation2 + $0x140] sm:$0xff] %v3788_v58  ;;  %v6963_v58 = vld [vmem:[#allocation10 + $0x188] sm:$0xff]  }
 0x2b8   :  { %v3112_v50 = vpop.f32.mrb[82].mxu1  ;;  %v4566_v21 = vmul.bf16 %v6963_v58, %v4482_v10 }
 0x2b9   :  { %v3527_v6 = vadd.f32 %v8184_v12, %v3110_v34  ;;  %v3113_v17 = vadd.f32 %v8270_v45, %v3112_v50  ;;  %v3114_v56 = vpop.f32.mrb[83].mxu1  ;;  %v4461_v12 = vld [vmem:[#allocation2 + $0x29] sm:$0xff] }
 0x2ba   :  { %v4483_v7 = vpack.c.bf16 %v4462_v41, %v4461_v12 }
 0x2bb   :  { %v3789_v15 = vmax.f32 %v3527_v6, 0.0  ;;  %v3530_v59 = vadd.f32 %v8189_v23, %v3113_v17  ;;  %3324 = vmatmul.mubr.bf16.gmra.mrb[188].mxu1 %v1803_v32 }
 0x2bc   :  { %6676 = vmatprep.mubr.bf16.mxu1 %v4565_v3  ;;  %v8318_v13 = vpop.f32.mrb[176].mxu0  ;;  %v4567_v25 = vmul.bf16 %v6964_v33, %v4483_v7  ;;  %v4464_v12 = vld [vmem:[#allocation2 + $0x41] sm:$0xff] }
 0x2bd   :  { %8659 = vst [vmem:[#allocation17_spill] sm:$0xff] %v8318_v13  ;;  %3885 = vst [vmem:[#allocation2 + $0x148] sm:$0xff] %v3789_v15  ;;  %v3790_v0 = vmax.f32 %v3530_v59, 0.0  ;;  %v8320_v16 = vpop.f32.mrb[177].mxu0 }
 0x2be   :  { %v3117_v34 = vpop.f32.mrb[84].mxu1  ;;  %v8322_v11 = vpop.f32.mrb[178].mxu0  ;;  %v3960_v20 = vld [vmem:[#allocation2 + $0x128] ss:$4 sm:$0xff]  ;;  %v4008_v23 = vld [vmem:[#allocation2 + $0x129] ss:$4 sm:$0xff] }
 0x2bf   :  { %8660 = vst [vmem:[#allocation18_spill] sm:$0xff] %v8322_v11  ;;  %3886 = vst [vmem:[#allocation2 + $0x150] sm:$0xff] %v3790_v0  ;;  %v3118_v54 = vadd.f32 %v8270_v45, %v3117_v34  ;;  %v4046_v50 = vmax.f32 %v3960_v20, %v4008_v23  ;;  %v3119_v6 = vpop.f32.mrb[85].mxu1  ;;  %v8325_v17 = vpop.f32.mrb[179].mxu0  ;;  %v4080_v56 = vld [vmem:[#allocation2 + $0x12a] ss:$4 sm:$0xff] }
 0x2c0   :  { %v3120_v3 = vpop.f32.mrb[86].mxu1  ;;  %v4152_v11 = vld [vmem:[#allocation2 + $0x12b] ss:$4 sm:$0xff] }
 0x2c1   :  { %v3535_v32 = vadd.f32 %v8182_v62, %v3118_v54  ;;  %v4118_v15 = vmax.f32 %v4046_v50, %v4080_v56  ;;  %v3121_v59 = vadd.f32 %v8270_v45, %v3120_v3  ;;  %v3122_v41 = vpop.f32.mrb[87].mxu1  ;;  %v4463_v20 = vld [vmem:[#allocation2 + $0x39] sm:$0xff]  ;;  %v6965_v54 = vld [vmem:[#allocation10 + $0x198] sm:$0xff]  }
 0x2c2   :  { %v4484_v62 = vpack.c.bf16 %v4464_v12, %v4463_v20  ;;  %v4285_v12 = vld [vmem:[#allocation2 + $0x47] sm:$0xff] }
 0x2c3   :  { %v3791_v13 = vmax.f32 %v3535_v32, 0.0  ;;  %6677 = vmatmul.mubr.bf16.vlgmr.msra.gmra.mrb[192].mxu1 %v4566_v21  ;;  %v4190_v0 = vmax.f32 %v4118_v15, %v4152_v11  ;;  %v3538_v34 = vadd.f32 %v8186_v27, %v3121_v59 }
 0x2c4   :  { %6680 = vmatprep.mubr.bf16.mxu1 %v4567_v25  ;;  %v8330_v23 = vpop.f32.mrb[180].mxu0  ;;  %v4568_v21 = vmul.bf16 %v6965_v54, %v4484_v62 }
 0x2c5   :  { %3887 = vst [vmem:[#allocation2 + $0x158] sm:$0xff] %v3791_v13  ;;  %v8332_v10 = vpop.f32.mrb[181].mxu0  ;;  %4214 = vst [vmem:[#allocation2 + $0x50] sm:$0xff] %v4190_v0  ;;  %v3792_v58 = vmax.f32 %v3538_v34, 0.0  ;;  %v4437_v7 = vpack.c.bf16 %v4190_v0, %v8302_v5  ;;  %v6966_v5 = vld [vmem:[#allocation9 + $0x1a0] sm:$0xff]  }
 0x2c6   :  { %v3125_v50 = vpop.f32.mrb[88].mxu1  ;;  %v8335_v33 = vpop.f32.mrb[182].mxu0 }
 0x2c7   :  { %v3126_v11 = vadd.f32 %v8270_v45, %v3125_v50  ;;  %v3127_v6 = vpop.f32.mrb[89].mxu1  ;;  %v8338_v27 = vpop.f32.mrb[183].mxu0  ;;  %3888 = vst [vmem:[#allocation2 + $0x160] sm:$0xff] %v3792_v58  ;;  %4890 = vmatprep.mubr.bf16.mxu0 %v4437_v7 }
 0x2c8   :  { %v3128_v56 = vpop.f32.mrb[90].mxu1 }
 0x2c9   :  { %v3543_v13 = vadd.f32 %v8198_v53, %v3126_v11  ;;  %v3129_v32 = vadd.f32 %v8270_v45, %v3128_v56  ;;  %v3130_v3 = vpop.f32.mrb[91].mxu1 }
 0x2cb   :  { %v3793_v15 = vmax.f32 %v3543_v13, 0.0  ;;  %v3546_v59 = vadd.f32 %v8204_v1, %v3129_v32  ;;  %6681 = vmatmul.mubr.bf16.gmra.mrb[196].mxu1 %v4568_v21 }
 0x2cc   :  { %v8343_v41 = vpop.f32.mrb[184].mxu0  ;;  %v4286_v0 = vld [vmem:[#allocation2 + $0x4f] sm:$0xff] }
 0x2cd   :  { %3889 = vst [vmem:[#allocation2 + $0x168] sm:$0xff] %v3793_v15  ;;  %v3794_v25 = vmax.f32 %v3546_v59, 0.0  ;;  %v8345_v34 = vpop.f32.mrb[185].mxu0  ;;  %v4305_v58 = vpack.c.bf16 %v4286_v0, %v4285_v12 }
 0x2ce   :  { %v3133_v20 = vpop.f32.mrb[92].mxu1  ;;  %v8347_v53 = vpop.f32.mrb[186].mxu0  ;;  %v3962_v50 = vld [vmem:[#allocation2 + $0x148] ss:$4 sm:$0xff]  ;;  %v4010_v7 = vld [vmem:[#allocation2 + $0x149] ss:$4 sm:$0xff] }
 0x2cf   :  { %3890 = vst [vmem:[#allocation2 + $0x170] sm:$0xff] %v3794_v25  ;;  %v3134_v62 = vadd.f32 %v8270_v45, %v3133_v20  ;;  %v4047_v1 = vmax.f32 %v3962_v50, %v4010_v7  ;;  %v3135_v54 = vpop.f32.mrb[93].mxu1  ;;  %v4389_v11 = vmul.bf16 %v6966_v5, %v4305_v58  ;;  %v8350_v6 = vpop.f32.mrb[187].mxu0  ;;  %v4082_v56 = vld [vmem:[#allocation2 + $0x14a] ss:$4 sm:$0xff] }
 0x2d0   :  { %v3136_v32 = vpop.f32.mrb[94].mxu1  ;;  %v4154_v59 = vld [vmem:[#allocation2 + $0x14b] ss:$4 sm:$0xff] }
 0x2d1   :  { %v3551_v13 = vadd.f32 %v8196_v47, %v3134_v62  ;;  %v4119_v3 = vmax.f32 %v4047_v1, %v4082_v56  ;;  %v3137_v21 = vadd.f32 %v8270_v45, %v3136_v32  ;;  %v3138_v15 = vpop.f32.mrb[95].mxu1  ;;  %4891 = vmatmul.mubr.bf16.gmra.mrb[208].mxu0 %v4389_v11 }
 0x2d2   :  { %v4465_v15 = vld [vmem:[#allocation2 + $0x49] sm:$0xff] }
 0x2d3   :  { %v3795_v12 = vmax.f32 %v3551_v13, 0.0  ;;  %v4191_v0 = vmax.f32 %v4119_v3, %v4154_v59  ;;  %v3554_v25 = vadd.f32 %v8201_v39, %v3137_v21  ;;  %v6967_v3 = vld [vmem:[#allocation10 + $0x1a0] sm:$0xff]  }
 0x2d4   :  { %v8355_v20 = vpop.f32.mrb[188].mxu0 }
 0x2d5   :  { %8661 = vst [vmem:[#allocation19_spill] sm:$0xff] %v8355_v20  ;;  %3891 = vst [vmem:[#allocation2 + $0x178] sm:$0xff] %v3795_v12  ;;  %v8357_v5 = vpop.f32.mrb[189].mxu0  ;;  %v3796_v58 = vmax.f32 %v3554_v25, 0.0 }
 0x2d6   :  { %4215 = vst [vmem:[#allocation2 + $0x58] sm:$0xff] %v4191_v0  ;;  %v3141_v50 = vpop.f32.mrb[96].mxu1  ;;  %v8359_v47 = vpop.f32.mrb[190].mxu0 }
 0x2d7   :  { %8662 = vst [vmem:[#allocation20_spill] sm:$0xff] %v8359_v47  ;;  %v3142_v7 = vadd.f32 %v8270_v45, %v3141_v50  ;;  %v3143_v62 = vpop.f32.mrb[97].mxu1  ;;  %v8362_v1 = vpop.f32.mrb[191].mxu0  ;;  %3892 = vst [vmem:[#allocation2 + $0x180] sm:$0xff] %v3796_v58 }
 0x2d8   :  { %v3144_v54 = vpop.f32.mrb[98].mxu1 }
 0x2d9   :  { %v3559_v11 = vadd.f32 %v8211_v51, %v3142_v7  ;;  %v3145_v39 = vadd.f32 %v8270_v45, %v3144_v54  ;;  %v3146_v56 = vpop.f32.mrb[99].mxu1 }
 0x2db   :  { %v3797_v13 = vmax.f32 %v3559_v11, 0.0  ;;  %v3562_v32 = vadd.f32 %v8216_v36, %v3145_v39 }
 0x2dd   :  { %3893 = vst [vmem:[#allocation2 + $0x188] sm:$0xff] %v3797_v13  ;;  %v3798_v21 = vmax.f32 %v3562_v32, 0.0  ;;  %v4466_v59 = vld [vmem:[#allocation2 + $0x51] sm:$0xff] }
 0x2de   :  { %v3149_v12 = vpop.f32.mrb[100].mxu1  ;;  %v4485_v25 = vpack.c.bf16 %v4466_v59, %v4465_v15  ;;  %v3964_v50 = vld [vmem:[#allocation2 + $0x168] ss:$4 sm:$0xff]  ;;  %v4012_v62 = vld [vmem:[#allocation2 + $0x169] ss:$4 sm:$0xff] }
 0x2df   :  { %3894 = vst [vmem:[#allocation2 + $0x190] sm:$0xff] %v3798_v21  ;;  %v3150_v58 = vadd.f32 %v8270_v45, %v3149_v12  ;;  %v4048_v47 = vmax.f32 %v3964_v50, %v4012_v62  ;;  %v3151_v51 = vpop.f32.mrb[101].mxu1  ;;  %v4084_v54 = vld [vmem:[#allocation2 + $0x16a] ss:$4 sm:$0xff]  ;;  %v4156_v32 = vld [vmem:[#allocation2 + $0x16b] ss:$4 sm:$0xff] }
 0x2e0   :  { %v4569_v7 = vmul.bf16 %v6967_v3, %v4485_v25  ;;  %v3152_v56 = vpop.f32.mrb[102].mxu1 }
 0x2e1   :  { %v3567_v11 = vadd.f32 %v8209_v55, %v3150_v58  ;;  %v4120_v36 = vmax.f32 %v4048_v47, %v4084_v54  ;;  %v3153_v39 = vadd.f32 %v8270_v45, %v3152_v56  ;;  %v3154_v13 = vpop.f32.mrb[103].mxu1  ;;  %v4287_v54 = vld [vmem:[#allocation2 + $0x57] sm:$0xff] }
 0x2e2   :  { %6684 = vmatprep.mubr.bf16.mxu1 %v4569_v7 }
 0x2e3   :  { %v3799_v20 = vmax.f32 %v3567_v11, 0.0  ;;  %v4192_v15 = vmax.f32 %v4120_v36, %v4156_v32  ;;  %v3570_v59 = vadd.f32 %v8213_v60, %v3153_v39  ;;  %v6968_v60 = vld [vmem:[#allocation9 + $0x1a8] sm:$0xff]  }
 0x2e5   :  { %3895 = vst [vmem:[#allocation2 + $0x198] sm:$0xff] %v3799_v20  ;;  %4216 = vst [vmem:[#allocation2 + $0x60] sm:$0xff] %v4192_v15  ;;  %v3800_v21 = vmax.f32 %v3570_v59, 0.0  ;;  %v4438_v50 = vpack.c.bf16 %v4192_v15, %v4191_v0 }
 0x2e6   :  { %v3157_v12 = vpop.f32.mrb[104].mxu1 }
 0x2e7   :  { %v3158_v3 = vadd.f32 %v8270_v45, %v3157_v12  ;;  %v3159_v25 = vpop.f32.mrb[105].mxu1  ;;  %3896 = vst [vmem:[#allocation2 + $0x1a0] sm:$0xff] %v3800_v21  ;;  %4898 = vmatprep.mubr.bf16.mxu0 %v4438_v50 }
 0x2e8   :  { %v3160_v55 = vpop.f32.mrb[106].mxu1 }
 0x2e9   :  { %v3575_v47 = vadd.f32 %v8223_v44, %v3158_v3  ;;  %v3161_v62 = vadd.f32 %v8270_v45, %v3160_v55  ;;  %v3162_v58 = vpop.f32.mrb[107].mxu1 }
 0x2eb   :  { %v3801_v51 = vmax.f32 %v3575_v47, 0.0  ;;  %v3578_v7 = vadd.f32 %v8229_v31, %v3161_v62 }
 0x2ec   :  { %v4288_v11 = vld [vmem:[#allocation2 + $0x5f] sm:$0xff] }
 0x2ed   :  { %3897 = vst [vmem:[#allocation2 + $0x1a8] sm:$0xff] %v3801_v51  ;;  %v3802_v20 = vmax.f32 %v3578_v7, 0.0  ;;  %v4306_v56 = vpack.c.bf16 %v4288_v11, %v4287_v54 }
 0x2ee   :  { %v3165_v0 = vpop.f32.mrb[108].mxu1  ;;  %v3966_v36 = vld [vmem:[#allocation2 + $0x188] ss:$4 sm:$0xff]  ;;  %v4014_v39 = vld [vmem:[#allocation2 + $0x189] ss:$4 sm:$0xff] }
 0x2ef   :  { %3898 = vst [vmem:[#allocation2 + $0x1b0] sm:$0xff] %v3802_v20  ;;  %v3166_v13 = vadd.f32 %v8270_v45, %v3165_v0  ;;  %v4049_v32 = vmax.f32 %v3966_v36, %v4014_v39  ;;  %v3167_v44 = vpop.f32.mrb[109].mxu1  ;;  %v4390_v15 = vmul.bf16 %v6968_v60, %v4306_v56  ;;  %v4086_v59 = vld [vmem:[#allocation2 + $0x18a] ss:$4 sm:$0xff]  ;;  %v4158_v25 = vld [vmem:[#allocation2 + $0x18b] ss:$4 sm:$0xff] }
 0x2f0   :  { %v3168_v12 = vpop.f32.mrb[110].mxu1  ;;  %v6969_v36 = vld [vmem:[#allocation10 + $0x1a8] sm:$0xff]  }
 0x2f1   :  { %v3583_v21 = vadd.f32 %v8221_v35, %v3166_v13  ;;  %v4121_v31 = vmax.f32 %v4049_v32, %v4086_v59  ;;  %v3169_v50 = vadd.f32 %v8270_v45, %v3168_v12  ;;  %v3170_v3 = vpop.f32.mrb[111].mxu1  ;;  %4899 = vmatmul.mubr.bf16.gmra.mrb[212].mxu0 %v4390_v15  ;;  %v4467_v39 = vld [vmem:[#allocation2 + $0x59] sm:$0xff] }
 0x2f3   :  { %v3803_v55 = vmax.f32 %v3583_v21, 0.0  ;;  %v4193_v47 = vmax.f32 %v4121_v31, %v4158_v25  ;;  %v3586_v62 = vadd.f32 %v8226_v29, %v3169_v50 }
 0x2f5   :  { %3899 = vst [vmem:[#allocation2 + $0x1b8] sm:$0xff] %v3803_v55  ;;  %4217 = vst [vmem:[#allocation2 + $0x68] sm:$0xff] %v4193_v47  ;;  %v3804_v58 = vmax.f32 %v3586_v62, 0.0 }
 0x2f6   :  { %v3173_v51 = vpop.f32.mrb[112].mxu1 }
 0x2f7   :  { %v3174_v7 = vadd.f32 %v8270_v45, %v3173_v51  ;;  %v3175_v60 = vpop.f32.mrb[113].mxu1  ;;  %3900 = vst [vmem:[#allocation2 + $0x1c0] sm:$0xff] %v3804_v58 }
 0x2f8   :  { %v3176_v35 = vpop.f32.mrb[114].mxu1 }
 0x2f9   :  { %v3591_v20 = vadd.f32 %v8236_v18, %v3174_v7  ;;  %v3177_v54 = vadd.f32 %v8270_v45, %v3176_v35  ;;  %v3178_v11 = vpop.f32.mrb[115].mxu1 }
 0x2fb   :  { %v3805_v0 = vmax.f32 %v3591_v20, 0.0  ;;  %v3594_v56 = vadd.f32 %v8241_v19, %v3177_v54 }
 0x2fc   :  { %v4468_v13 = vld [vmem:[#allocation2 + $0x61] sm:$0xff] }
 0x2fd   :  { %3901 = vst [vmem:[#allocation2 + $0x1c8] sm:$0xff] %v3805_v0  ;;  %v3806_v29 = vmax.f32 %v3594_v56, 0.0  ;;  %v4486_v44 = vpack.c.bf16 %v4468_v13, %v4467_v39 }
 0x2fe   :  { %v3181_v32 = vpop.f32.mrb[116].mxu1  ;;  %v3968_v15 = vld [vmem:[#allocation2 + $0x1a8] ss:$4 sm:$0xff]  ;;  %v4016_v59 = vld [vmem:[#allocation2 + $0x1a9] ss:$4 sm:$0xff] }
 0x2ff   :  { %3902 = vst [vmem:[#allocation2 + $0x1d0] sm:$0xff] %v3806_v29  ;;  %v3182_v21 = vadd.f32 %v8270_v45, %v3181_v32  ;;  %v4050_v12 = vmax.f32 %v3968_v15, %v4016_v59  ;;  %v3183_v18 = vpop.f32.mrb[117].mxu1  ;;  %v4570_v31 = vmul.bf16 %v6969_v36, %v4486_v44  ;;  %v4088_v50 = vld [vmem:[#allocation2 + $0x1aa] ss:$4 sm:$0xff]  ;;  %v4160_v58 = vld [vmem:[#allocation2 + $0x1ab] ss:$4 sm:$0xff] }
 0x300   :  { %v3184_v25 = vpop.f32.mrb[118].mxu1  ;;  %v4289_v44 = vld [vmem:[#allocation2 + $0x67] sm:$0xff] }
 0x301   :  { %v3599_v3 = vadd.f32 %v8234_v43, %v3182_v21  ;;  %v4122_v19 = vmax.f32 %v4050_v12, %v4088_v50  ;;  %v3185_v55 = vadd.f32 %v8270_v45, %v3184_v25  ;;  %v3186_v62 = vpop.f32.mrb[119].mxu1  ;;  %6685 = vmatmul.mubr.bf16.gmra.mrb[200].mxu1 %v4570_v31 }
 0x303   :  { %v3807_v51 = vmax.f32 %v3599_v3, 0.0  ;;  %v4194_v7 = vmax.f32 %v4122_v19, %v4160_v58  ;;  %v3602_v60 = vadd.f32 %v8238_v14, %v3185_v55  ;;  %v6970_v14 = vld [vmem:[#allocation9 + $0x1b0] sm:$0xff]  }
 0x305   :  { %3903 = vst [vmem:[#allocation2 + $0x1d8] sm:$0xff] %v3807_v51  ;;  %4218 = vst [vmem:[#allocation2 + $0x70] sm:$0xff] %v4194_v7  ;;  %v3808_v35 = vmax.f32 %v3602_v60, 0.0  ;;  %v4439_v54 = vpack.c.bf16 %v4194_v7, %v4193_v47 }
 0x306   :  { %v3189_v20 = vpop.f32.mrb[120].mxu1 }
 0x307   :  { %v3190_v11 = vadd.f32 %v8270_v45, %v3189_v20  ;;  %v3191_v0 = vpop.f32.mrb[121].mxu1  ;;  %3904 = vst [vmem:[#allocation2 + $0x1e0] sm:$0xff] %v3808_v35  ;;  %4906 = vmatprep.mubr.bf16.mxu0 %v4439_v54 }
 0x308   :  { %v3192_v43 = vpop.f32.mrb[122].mxu1 }
 0x309   :  { %v3607_v56 = vadd.f32 %v8250_v26, %v3190_v11  ;;  %v3193_v36 = vadd.f32 %v8270_v45, %v3192_v43  ;;  %v3194_v29 = vpop.f32.mrb[123].mxu1 }
 0x30b   :  { %v3809_v39 = vmax.f32 %v3607_v56, 0.0  ;;  %v3610_v13 = vadd.f32 %v8256_v52, %v3193_v36 }
 0x30c   :  { %v4290_v15 = vld [vmem:[#allocation2 + $0x6f] sm:$0xff] }
 0x30d   :  { %3905 = vst [vmem:[#allocation2 + $0x1e8] sm:$0xff] %v3809_v39  ;;  %v3810_v32 = vmax.f32 %v3610_v13, 0.0  ;;  %v4307_v59 = vpack.c.bf16 %v4290_v15, %v4289_v44  ;;  %v6971_v39 = vld [vmem:[#allocation10 + $0x1b0] sm:$0xff]   ;;  %v4469_v13 = vld [vmem:[#allocation2 + $0x69] sm:$0xff] }
 0x30e   :  { %v3197_v47 = vpop.f32.mrb[124].mxu1  ;;  %v3970_v21 = vld [vmem:[#allocation2 + $0x1c8] ss:$4 sm:$0xff]  ;;  %v4018_v12 = vld [vmem:[#allocation2 + $0x1c9] ss:$4 sm:$0xff] }
 0x30f   :  { %3906 = vst [vmem:[#allocation2 + $0x1f0] sm:$0xff] %v3810_v32  ;;  %v3198_v18 = vadd.f32 %v8270_v45, %v3197_v47  ;;  %v4051_v31 = vmax.f32 %v3970_v21, %v4018_v12  ;;  %v3199_v26 = vpop.f32.mrb[125].mxu1  ;;  %v4391_v50 = vmul.bf16 %v6970_v14, %v4307_v59  ;;  %v4090_v3 = vld [vmem:[#allocation2 + $0x1ca] ss:$4 sm:$0xff]  ;;  %v4162_v58 = vld [vmem:[#allocation2 + $0x1cb] ss:$4 sm:$0xff] }
 0x310   :  { %v3200_v19 = vpop.f32.mrb[126].mxu1 }
 0x311   :  { %v3615_v25 = vadd.f32 %v8248_v2, %v3198_v18  ;;  %v4123_v52 = vmax.f32 %v4051_v31, %v4090_v3  ;;  %v3201_v55 = vadd.f32 %v8270_v45, %v3200_v19  ;;  %v3202_v62 = vpop.f32.mrb[127].mxu1  ;;  %4907 = vmatmul.mubr.bf16.gmra.mrb[216].mxu0 %v4391_v50  ;;  %v6979_v18 = vld [vmem:[%s8645_s3 + $0x1c0] sm:$0xff]  }
 0x312   :  { %v6981_v50 = vld [vmem:[%s8645_s3 + $0x180] sm:$0xff]   ;;  %6387 = vmatprep.subr.bf16.mxu1 %v6979_v18 }
 0x313   :  { %v3811_v51 = vmax.f32 %v3615_v25, 0.0  ;;  %v4195_v7 = vmax.f32 %v4123_v52, %v4162_v58  ;;  %v3618_v60 = vadd.f32 %v8253_v42, %v3201_v55  ;;  %6388 = vmatpush3.bf16.msra.mxu1 %v6981_v50 }
 0x315   :  { %3907 = vst [vmem:[#allocation2 + $0x1f8] sm:$0xff] %v3811_v51  ;;  %4219 = vst [vmem:[#allocation2 + $0x78] sm:$0xff] %v4195_v7  ;;  %v3812_v35 = vmax.f32 %v3618_v60, 0.0  ;;  %v6983_v60 = vld [vmem:[%s8645_s3 + $0x188] sm:$0xff]  }
 0x316   :  { %v3205_v20 = vpop.f32.mrb[128].mxu1 }
 0x317   :  { %v3206_v54 = vadd.f32 %v8270_v45, %v3205_v20  ;;  %v3207_v11 = vpop.f32.mrb[129].mxu1  ;;  %3908 = vst [vmem:[#allocation2 + $0x200] sm:$0xff] %v3812_v35 }
 0x318   :  { %v3208_v2 = vpop.f32.mrb[130].mxu1 }
 0x319   :  { %v3623_v0 = vadd.f32 %v8263_v38, %v3206_v54  ;;  %v3209_v43 = vadd.f32 %v8270_v45, %v3208_v2  ;;  %v3210_v56 = vpop.f32.mrb[131].mxu1 }
 0x31b   :  { %v3813_v36 = vmax.f32 %v3623_v0, 0.0  ;;  %v3626_v29 = vadd.f32 %v8273_v49, %v3209_v43 }
 0x31c   :  { %v4470_v14 = vld [vmem:[#allocation2 + $0x71] sm:$0xff] }
 0x31d   :  { %3909 = vst [vmem:[#allocation2 + $0x208] sm:$0xff] %v3813_v36  ;;  %v3814_v42 = vmax.f32 %v3626_v29, 0.0  ;;  %v4487_v44 = vpack.c.bf16 %v4470_v14, %v4469_v13  ;;  %v6984_v29 = vld [vmem:[%s8645_s3 + $0x1d0] sm:$0xff]  }
 0x31e   :  { %v3213_v32 = vpop.f32.mrb[132].mxu1  ;;  %v3972_v15 = vld [vmem:[#allocation2 + $0x1e8] ss:$4 sm:$0xff]  ;;  %v4020_v47 = vld [vmem:[#allocation2 + $0x1e9] ss:$4 sm:$0xff] }
 0x31f   :  { %3910 = vst [vmem:[#allocation2 + $0x210] sm:$0xff] %v3814_v42  ;;  %v3214_v59 = vadd.f32 %v8270_v45, %v3213_v32  ;;  %v4052_v21 = vmax.f32 %v3972_v15, %v4020_v47  ;;  %v3215_v38 = vpop.f32.mrb[133].mxu1  ;;  %v4571_v12 = vmul.bf16 %v6971_v39, %v4487_v44  ;;  %v4092_v49 = vld [vmem:[#allocation2 + $0x1ea] ss:$4 sm:$0xff]  ;;  %v4164_v52 = vld [vmem:[#allocation2 + $0x1eb] ss:$4 sm:$0xff] }
 0x320   :  { %v3216_v26 = vpop.f32.mrb[134].mxu1  ;;  %v6985_v14 = vld [vmem:[%s8645_s3 + $0x190] sm:$0xff]   ;;  %v6986_v47 = vld [vmem:[%s8645_s3 + $0x1d8] sm:$0xff]  }
 0x321   :  { %v3631_v31 = vadd.f32 %v8261_v63, %v3214_v59  ;;  %v4124_v3 = vmax.f32 %v4052_v21, %v4092_v49  ;;  %v3217_v25 = vadd.f32 %v8270_v45, %v3216_v26  ;;  %v3218_v19 = vpop.f32.mrb[135].mxu1  ;;  %6688 = vmatprep.mubr.bf16.mxu1 %v4571_v12  ;;  %v6982_v63 = vld [vmem:[%s8645_s3 + $0x1c8] sm:$0xff]   ;;  %v4291_v59 = vld [vmem:[#allocation2 + $0x77] sm:$0xff] }
 0x322   :  { %6389 = vmatprep.subr.bf16.mxu1 %v6982_v63  ;;  %v6972_v15 = vld [vmem:[#allocation9 + $0x1b8] sm:$0xff]   ;;  %v6987_v38 = vld [vmem:[%s8645_s3 + $0x198] sm:$0xff]  }
 0x323   :  { %v3815_v55 = vmax.f32 %v3631_v31, 0.0  ;;  %v4196_v62 = vmax.f32 %v4124_v3, %v4164_v52  ;;  %v3634_v58 = vadd.f32 %v8265_v37, %v3217_v25  ;;  %6390 = vmatpush3.bf16.msra.mxu1 %v6983_v60  ;;  %v6988_v25 = vld [vmem:[%s8645_s3 + $0x1e0] sm:$0xff]  }
 0x324   :  { %v6295_v51 = vpop.f32.mrb[192].mxu0  ;;  %6391 = vmatprep.subr.bf16.mxu1 %v6984_v29  ;;  %v6995_v29 = vld [vmem:[%s8645_s3 + $0x1b0] sm:$0xff]  }
 0x325   :  { %3911 = vst [vmem:[#allocation2 + $0x218] sm:$0xff] %v3815_v55  ;;  %4220 = vst [vmem:[#allocation2 + $0x80] sm:$0xff] %v4196_v62  ;;  %v3816_v35 = vmax.f32 %v3634_v58, 0.0  ;;  %v6296_v20 = vpop.f32.mrb[193].mxu0  ;;  %v4440_v11 = vpack.c.bf16 %v4196_v62, %v4195_v7  ;;  %v6991_v62 = vld [vmem:[%s8645_s3 + $0x1a0] sm:$0xff]  }
 0x326   :  { %v3221_v54 = vpop.f32.mrb[136].mxu1  ;;  %v8415_v2 = vadd.f32 %v6296_v20, %v6295_v51  ;;  %v6298_v0 = vpop.f32.mrb[194].mxu0  ;;  %v6992_v20 = vld [vmem:[%s8645_s3 + $0x1e8] sm:$0xff]  }
 0x327   :  { %v3222_v37 = vadd.f32 %v8270_v45, %v3221_v54  ;;  %v3223_v43 = vpop.f32.mrb[137].mxu1  ;;  %3912 = vst [vmem:[#allocation2 + $0x220] sm:$0xff] %v3816_v35  ;;  %v6299_v56 = vpop.f32.mrb[195].mxu0  ;;  %4914 = vmatprep.mubr.bf16.mxu0 %v4440_v11  ;;  %6392 = vmatpush3.bf16.msra.mxu1 %v6985_v14 }
 0x328   :  { %v3224_v36 = vpop.f32.mrb[138].mxu1  ;;  %v8422_v42 = vadd.f32 %v6299_v56, %v6298_v0  ;;  %6393 = vmatprep.subr.bf16.mxu1 %v6986_v47  ;;  %v6973_v47 = vld [vmem:[#allocation10 + $0x1b8] sm:$0xff]  }
 0x329   :  { %v3639_v39 = vadd.f32 %v8280_v30, %v3222_v37  ;;  %v3225_v7 = vadd.f32 %v8270_v45, %v3224_v36  ;;  %v3226_v13 = vpop.f32.mrb[139].mxu1  ;;  %v6994_v37 = vld [vmem:[%s8645_s3 + $0x1f0] sm:$0xff]  }
 0x32b   :  { %v3817_v32 = vmax.f32 %v3639_v39, 0.0  ;;  %v3642_v44 = vadd.f32 %v8286_v4, %v3225_v7  ;;  %6394 = vmatpush3.bf16.msra.mxu1 %v6987_v38  ;;  %v6996_v39 = vld [vmem:[%s8645_s3 + $0x1f8] sm:$0xff]  }
 0x32c   :  { %v4292_v21 = vld [vmem:[#allocation2 + $0x7f] sm:$0xff]  ;;  %6395 = vmatprep.subr.bf16.mxu1 %v6988_v25 }
 0x32d   :  { %3913 = vst [vmem:[#allocation2 + $0x228] sm:$0xff] %v3817_v32  ;;  %v3818_v30 = vmax.f32 %v3642_v44, 0.0  ;;  %v4308_v18 = vpack.c.bf16 %v4292_v21, %v4291_v59  ;;  %v4471_v59 = vld [vmem:[#allocation2 + $0x79] sm:$0xff] }
 0x32e   :  { %v3229_v12 = vpop.f32.mrb[140].mxu1  ;;  %v3974_v49 = vld [vmem:[#allocation2 + $0x208] ss:$4 sm:$0xff]  ;;  %v4022_v31 = vld [vmem:[#allocation2 + $0x209] ss:$4 sm:$0xff] }
 0x32f   :  { %3914 = vst [vmem:[#allocation2 + $0x230] sm:$0xff] %v3818_v30  ;;  %v3230_v4 = vadd.f32 %v8270_v45, %v3229_v12  ;;  %v4053_v26 = vmax.f32 %v3974_v49, %v4022_v31  ;;  %v3231_v50 = vpop.f32.mrb[141].mxu1  ;;  %v4392_v3 = vmul.bf16 %v6972_v15, %v4308_v18  ;;  %v4094_v19 = vld [vmem:[#allocation2 + $0x20a] ss:$4 sm:$0xff]  ;;  %v4166_v60 = vld [vmem:[#allocation2 + $0x20b] ss:$4 sm:$0xff]  ;;  %6396 = vmatpush3.bf16.msra.mxu1 %v6991_v62 }
 0x330   :  { %v3232_v55 = vpop.f32.mrb[142].mxu1  ;;  %6397 = vmatprep.subr.bf16.mxu1 %v6992_v20  ;;  %v6997_v15 = vld [vmem:[%s8645_s3 + $0x1b8] sm:$0xff]  }
 0x331   :  { %v3647_v52 = vadd.f32 %v8278_v48, %v3230_v4  ;;  %v4125_v58 = vmax.f32 %v4053_v26, %v4094_v19  ;;  %v3233_v63 = vadd.f32 %v8270_v45, %v3232_v55  ;;  %v3234_v51 = vpop.f32.mrb[143].mxu1  ;;  %4915 = vmatmul.mubr.bf16.gmra.mrb[220].mxu0 %v4392_v3  ;;  %v6993_v48 = vld [vmem:[%s8645_s3 + $0x1a8] sm:$0xff]   ;;  %v8475_v19 = vld [vmem:[%s8646_s4] ss:$0 sm:$0xff] }
 0x333   :  { %v3819_v35 = vmax.f32 %v3647_v52, 0.0  ;;  %v8450_v54 = vmax.f32 %v4125_v58, %v4166_v60  ;;  %v3650_v11 = vadd.f32 %v8283_v28, %v3233_v63  ;;  %6398 = vmatpush3.bf16.msra.mxu1 %v6993_v48 }
 0x334   :  { %6399 = vmatprep.subr.bf16.mxu1 %v6994_v37 }
 0x335   :  { %3915 = vst [vmem:[#allocation2 + $0x238] sm:$0xff] %v3819_v35  ;;  %4221 = vst [vmem:[#allocation2 + $0x88] sm:$0xff] %v8450_v54  ;;  %v3820_v0 = vmax.f32 %v3650_v11, 0.0 }
 0x336   :  { %v3237_v43 = vpop.f32.mrb[144].mxu1 }
 0x337   :  { %v3238_v56 = vadd.f32 %v8270_v45, %v3237_v43  ;;  %v3239_v36 = vpop.f32.mrb[145].mxu1  ;;  %3916 = vst [vmem:[#allocation2 + $0x240] sm:$0xff] %v3820_v0  ;;  %6400 = vmatpush3.bf16.msra.mxu1 %v6995_v29 }
 0x338   :  { %v3240_v28 = vpop.f32.mrb[146].mxu1  ;;  %6401 = vmatprep.subr.bf16.mxu1 %v6996_v39 }
 0x339   :  { %v3655_v7 = vadd.f32 %v8293_v57, %v3238_v56  ;;  %v3241_v13 = vadd.f32 %v8270_v45, %v3240_v28  ;;  %v3242_v14 = vpop.f32.mrb[147].mxu1 }
 0x33b   :  { %v3821_v32 = vmax.f32 %v3655_v7, 0.0  ;;  %v3658_v44 = vadd.f32 %v8298_v22, %v3241_v13  ;;  %6402 = vmatpush3.bf16.msra.mxu1 %v6997_v15  ;;  %v6974_v7 = vld [vmem:[#allocation9 + $0x1c0] sm:$0xff]  }
 0x33c   :  { %v4472_v21 = vld [vmem:[#allocation2 + $0x81] sm:$0xff] }
 0x33d   :  { %3917 = vst [vmem:[#allocation2 + $0x248] sm:$0xff] %v3821_v32  ;;  %v3822_v30 = vmax.f32 %v3658_v44, 0.0  ;;  %v4488_v12 = vpack.c.bf16 %v4472_v21, %v4471_v59  ;;  %v4293_v14 = vld [vmem:[#allocation2 + $0x87] sm:$0xff] }
 0x33e   :  { %v3245_v38 = vpop.f32.mrb[148].mxu1  ;;  %v3976_v57 = vld [vmem:[#allocation2 + $0x228] ss:$4 sm:$0xff]  ;;  %v4024_v18 = vld [vmem:[#allocation2 + $0x229] ss:$4 sm:$0xff] }
 0x33f   :  { %3918 = vst [vmem:[#allocation2 + $0x250] sm:$0xff] %v3822_v30  ;;  %v3246_v49 = vadd.f32 %v8270_v45, %v3245_v38  ;;  %v4054_v22 = vmax.f32 %v3976_v57, %v4024_v18  ;;  %v3247_v31 = vpop.f32.mrb[149].mxu1  ;;  %v4572_v4 = vmul.bf16 %v6973_v47, %v4488_v12  ;;  %v4096_v26 = vld [vmem:[#allocation2 + $0x22a] ss:$4 sm:$0xff]  ;;  %v4168_v62 = vld [vmem:[#allocation2 + $0x22b] ss:$4 sm:$0xff] }
 0x340   :  { %v3248_v3 = vpop.f32.mrb[150].mxu1 }
 0x341   :  { %v3663_v50 = vadd.f32 %v8291_v61, %v3246_v49  ;;  %v4126_v25 = vmax.f32 %v4054_v22, %v4096_v26  ;;  %v3249_v52 = vadd.f32 %v8475_v19, %v3248_v3  ;;  %v3250_v55 = vpop.f32.mrb[151].mxu1  ;;  %6689 = vmatmul.mubr.bf16.gmra.mrb[204].mxu1 %v4572_v4 }
 0x342   :  { %v6999_v55 = vld [vmem:[%s8645_s3 + $0x200] sm:$0xff]  }
 0x343   :  { %v3823_v45 = vmax.f32 %v3663_v50, 0.0  ;;  %v4198_v58 = vmax.f32 %v4126_v25, %v4168_v62  ;;  %v3666_v63 = vadd.f32 %v8295_v9, %v3249_v52  ;;  %6701 = vmatpush3.bf16.msra.mxu0 %v6999_v55 }
 0x344   :  { %v6301_v51 = vpop.f32.mrb[196].mxu0 }
 0x345   :  { %3919 = vst [vmem:[#allocation2 + $0x258] sm:$0xff] %v3823_v45  ;;  %4222 = vst [vmem:[#allocation2 + $0x90] sm:$0xff] %v4198_v58  ;;  %v3824_v61 = vmax.f32 %v3666_v63, 0.0  ;;  %v6302_v60 = vpop.f32.mrb[197].mxu0  ;;  %v4441_v20 = vpack.c.bf16 %v4198_v58, %v8450_v54 }
 0x346   :  { %v3253_v35 = vpop.f32.mrb[152].mxu1  ;;  %v8480_v48 = vadd.f32 %v6302_v60, %v6301_v51  ;;  %v6304_v37 = vpop.f32.mrb[198].mxu0  ;;  %v7000_v60 = vld [vmem:[%s8645_s3 + $0x208] sm:$0xff]  }
 0x347   :  { %v3254_v11 = vadd.f32 %v8475_v19, %v3253_v35  ;;  %v3255_v0 = vpop.f32.mrb[153].mxu1  ;;  %3920 = vst [vmem:[#allocation2 + $0x260] sm:$0xff] %v3824_v61  ;;  %v6305_v43 = vpop.f32.mrb[199].mxu0  ;;  %4922 = vmatprep.mubr.bf16.mxu0 %v4441_v20  ;;  %v6975_v35 = vld [vmem:[#allocation10 + $0x1c0] sm:$0xff]  }
 0x348   :  { %v3256_v56 = vpop.f32.mrb[154].mxu1  ;;  %v8484_v36 = vadd.f32 %v6305_v43, %v6304_v37 }
 0x349   :  { %v3671_v9 = vadd.f32 %v8307_v40, %v3254_v11  ;;  %v3257_v29 = vadd.f32 %v8475_v19, %v3256_v56  ;;  %v3258_v28 = vpop.f32.mrb[155].mxu1 }
 0x34b   :  { %v3825_v39 = vmax.f32 %v3671_v9, 0.0  ;;  %v3674_v54 = vadd.f32 %v8313_v8, %v3257_v29 }
 0x34c   :  { %v4294_v32 = vld [vmem:[#allocation2 + $0x8f] sm:$0xff] }
 0x34d   :  { %3921 = vst [vmem:[#allocation2 + $0x268] sm:$0xff] %v3825_v39  ;;  %v3826_v13 = vmax.f32 %v3674_v54, 0.0  ;;  %v4309_v15 = vpack.c.bf16 %v4294_v32, %v4293_v14  ;;  %v4473_v11 = vld [vmem:[#allocation2 + $0x89] sm:$0xff] }
 0x34e   :  { %v3261_v44 = vpop.f32.mrb[156].mxu1  ;;  %v3978_v47 = vld [vmem:[#allocation2 + $0x248] ss:$4 sm:$0xff]  ;;  %v4026_v30 = vld [vmem:[#allocation2 + $0x249] ss:$4 sm:$0xff] }
 0x34f   :  { %3922 = vst [vmem:[#allocation2 + $0x270] sm:$0xff] %v3826_v13  ;;  %v3262_v40 = vadd.f32 %v8475_v19, %v3261_v44  ;;  %v4055_v59 = vmax.f32 %v3978_v47, %v4026_v30  ;;  %v3263_v21 = vpop.f32.mrb[157].mxu1  ;;  %v4393_v38 = vmul.bf16 %v6974_v7, %v4309_v15  ;;  %v4098_v12 = vld [vmem:[#allocation2 + $0x24a] ss:$4 sm:$0xff]  ;;  %v4170_v31 = vld [vmem:[#allocation2 + $0x24b] ss:$4 sm:$0xff] }
 0x350   :  { %v3264_v18 = vpop.f32.mrb[158].mxu1  ;;  %v7001_v39 = vld [vmem:[%s8645_s3 + $0x210] sm:$0xff]   ;;  %v8663_v7 = vld [vmem:[#allocation17_spill] sm:$0xff]  ;;  %v8664_v21 = vld [vmem:[#allocation18_spill] sm:$0xff] }
 0x351   :  { %v3679_v57 = vadd.f32 %v8305_v46, %v3262_v40  ;;  %v4127_v8 = vmax.f32 %v4055_v59, %v4098_v12  ;;  %v3265_v49 = vadd.f32 %v8475_v19, %v3264_v18  ;;  %v3266_v22 = vpop.f32.mrb[159].mxu1  ;;  %4923 = vmatmul.mubr.bf16.gmra.mrb[224].mxu0 %v4393_v38  ;;  %v7002_v40 = vld [vmem:[%s8645_s3 + $0x218] sm:$0xff]  }
 0x353   :  { %v3827_v4 = vmax.f32 %v3679_v57, 0.0  ;;  %v8491_v26 = vmax.f32 %v4127_v8, %v4170_v31  ;;  %v3682_v50 = vadd.f32 %v8310_v24, %v3265_v49  ;;  %v8501_v24 = vld [vmem:[#allocation2] sm:$0xff] }
 0x354   :  { %6702 = vmatprep.subr.bf16.mxu0 %v8501_v24 }
 0x355   :  { %3923 = vst [vmem:[#allocation2 + $0x278] sm:$0xff] %v3827_v4  ;;  %4223 = vst [vmem:[#allocation2 + $0x98] sm:$0xff] %v8491_v26  ;;  %v3828_v3 = vmax.f32 %v3682_v50, 0.0  ;;  %6703 = vmatpush3.bf16.msra.mxu0 %v7000_v60 }
 0x356   :  { %v3269_v25 = vpop.f32.mrb[160].mxu1  ;;  %6704 = vmatprep.subr.bf16.mxu0 %v8501_v24 }
 0x357   :  { %v3270_v52 = vadd.f32 %v8475_v19, %v3269_v25  ;;  %v3271_v46 = vpop.f32.mrb[161].mxu1  ;;  %3924 = vst [vmem:[#allocation2 + $0x280] sm:$0xff] %v3828_v3  ;;  %v7003_v3 = vld [vmem:[%s8645_s3 + $0x220] sm:$0xff]  }
 0x358   :  { %v3272_v62 = vpop.f32.mrb[162].mxu1 }
 0x359   :  { %v3687_v45 = vadd.f32 %v8320_v16, %v3270_v52  ;;  %v3273_v58 = vadd.f32 %v8475_v19, %v3272_v62  ;;  %v3274_v63 = vpop.f32.mrb[163].mxu1  ;;  %6705 = vmatpush3.bf16.msra.mxu0 %v7001_v39 }
 0x35a   :  { %6706 = vmatprep.subr.bf16.mxu0 %v8501_v24  ;;  %v7004_v63 = vld [vmem:[%s8645_s3 + $0x228] sm:$0xff]  }
 0x35b   :  { %v3829_v51 = vmax.f32 %v3687_v45, 0.0  ;;  %v3690_v61 = vadd.f32 %v8325_v17, %v3273_v58 }
 0x35c   :  { %v4474_v16 = vld [vmem:[#allocation2 + $0x91] sm:$0xff] }
 0x35d   :  { %3925 = vst [vmem:[#allocation2 + $0x288] sm:$0xff] %v3829_v51  ;;  %v3830_v20 = vmax.f32 %v3690_v61, 0.0  ;;  %v4489_v0 = vpack.c.bf16 %v4474_v16, %v4473_v11  ;;  %6707 = vmatpush3.bf16.msra.mxu0 %v7002_v40  ;;  %v6976_v51 = vld [vmem:[#allocation9 + $0x1c8] sm:$0xff]  }
 0x35e   :  { %v3277_v37 = vpop.f32.mrb[164].mxu1  ;;  %v3980_v43 = vld [vmem:[#allocation2 + $0x268] ss:$4 sm:$0xff]  ;;  %v4028_v56 = vld [vmem:[#allocation2 + $0x269] ss:$4 sm:$0xff]  ;;  %6708 = vmatprep.subr.bf16.mxu0 %v8501_v24 }
 0x35f   :  { %3926 = vst [vmem:[#allocation2 + $0x290] sm:$0xff] %v3830_v20  ;;  %v3278_v9 = vadd.f32 %v8475_v19, %v3277_v37  ;;  %v4056_v17 = vmax.f32 %v3980_v43, %v4028_v56  ;;  %v3279_v29 = vpop.f32.mrb[165].mxu1  ;;  %v4573_v28 = vmul.bf16 %v6975_v35, %v4489_v0  ;;  %v4100_v54 = vld [vmem:[#allocation2 + $0x26a] ss:$4 sm:$0xff]  ;;  %v4172_v47 = vld [vmem:[#allocation2 + $0x26b] ss:$4 sm:$0xff] }
 0x360   :  { %v3280_v14 = vpop.f32.mrb[166].mxu1  ;;  %v4295_v60 = vld [vmem:[#allocation2 + $0x97] sm:$0xff] }
 0x361   :  { %v3695_v13 = vadd.f32 %v8663_v7, %v3278_v9  ;;  %v4128_v32 = vmax.f32 %v4056_v17, %v4100_v54  ;;  %v3281_v44 = vadd.f32 %v8475_v19, %v3280_v14  ;;  %v3282_v15 = vpop.f32.mrb[167].mxu1  ;;  %6692 = vmatprep.mubr.bf16.mxu1 %v4573_v28  ;;  %6709 = vmatpush3.bf16.msra.mxu0 %v7003_v3  ;;  %v7006_v14 = vld [vmem:[%s8645_s3 + $0x238] sm:$0xff]  }
 0x362   :  { %6710 = vmatprep.subr.bf16.mxu0 %v8501_v24 }
 0x363   :  { %v3831_v30 = vmax.f32 %v3695_v13, 0.0  ;;  %v4200_v59 = vmax.f32 %v4128_v32, %v4172_v47  ;;  %v3698_v38 = vadd.f32 %v8664_v21, %v3281_v44 }
 0x364   :  { %v6307_v12 = vpop.f32.mrb[200].mxu0 }
 0x365   :  { %3927 = vst [vmem:[#allocation2 + $0x298] sm:$0xff] %v3831_v30  ;;  %4224 = vst [vmem:[#allocation2 + $0xa0] sm:$0xff] %v4200_v59  ;;  %v3832_v57 = vmax.f32 %v3698_v38, 0.0  ;;  %v6308_v18 = vpop.f32.mrb[201].mxu0  ;;  %v4442_v49 = vpack.c.bf16 %v4200_v59, %v8491_v26  ;;  %6711 = vmatpush3.bf16.msra.mxu0 %v7004_v63 }
 0x366   :  { %v3285_v8 = vpop.f32.mrb[168].mxu1  ;;  %v8521_v22 = vadd.f32 %v6308_v18, %v6307_v12  ;;  %v6310_v4 = vpop.f32.mrb[202].mxu0  ;;  %6712 = vmatprep.subr.bf16.mxu0 %v8501_v24 }
 0x367   :  { %v3286_v31 = vadd.f32 %v8475_v19, %v3285_v8  ;;  %v3287_v50 = vpop.f32.mrb[169].mxu1  ;;  %3928 = vst [vmem:[#allocation2 + $0x2a0] sm:$0xff] %v3832_v57  ;;  %v6311_v25 = vpop.f32.mrb[203].mxu0  ;;  %4930 = vmatprep.mubr.bf16.mxu0 %v4442_v49  ;;  %v6977_v57 = vld [vmem:[#allocation10 + $0x1c8] sm:$0xff]  }
 0x368   :  { %v3288_v52 = vpop.f32.mrb[170].mxu1  ;;  %v8529_v26 = vadd.f32 %v6311_v25, %v6310_v4 }
 0x369   :  { %v3703_v46 = vadd.f32 %v8332_v10, %v3286_v31  ;;  %v3289_v55 = vadd.f32 %v8475_v19, %v3288_v52  ;;  %v3290_v62 = vpop.f32.mrb[171].mxu1 }
 0x36b   :  { %v3833_v45 = vmax.f32 %v3703_v46, 0.0  ;;  %v3706_v58 = vadd.f32 %v8338_v27, %v3289_v55  ;;  %v7005_v27 = vld [vmem:[%s8645_s3 + $0x230] sm:$0xff]  }
 0x36c   :  { %v4296_v10 = vld [vmem:[#allocation2 + $0x9f] sm:$0xff]  ;;  %6713 = vmatpush3.bf16.msra.mxu0 %v7005_v27 }
 0x36d   :  { %3929 = vst [vmem:[#allocation2 + $0x2a8] sm:$0xff] %v3833_v45  ;;  %v3834_v61 = vmax.f32 %v3706_v58, 0.0  ;;  %v4310_v20 = vpack.c.bf16 %v4296_v10, %v4295_v60  ;;  %6714 = vmatprep.subr.bf16.mxu0 %v8501_v24  ;;  %v4475_v8 = vld [vmem:[#allocation2 + $0x99] sm:$0xff] }
 0x36e   :  { %v3293_v35 = vpop.f32.mrb[172].mxu1  ;;  %v3982_v11 = vld [vmem:[#allocation2 + $0x288] ss:$4 sm:$0xff]  ;;  %v4030_v16 = vld [vmem:[#allocation2 + $0x289] ss:$4 sm:$0xff] }
 0x36f   :  { %3930 = vst [vmem:[#allocation2 + $0x2b0] sm:$0xff] %v3834_v61  ;;  %v3294_v37 = vadd.f32 %v8475_v19, %v3293_v35  ;;  %v4057_v0 = vmax.f32 %v3982_v11, %v4030_v16  ;;  %v3295_v43 = vpop.f32.mrb[173].mxu1  ;;  %v4394_v56 = vmul.bf16 %v6976_v51, %v4310_v20  ;;  %v4102_v9 = vld [vmem:[#allocation2 + $0x28a] ss:$4 sm:$0xff]  ;;  %v4174_v7 = vld [vmem:[#allocation2 + $0x28b] ss:$4 sm:$0xff] }
 0x370   :  { %v3296_v29 = vpop.f32.mrb[174].mxu1  ;;  %6715 = vmatpush3.bf16.msra.mxu0 %v7006_v14 }
 0x371   :  { %v3711_v17 = vadd.f32 %v8330_v23, %v3294_v37  ;;  %v4129_v28 = vmax.f32 %v4057_v0, %v4102_v9  ;;  %v3297_v39 = vadd.f32 %v8475_v19, %v3296_v29  ;;  %v3298_v54 = vpop.f32.mrb[175].mxu1  ;;  %4931 = vmatmul.mubr.bf16.gmra.mrb[228].mxu0 %v4394_v56 }
 0x373   :  { %v3835_v13 = vmax.f32 %v3711_v17, 0.0  ;;  %v4201_v32 = vmax.f32 %v4129_v28, %v4174_v7  ;;  %v3714_v44 = vadd.f32 %v8335_v33, %v3297_v39  ;;  %v6978_v7 = vld [vmem:[#allocation9 + $0x1d0] sm:$0xff]  }
 0x375   :  { %3931 = vst [vmem:[#allocation2 + $0x2b8] sm:$0xff] %v3835_v13  ;;  %4225 = vst [vmem:[#allocation2 + $0xa8] sm:$0xff] %v4201_v32  ;;  %v3836_v23 = vmax.f32 %v3714_v44, 0.0 }
 0x376   :  { %v3301_v15 = vpop.f32.mrb[176].mxu1 }
 0x377   :  { %v3302_v47 = vadd.f32 %v8475_v19, %v3301_v15  ;;  %v3303_v30 = vpop.f32.mrb[177].mxu1  ;;  %3932 = vst [vmem:[#allocation2 + $0x2c0] sm:$0xff] %v3836_v23 }
 0x378   :  { %v3304_v40 = vpop.f32.mrb[178].mxu1 }
 0x379   :  { %v3719_v59 = vadd.f32 %v8345_v34, %v3302_v47  ;;  %v3305_v21 = vadd.f32 %v8475_v19, %v3304_v40  ;;  %v3306_v38 = vpop.f32.mrb[179].mxu1 }
 0x37a   :  { %v8665_v38 = vld [vmem:[#allocation19_spill] sm:$0xff] }
 0x37b   :  { %v3837_v12 = vmax.f32 %v3719_v59, 0.0  ;;  %v3722_v33 = vadd.f32 %v8350_v6, %v3305_v21 }
 0x37c   :  { %v4476_v49 = vld [vmem:[#allocation2 + $0xa1] sm:$0xff] }
 0x37d   :  { %3933 = vst [vmem:[#allocation2 + $0x2c8] sm:$0xff] %v3837_v12  ;;  %v3838_v18 = vmax.f32 %v3722_v33, 0.0  ;;  %v4490_v4 = vpack.c.bf16 %v4476_v49, %v4475_v8  ;;  %v4297_v14 = vld [vmem:[#allocation2 + $0xa7] sm:$0xff] }
 0x37e   :  { %v3309_v31 = vpop.f32.mrb[180].mxu1  ;;  %v3984_v50 = vld [vmem:[#allocation2 + $0x2a8] ss:$4 sm:$0xff]  ;;  %v4032_v3 = vld [vmem:[#allocation2 + $0x2a9] ss:$4 sm:$0xff] }
 0x37f   :  { %3934 = vst [vmem:[#allocation2 + $0x2d0] sm:$0xff] %v3838_v18  ;;  %v3310_v25 = vadd.f32 %v8475_v19, %v3309_v31  ;;  %v4058_v52 = vmax.f32 %v3984_v50, %v4032_v3  ;;  %v3311_v34 = vpop.f32.mrb[181].mxu1  ;;  %v4574_v46 = vmul.bf16 %v6977_v57, %v4490_v4  ;;  %v4104_v55 = vld [vmem:[#allocation2 + $0x2aa] ss:$4 sm:$0xff]  ;;  %v4176_v51 = vld [vmem:[#allocation2 + $0x2ab] ss:$4 sm:$0xff] }
 0x380   :  { %v3312_v45 = vpop.f32.mrb[182].mxu1  ;;  %v8571_v31 = vld [vmem:[%s8646_s4 + $0x1] ss:$0 sm:$0xff]  ;;  %v8666_v50 = vld [vmem:[#allocation20_spill] sm:$0xff] }
 0x381   :  { %v3727_v62 = vadd.f32 %v8343_v41, %v3310_v25  ;;  %v4130_v6 = vmax.f32 %v4058_v52, %v4104_v55  ;;  %v3313_v58 = vadd.f32 %v8475_v19, %v3312_v45  ;;  %v3314_v63 = vpop.f32.mrb[183].mxu1  ;;  %6693 = vmatmul.mubr.bf16.gmra.mrb[208].mxu1 %v4574_v46  ;;  %v4869_v25 = vadd.f32 %v8480_v48, %v8571_v31 }
 0x382   :  { %v4861_v34 = vadd.f32 %v8415_v2, %v8571_v31 }
 0x383   :  { %v3839_v61 = vmax.f32 %v3727_v62, 0.0  ;;  %v4202_v60 = vmax.f32 %v4130_v6, %v4176_v51  ;;  %v3730_v10 = vadd.f32 %v8347_v53, %v3313_v58  ;;  %v4872_v62 = vadd.f32 %v8484_v36, %v8571_v31 }
 0x384   :  { %v6313_v35 = vpop.f32.mrb[204].mxu0  ;;  %v4864_v58 = vadd.f32 %v8422_v42, %v8571_v31 }
 0x385   :  { %3935 = vst [vmem:[#allocation2 + $0x2d8] sm:$0xff] %v3839_v61  ;;  %4226 = vst [vmem:[#allocation2 + $0xb0] sm:$0xff] %v4202_v60  ;;  %v3840_v20 = vmax.f32 %v3730_v10, 0.0  ;;  %v6314_v11 = vpop.f32.mrb[205].mxu0  ;;  %v4443_v37 = vpack.c.bf16 %v4202_v60, %v4201_v32 }
 0x386   :  { %v3317_v16 = vpop.f32.mrb[184].mxu1  ;;  %v8557_v27 = vadd.f32 %v6314_v11, %v6313_v35  ;;  %v6316_v0 = vpop.f32.mrb[206].mxu0  ;;  %v6980_v35 = vld [vmem:[#allocation10 + $0x1d0] sm:$0xff]  }
 0x387   :  { %v3318_v41 = vadd.f32 %v8475_v19, %v3317_v16  ;;  %v3319_v43 = vpop.f32.mrb[185].mxu1  ;;  %3936 = vst [vmem:[#allocation2 + $0x2e0] sm:$0xff] %v3840_v20  ;;  %v6317_v56 = vpop.f32.mrb[207].mxu0  ;;  %4938 = vmatprep.mubr.bf16.mxu0 %v4443_v37 }
 0x388   :  { %v3320_v9 = vpop.f32.mrb[186].mxu1  ;;  %v8561_v53 = vadd.f32 %v6317_v56, %v6316_v0  ;;  %v4885_v36 = vadd.f32 %v8557_v27, %v8571_v31  ;;  %v4877_v43 = vadd.f32 %v8521_v22, %v8571_v31 }
 0x389   :  { %v3735_v17 = vadd.f32 %v8357_v5, %v3318_v41  ;;  %v3321_v29 = vadd.f32 %v8475_v19, %v3320_v9  ;;  %v3322_v28 = vpop.f32.mrb[187].mxu1 }
 0x38b   :  { %v3841_v39 = vmax.f32 %v3735_v17, 0.0  ;;  %v3738_v54 = vadd.f32 %v8362_v1, %v3321_v29  ;;  %v4888_v17 = vadd.f32 %v8561_v53, %v8571_v31 }
 0x38c   :  { %v4298_v32 = vld [vmem:[#allocation2 + $0xaf] sm:$0xff] }
 0x38d   :  { %3937 = vst [vmem:[#allocation2 + $0x2e8] sm:$0xff] %v3841_v39  ;;  %v3842_v13 = vmax.f32 %v3738_v54, 0.0  ;;  %v4311_v23 = vpack.c.bf16 %v4298_v32, %v4297_v14  ;;  %v4477_v20 = vld [vmem:[#allocation2 + $0xa9] sm:$0xff] }
 0x38e   :  { %v3325_v44 = vpop.f32.mrb[188].mxu1  ;;  %v3986_v15 = vld [vmem:[#allocation2 + $0x2c8] ss:$4 sm:$0xff]  ;;  %v4034_v47 = vld [vmem:[#allocation2 + $0x2c9] ss:$4 sm:$0xff] }
 0x38f   :  { %3938 = vst [vmem:[#allocation2 + $0x2f0] sm:$0xff] %v3842_v13  ;;  %v3326_v5 = vadd.f32 %v8475_v19, %v3325_v44  ;;  %v4059_v30 = vmax.f32 %v3986_v15, %v4034_v47  ;;  %v3327_v40 = vpop.f32.mrb[189].mxu1  ;;  %v4395_v59 = vmul.bf16 %v6978_v7, %v4311_v23  ;;  %v4106_v21 = vld [vmem:[#allocation2 + $0x2ca] ss:$4 sm:$0xff]  ;;  %v4178_v8 = vld [vmem:[#allocation2 + $0x2cb] ss:$4 sm:$0xff]  ;;  %v4880_v7 = vadd.f32 %v8529_v26, %v8571_v31 }
 0x390   :  { %v3328_v33 = vpop.f32.mrb[190].mxu1 }
 0x391   :  { %v3743_v12 = vadd.f32 %v8665_v38, %v3326_v5  ;;  %v4131_v1 = vmax.f32 %v4059_v30, %v4106_v21  ;;  %v3329_v57 = vadd.f32 %v8475_v19, %v3328_v33  ;;  %v3330_v18 = vpop.f32.mrb[191].mxu1  ;;  %4939 = vmatmul.mubr.bf16.gmra.mrb[232].mxu0 %v4395_v59 }
 0x393   :  { %v3843_v49 = vmax.f32 %v3743_v12, 0.0  ;;  %v8573_v4 = vmax.f32 %v4131_v1, %v4178_v8  ;;  %v3746_v3 = vadd.f32 %v8666_v50, %v3329_v57 }
 0x395   :  { %3939 = vst [vmem:[#allocation2 + $0x2f8] sm:$0xff] %v3843_v49  ;;  %4227 = vst [vmem:[#allocation2 + $0xb8] sm:$0xff] %v8573_v4  ;;  %v3844_v19 = vmax.f32 %v3746_v3, 0.0  ;;  %v6989_v3 = vld [vmem:[#allocation9 + $0x1d8] sm:$0xff]  }
 0x396   :  { %v6678_v52 = vpop.f32.mrb[192].mxu1 }
 0x397   :  { %v4998_v46 = vadd.f32 %v6678_v52, %v4869_v25  ;;  %v4989_v55 = vpop.f32.mrb[193].mxu1  ;;  %3940 = vst [vmem:[#allocation2 + $0x300] sm:$0xff] %v3844_v19  ;;  %v6990_v25 = vld [vmem:[#allocation10 + $0x1d8] sm:$0xff]  }
 0x398   :  { %v4990_v45 = vadd.f32 %v4989_v55, %v4861_v34  ;;  %v6679_v6 = vpop.f32.mrb[194].mxu1 }
 0x399   :  { %v5086_v63 = vmax.f32 %v4998_v46, 0.0  ;;  %v5001_v48 = vadd.f32 %v6679_v6, %v4872_v62  ;;  %v4992_v51 = vpop.f32.mrb[195].mxu1 }
 0x39a   :  { %v5084_v61 = vmax.f32 %v4990_v45, 0.0  ;;  %v4993_v60 = vadd.f32 %v4992_v51, %v4864_v58 }
 0x39b   :  { %5110 = vst [vmem:[#allocation2 + $0x18] sm:$0xff] %v5086_v63  ;;  %v5087_v10 = vmax.f32 %v5001_v48, 0.0 }
 0x39c   :  { %5108 = vst [vmem:[#allocation2 + $0x8] sm:$0xff] %v5084_v61  ;;  %v5085_v2 = vmax.f32 %v4993_v60, 0.0  ;;  %v4478_v11 = vld [vmem:[#allocation2 + $0xb1] sm:$0xff] }
 0x39d   :  { %5111 = vst [vmem:[#allocation2 + $0x20] sm:$0xff] %v5087_v10  ;;  %v4491_v37 = vpack.c.bf16 %v4478_v11, %v4477_v20  ;;  %v4299_v50 = vld [vmem:[#allocation2 + $0xb7] sm:$0xff] }
 0x39e   :  { %5109 = vst [vmem:[#allocation2 + $0x10] sm:$0xff] %v5085_v2  ;;  %v6682_v16 = vpop.f32.mrb[196].mxu1  ;;  %v3988_v42 = vld [vmem:[#allocation2 + $0x2e8] ss:$4 sm:$0xff]  ;;  %v4036_v41 = vld [vmem:[#allocation2 + $0x2e9] ss:$4 sm:$0xff] }
 0x39f   :  { %v5014_v0 = vadd.f32 %v6682_v16, %v4885_v36  ;;  %v4060_v56 = vmax.f32 %v3988_v42, %v4036_v41  ;;  %v5005_v9 = vpop.f32.mrb[197].mxu1  ;;  %v4575_v29 = vmul.bf16 %v6980_v35, %v4491_v37  ;;  %v4108_v28 = vld [vmem:[#allocation2 + $0x2ea] ss:$4 sm:$0xff]  ;;  %v4180_v44 = vld [vmem:[#allocation2 + $0x2eb] ss:$4 sm:$0xff] }
 0x3a0   :  { %v5006_v27 = vadd.f32 %v5005_v9, %v4877_v43  ;;  %v6683_v54 = vpop.f32.mrb[198].mxu1  ;;  %v6998_v10 = vld [vmem:[#allocation9 + $0x1e0] sm:$0xff]  }
 0x3a1   :  { %v5090_v39 = vmax.f32 %v5014_v0, 0.0  ;;  %v4132_v13 = vmax.f32 %v4060_v56, %v4108_v28  ;;  %v5017_v14 = vadd.f32 %v6683_v54, %v4888_v17  ;;  %v5008_v32 = vpop.f32.mrb[199].mxu1  ;;  %6696 = vmatprep.mubr.bf16.mxu1 %v4575_v29 }
 0x3a2   :  { %v5088_v22 = vmax.f32 %v5006_v27, 0.0  ;;  %v5009_v23 = vadd.f32 %v5008_v32, %v4880_v7 }
 0x3a3   :  { %5114 = vst [vmem:[#allocation2 + $0x38] sm:$0xff] %v5090_v39  ;;  %v4204_v15 = vmax.f32 %v4132_v13, %v4180_v44  ;;  %v5091_v47 = vmax.f32 %v5017_v14, 0.0 }
 0x3a4   :  { %5112 = vst [vmem:[#allocation2 + $0x28] sm:$0xff] %v5088_v22  ;;  %v5089_v53 = vmax.f32 %v5009_v23, 0.0  ;;  %v6319_v5 = vpop.f32.mrb[208].mxu0 }
 0x3a5   :  { %v5132_v30 = vld [vmem:[#allocation2 + $0x8] ss:$4 sm:$0xff]  ;;  %v5138_v40 = vld [vmem:[#allocation2 + $0x9] ss:$4 sm:$0xff]  ;;  %4228 = vst [vmem:[#allocation2 + $0xc0] sm:$0xff] %v4204_v15  ;;  %5115 = vst [vmem:[#allocation2 + $0x40] sm:$0xff] %v5091_v47  ;;  %v4444_v26 = vpack.c.bf16 %v4204_v15, %v8573_v4 }
 0x3a6   :  { %v6320_v59 = vpop.f32.mrb[209].mxu0  ;;  %v5144_v21 = vmax.f32 %v5132_v30, %v5138_v40  ;;  %5113 = vst [vmem:[#allocation2 + $0x30] sm:$0xff] %v5089_v53  ;;  %v5150_v33 = vld [vmem:[#allocation2 + $0xa] ss:$4 sm:$0xff]  ;;  %v5162_v8 = vld [vmem:[#allocation2 + $0xb] ss:$4 sm:$0xff] }
 0x3a7   :  { %v6321_v38 = vadd.f32 %v6320_v59, %v6319_v5  ;;  %v6322_v12 = vpop.f32.mrb[210].mxu0  ;;  %4946 = vmatprep.mubr.bf16.mxu0 %v4444_v26 }
 0x3a8   :  { %v6323_v1 = vpop.f32.mrb[211].mxu0  ;;  %v5156_v57 = vmax.f32 %v5144_v21, %v5150_v33 }
 0x3a9   :  { %v6324_v18 = vadd.f32 %v6323_v1, %v6322_v12  ;;  %v4893_v9 = vadd.f32 %v6321_v38, %v8571_v31 }
 0x3aa   :  { %v5168_v49 = vmax.f32 %v5156_v57, %v5162_v8  ;;  %v7007_v57 = vld [vmem:[#allocation10 + $0x1e0] sm:$0xff]  }
 0x3ab   :  { %v4896_v54 = vadd.f32 %v6324_v18, %v8571_v31 }
 0x3ac   :  { %5174 = vst [vmem:[#allocation2 + $0x8] sm:$0xff] %v5168_v49  ;;  %v4300_v19 = vld [vmem:[#allocation2 + $0xbf] sm:$0xff] }
 0x3ad   :  { %v4479_v52 = vld [vmem:[#allocation2 + $0xb9] sm:$0xff]  ;;  %v4480_v34 = vld [vmem:[#allocation2 + $0xc1] sm:$0xff]  ;;  %v4312_v55 = vpack.c.bf16 %v4300_v19, %v4299_v50 }
 0x3ae   :  { %v5133_v46 = vld [vmem:[#allocation2 + $0x28] ss:$4 sm:$0xff]  ;;  %v5139_v4 = vld [vmem:[#allocation2 + $0x29] ss:$4 sm:$0xff]  ;;  %v4492_v62 = vpack.c.bf16 %v4480_v34, %v4479_v52  ;;  %v5151_v6 = vld [vmem:[#allocation2 + $0x2a] ss:$4 sm:$0xff] }
 0x3af   :  { %v5145_v45 = vmax.f32 %v5133_v46, %v5139_v4  ;;  %v4396_v58 = vmul.bf16 %v6989_v3, %v4312_v55  ;;  %v5163_v51 = vld [vmem:[#allocation2 + $0x2b] ss:$4 sm:$0xff] }
 0x3b0   :  { %v4576_v63 = vmul.bf16 %v6990_v25, %v4492_v62 }
 0x3b1   :  { %v5157_v48 = vmax.f32 %v5145_v45, %v5151_v6  ;;  %4947 = vmatmul.mubr.bf16.gmra.mrb[236].mxu0 %v4396_v58 }
 0x3b2   :  { %6697 = vmatmul.mubr.bf16.gmra.mrb[212].mxu1 %v4576_v63  ;;  %6716 = vmatprep.mubr.msk.bf16.mxu0 %vm7151_vm2, %v8501_v24 }
 0x3b3   :  { %v5169_v61 = vmax.f32 %v5157_v48, %v5163_v51  ;;  %v5192_v2 = vld [vmem:[#allocation2 + $0x7] sm:$0xff] }
 0x3b5   :  { %5175 = vst [vmem:[#allocation2 + $0x10] sm:$0xff] %v5169_v61  ;;  %v5231_v60 = vpack.c.bf16 %v5169_v61, %v5168_v49 }
 0x3b7   :  { %5512 = vmatprep.mubr.bf16.mxu1 %v5231_v60 }
 0x3bc   :  { %v5193_v35 = vld [vmem:[#allocation2 + $0xf] sm:$0xff] }
 0x3bd   :  { %v5198_v36 = vpack.c.bf16 %v5193_v35, %v5192_v2  ;;  %v5237_v18 = vld [vmem:[#allocation2 + $0x9] sm:$0xff] }
 0x3bf   :  { %v5219_v20 = vmul.bf16 %v6998_v10, %v5198_v36 }
 0x3c1   :  { %5513 = vmatmul.mubr.bf16.vlgmr.msra.gmra.mrb[216].mxu1 %v5219_v20 }
 0x3c4   :  { %v6325_v11 = vpop.f32.mrb[212].mxu0 }
 0x3c5   :  { %v6326_v16 = vpop.f32.mrb[213].mxu0 }
 0x3c6   :  { %v6327_v37 = vadd.f32 %v6326_v16, %v6325_v11  ;;  %v6328_v42 = vpop.f32.mrb[214].mxu0 }
 0x3c7   :  { %v6329_v41 = vpop.f32.mrb[215].mxu0 }
 0x3c8   :  { %v6330_v0 = vadd.f32 %v6329_v41, %v6328_v42  ;;  %v4901_v43 = vadd.f32 %v6327_v37, %v8571_v31 }
 0x3ca   :  { %v4904_v28 = vadd.f32 %v6330_v0, %v8571_v31 }
 0x3d4   :  { %v6686_v56 = vpop.f32.mrb[200].mxu1 }
 0x3d5   :  { %v5030_v17 = vadd.f32 %v6686_v56, %v4901_v43  ;;  %v5021_v29 = vpop.f32.mrb[201].mxu1 }
 0x3d6   :  { %v5022_v39 = vadd.f32 %v5021_v29, %v4893_v9  ;;  %v6687_v27 = vpop.f32.mrb[202].mxu1 }
 0x3d7   :  { %v5094_v7 = vmax.f32 %v5030_v17, 0.0  ;;  %v5033_v13 = vadd.f32 %v6687_v27, %v4904_v28  ;;  %v5024_v14 = vpop.f32.mrb[203].mxu1 }
 0x3d8   :  { %v5092_v32 = vmax.f32 %v5022_v39, 0.0  ;;  %v5025_v44 = vadd.f32 %v5024_v14, %v4896_v54  ;;  %v7008_v54 = vld [vmem:[#allocation9 + $0x1e8] sm:$0xff]  }
 0x3d9   :  { %5118 = vst [vmem:[#allocation2 + $0x58] sm:$0xff] %v5094_v7  ;;  %v5095_v22 = vmax.f32 %v5033_v13, 0.0 }
 0x3da   :  { %5116 = vst [vmem:[#allocation2 + $0x48] sm:$0xff] %v5092_v32  ;;  %v5093_v23 = vmax.f32 %v5025_v44, 0.0 }
 0x3db   :  { %5119 = vst [vmem:[#allocation2 + $0x60] sm:$0xff] %v5095_v22 }
 0x3dc   :  { %5117 = vst [vmem:[#allocation2 + $0x50] sm:$0xff] %v5093_v23 }
 0x3e3   :  { %v5134_v15 = vld [vmem:[#allocation2 + $0x48] ss:$4 sm:$0xff]  ;;  %v5140_v47 = vld [vmem:[#allocation2 + $0x49] ss:$4 sm:$0xff]  ;;  %v5152_v30 = vld [vmem:[#allocation2 + $0x4a] ss:$4 sm:$0xff] }
 0x3e4   :  { %v5146_v53 = vmax.f32 %v5134_v15, %v5140_v47  ;;  %v6331_v5 = vpop.f32.mrb[216].mxu0  ;;  %v5164_v38 = vld [vmem:[#allocation2 + $0x4b] ss:$4 sm:$0xff] }
 0x3e5   :  { %v6332_v40 = vpop.f32.mrb[217].mxu0 }
 0x3e6   :  { %v5158_v59 = vmax.f32 %v5146_v53, %v5152_v30  ;;  %v6333_v26 = vadd.f32 %v6332_v40, %v6331_v5  ;;  %v6334_v21 = vpop.f32.mrb[218].mxu0 }
 0x3e7   :  { %v6335_v12 = vpop.f32.mrb[219].mxu0 }
 0x3e8   :  { %v5170_v33 = vmax.f32 %v5158_v59, %v5164_v38  ;;  %v6336_v1 = vadd.f32 %v6335_v12, %v6334_v21  ;;  %v4909_v62 = vadd.f32 %v6333_v26, %v8571_v31 }
 0x3ea   :  { %5176 = vst [vmem:[#allocation2 + $0x18] sm:$0xff] %v5170_v33  ;;  %v4912_v51 = vadd.f32 %v6336_v1, %v8571_v31 }
 0x3f1   :  { %v5238_v8 = vld [vmem:[#allocation2 + $0x11] sm:$0xff] }
 0x3f2   :  { %v5243_v49 = vpack.c.bf16 %v5238_v8, %v5237_v18  ;;  %v5194_v7 = vld [vmem:[#allocation2 + $0x17] sm:$0xff] }
 0x3f4   :  { %v5264_v50 = vmul.bf16 %v7007_v57, %v5243_v49 }
 0x3f6   :  { %6717 = vmatmul.mubr.bf16.vlgmr.msra.gmra.mrb[240].mxu0 %v5264_v50 }
 0x3f7   :  { %6720 = vmatprep.mubr.msk.bf16.mxu0 %vm7151_vm2, %v8501_v24 }
 0x404   :  { %v6337_v3 = vpop.f32.mrb[220].mxu0 }
 0x405   :  { %v6338_v25 = vpop.f32.mrb[221].mxu0 }
 0x406   :  { %v6339_v19 = vadd.f32 %v6338_v25, %v6337_v3  ;;  %v6340_v52 = vpop.f32.mrb[222].mxu0 }
 0x407   :  { %v6341_v34 = vpop.f32.mrb[223].mxu0 }
 0x408   :  { %v6342_v46 = vadd.f32 %v6341_v34, %v6340_v52  ;;  %v4917_v4 = vadd.f32 %v6339_v19, %v8571_v31 }
 0x40a   :  { %v4920_v58 = vadd.f32 %v6342_v46, %v8571_v31 }
 0x414   :  { %v6690_v55 = vpop.f32.mrb[204].mxu1 }
 0x415   :  { %v5046_v45 = vadd.f32 %v6690_v55, %v4917_v4  ;;  %v5037_v6 = vpop.f32.mrb[205].mxu1 }
 0x416   :  { %v5038_v63 = vadd.f32 %v5037_v6, %v4909_v62  ;;  %v6691_v48 = vpop.f32.mrb[206].mxu1 }
 0x417   :  { %v5098_v61 = vmax.f32 %v5046_v45, 0.0  ;;  %v5049_v60 = vadd.f32 %v6691_v48, %v4920_v58  ;;  %v5040_v10 = vpop.f32.mrb[207].mxu1 }
 0x418   :  { %v5096_v2 = vmax.f32 %v5038_v63, 0.0  ;;  %v5041_v35 = vadd.f32 %v5040_v10, %v4912_v51  ;;  %v7009_v51 = vld [vmem:[#allocation10 + $0x1e8] sm:$0xff]  }
 0x419   :  { %5122 = vst [vmem:[#allocation2 + $0x78] sm:$0xff] %v5098_v61  ;;  %v5099_v36 = vmax.f32 %v5049_v60, 0.0 }
 0x41a   :  { %5120 = vst [vmem:[#allocation2 + $0x68] sm:$0xff] %v5096_v2  ;;  %v5097_v20 = vmax.f32 %v5041_v35, 0.0 }
 0x41b   :  { %5123 = vst [vmem:[#allocation2 + $0x80] sm:$0xff] %v5099_v36 }
 0x41c   :  { %5121 = vst [vmem:[#allocation2 + $0x70] sm:$0xff] %v5097_v20 }
 0x423   :  { %v5135_v11 = vld [vmem:[#allocation2 + $0x68] ss:$4 sm:$0xff]  ;;  %v5141_v16 = vld [vmem:[#allocation2 + $0x69] ss:$4 sm:$0xff]  ;;  %v5153_v41 = vld [vmem:[#allocation2 + $0x6a] ss:$4 sm:$0xff] }
 0x424   :  { %v5147_v37 = vmax.f32 %v5135_v11, %v5141_v16  ;;  %v6343_v42 = vpop.f32.mrb[224].mxu0  ;;  %v5165_v17 = vld [vmem:[#allocation2 + $0x6b] ss:$4 sm:$0xff] }
 0x425   :  { %v6344_v0 = vpop.f32.mrb[225].mxu0 }
 0x426   :  { %v5159_v43 = vmax.f32 %v5147_v37, %v5153_v41  ;;  %v6345_v56 = vadd.f32 %v6344_v0, %v6343_v42  ;;  %v6346_v9 = vpop.f32.mrb[226].mxu0 }
 0x427   :  { %v6347_v29 = vpop.f32.mrb[227].mxu0 }
 0x428   :  { %v5171_v28 = vmax.f32 %v5159_v43, %v5165_v17  ;;  %v6348_v39 = vadd.f32 %v6347_v29, %v6346_v9  ;;  %v4925_v40 = vadd.f32 %v6345_v56, %v8571_v31 }
 0x42a   :  { %5177 = vst [vmem:[#allocation2 + $0x20] sm:$0xff] %v5171_v28  ;;  %v5232_v27 = vpack.c.bf16 %v5171_v28, %v5170_v33  ;;  %v4928_v33 = vadd.f32 %v6348_v39, %v8571_v31 }
 0x42c   :  { %5520 = vmatprep.mubr.bf16.mxu1 %v5232_v27 }
 0x431   :  { %v5195_v13 = vld [vmem:[#allocation2 + $0x1f] sm:$0xff] }
 0x432   :  { %v5199_v14 = vpack.c.bf16 %v5195_v13, %v5194_v7  ;;  %v5239_v61 = vld [vmem:[#allocation2 + $0x19] sm:$0xff] }
 0x434   :  { %v5220_v32 = vmul.bf16 %v7008_v54, %v5199_v14 }
 0x436   :  { %5521 = vmatmul.mubr.bf16.gmra.mrb[220].mxu1 %v5220_v32 }
 0x444   :  { %v6349_v44 = vpop.f32.mrb[228].mxu0 }
 0x445   :  { %v6350_v22 = vpop.f32.mrb[229].mxu0 }
 0x446   :  { %v6351_v23 = vadd.f32 %v6350_v22, %v6349_v44  ;;  %v6352_v15 = vpop.f32.mrb[230].mxu0 }
 0x447   :  { %v6353_v47 = vpop.f32.mrb[231].mxu0 }
 0x448   :  { %v6354_v53 = vadd.f32 %v6353_v47, %v6352_v15  ;;  %v4933_v5 = vadd.f32 %v6351_v23, %v8571_v31 }
 0x44a   :  { %v4936_v21 = vadd.f32 %v6354_v53, %v8571_v31 }
 0x454   :  { %v6694_v30 = vpop.f32.mrb[208].mxu1 }
 0x455   :  { %v5062_v59 = vadd.f32 %v6694_v30, %v4933_v5  ;;  %v5053_v26 = vpop.f32.mrb[209].mxu1 }
 0x456   :  { %v5054_v38 = vadd.f32 %v5053_v26, %v4925_v40  ;;  %v6695_v12 = vpop.f32.mrb[210].mxu1 }
 0x457   :  { %v5102_v1 = vmax.f32 %v5062_v59, 0.0  ;;  %v5065_v57 = vadd.f32 %v6695_v12, %v4936_v21  ;;  %v5056_v18 = vpop.f32.mrb[211].mxu1  ;;  %v7010_v12 = vld [vmem:[#allocation9 + $0x1f0] sm:$0xff]  }
 0x458   :  { %v5100_v8 = vmax.f32 %v5054_v38, 0.0  ;;  %v5057_v49 = vadd.f32 %v5056_v18, %v4928_v33  ;;  %v7011_v33 = vld [vmem:[#allocation10 + $0x1f0] sm:$0xff]  }
 0x459   :  { %5126 = vst [vmem:[#allocation2 + $0x98] sm:$0xff] %v5102_v1  ;;  %v5103_v50 = vmax.f32 %v5065_v57, 0.0 }
 0x45a   :  { %5124 = vst [vmem:[#allocation2 + $0x88] sm:$0xff] %v5100_v8  ;;  %v5101_v3 = vmax.f32 %v5057_v49, 0.0 }
 0x45b   :  { %5127 = vst [vmem:[#allocation2 + $0xa0] sm:$0xff] %v5103_v50 }
 0x45c   :  { %5125 = vst [vmem:[#allocation2 + $0x90] sm:$0xff] %v5101_v3 }
 0x463   :  { %v5136_v25 = vld [vmem:[#allocation2 + $0x88] ss:$4 sm:$0xff]  ;;  %v5142_v19 = vld [vmem:[#allocation2 + $0x89] ss:$4 sm:$0xff]  ;;  %v5154_v46 = vld [vmem:[#allocation2 + $0x8a] ss:$4 sm:$0xff] }
 0x464   :  { %v5148_v52 = vmax.f32 %v5136_v25, %v5142_v19  ;;  %v6355_v34 = vpop.f32.mrb[232].mxu0  ;;  %v5166_v6 = vld [vmem:[#allocation2 + $0x8b] ss:$4 sm:$0xff]  ;;  %v8619_v25 = vld [vmem:[%s8646_s4 + $0x2] ss:$0 sm:$0xff] }
 0x465   :  { %v6356_v4 = vpop.f32.mrb[233].mxu0 }
 0x466   :  { %v5160_v55 = vmax.f32 %v5148_v52, %v5154_v46  ;;  %v6357_v62 = vadd.f32 %v6356_v4, %v6355_v34  ;;  %v6358_v45 = vpop.f32.mrb[234].mxu0 }
 0x467   :  { %v6359_v58 = vpop.f32.mrb[235].mxu0 }
 0x468   :  { %v5172_v63 = vmax.f32 %v5160_v55, %v5166_v6  ;;  %v6360_v48 = vadd.f32 %v6359_v58, %v6358_v45  ;;  %v4941_v20 = vadd.f32 %v6357_v62, %v8571_v31 }
 0x46a   :  { %5178 = vst [vmem:[#allocation2 + $0x28] sm:$0xff] %v5172_v63  ;;  %v4944_v43 = vadd.f32 %v6360_v48, %v8571_v31  ;;  %v7013_v48 = vld [vmem:[#allocation7 + $0x8] sm:$0xff]  }
 0x471   :  { %v5240_v60 = vld [vmem:[#allocation2 + $0x21] sm:$0xff] }
 0x472   :  { %v5244_v10 = vpack.c.bf16 %v5240_v60, %v5239_v61  ;;  %v5196_v38 = vld [vmem:[#allocation2 + $0x27] sm:$0xff]  ;;  %v7016_v60 = vld [vmem:[#allocation7 + $0x20] sm:$0xff]  }
 0x473   :  { %v7015_v61 = vld [vmem:[#allocation7 + $0x18] sm:$0xff]  }
 0x474   :  { %v5265_v2 = vmul.bf16 %v7009_v51, %v5244_v10  ;;  %v7014_v51 = vld [vmem:[#allocation7 + $0x10] sm:$0xff]   ;;  %v7017_v10 = vld [vmem:[#allocation7 + $0x28] sm:$0xff]  }
 0x476   :  { %6721 = vmatmul.mubr.bf16.gmra.mrb[244].mxu0 %v5265_v2 }
 0x477   :  { %6724 = vmatprep.mubr.msk.bf16.mxu0 %vm7151_vm2, %v8501_v24 }
 0x484   :  { %v6361_v35 = vpop.f32.mrb[236].mxu0 }
 0x485   :  { %v6698_v36 = vpop.f32.mrb[212].mxu1  ;;  %v6362_v11 = vpop.f32.mrb[237].mxu0 }
 0x486   :  { %v5069_v16 = vpop.f32.mrb[213].mxu1  ;;  %v6363_v37 = vadd.f32 %v6362_v11, %v6361_v35  ;;  %v6364_v41 = vpop.f32.mrb[238].mxu0  ;;  %v7018_v35 = vld [vmem:[#allocation7 + $0x30] sm:$0xff]  }
 0x487   :  { %v5070_v42 = vadd.f32 %v5069_v16, %v4941_v20  ;;  %v6699_v0 = vpop.f32.mrb[214].mxu1  ;;  %v6365_v56 = vpop.f32.mrb[239].mxu0 }
 0x488   :  { %v5072_v9 = vpop.f32.mrb[215].mxu1  ;;  %v4949_v17 = vadd.f32 %v6363_v37, %v8571_v31  ;;  %v6366_v28 = vadd.f32 %v6365_v56, %v6364_v41  ;;  %v7019_v37 = vld [vmem:[#allocation7 + $0x38] sm:$0xff]  }
 0x489   :  { %v5104_v29 = vmax.f32 %v5070_v42, 0.0  ;;  %v5073_v39 = vadd.f32 %v5072_v9, %v4944_v43 }
 0x48a   :  { %v5078_v24 = vadd.f32 %v6698_v36, %v4949_v17  ;;  %v4952_v27 = vadd.f32 %v6366_v28, %v8571_v31 }
 0x48b   :  { %5128 = vst [vmem:[#allocation2 + $0xa8] sm:$0xff] %v5104_v29  ;;  %v5105_v54 = vmax.f32 %v5073_v39, 0.0 }
 0x48c   :  { %v5106_v7 = vmax.f32 %v5078_v24, 0.0  ;;  %v5081_v13 = vadd.f32 %v6699_v0, %v4952_v27 }
 0x48d   :  { %5129 = vst [vmem:[#allocation2 + $0xb0] sm:$0xff] %v5105_v54 }
 0x48e   :  { %5130 = vst [vmem:[#allocation2 + $0xb8] sm:$0xff] %v5106_v7  ;;  %v5107_v14 = vmax.f32 %v5081_v13, 0.0 }
 0x490   :  { %5131 = vst [vmem:[#allocation2 + $0xc0] sm:$0xff] %v5107_v14 }
 0x494   :  { %v6403_v32 = vpop.f32.mrb[216].mxu1 }
 0x495   :  { %v6404_v44 = vpop.f32.mrb[217].mxu1 }
 0x496   :  { %v6405_v22 = vadd.f32 %v6404_v44, %v6403_v32  ;;  %v6406_v23 = vpop.f32.mrb[218].mxu1 }
 0x497   :  { %v6407_v15 = vpop.f32.mrb[219].mxu1  ;;  %v5137_v47 = vld [vmem:[#allocation2 + $0xa8] ss:$4 sm:$0xff]  ;;  %v5143_v53 = vld [vmem:[#allocation2 + $0xa9] ss:$4 sm:$0xff] }
 0x498   :  { %v6408_v5 = vadd.f32 %v6407_v15, %v6406_v23  ;;  %v5149_v30 = vmax.f32 %v5137_v47, %v5143_v53  ;;  %v5155_v40 = vld [vmem:[#allocation2 + $0xaa] ss:$4 sm:$0xff]  ;;  %v5167_v26 = vld [vmem:[#allocation2 + $0xab] ss:$4 sm:$0xff]  ;;  %v5515_v19 = vadd.f32 %v6405_v22, %v8619_v25 }
 0x49a   :  { %v5161_v59 = vmax.f32 %v5149_v30, %v5155_v40  ;;  %v5518_v4 = vadd.f32 %v6408_v5, %v8619_v25 }
 0x49c   :  { %v5173_v31 = vmax.f32 %v5161_v59, %v5167_v26 }
 0x49e   :  { %5179 = vst [vmem:[#allocation2 + $0x30] sm:$0xff] %v5173_v31  ;;  %v5233_v21 = vpack.c.bf16 %v5173_v31, %v5172_v63  ;;  %v7012_v63 = vld [vmem:[#allocation7] sm:$0xff]  }
 0x49f   :  { %6728 = vmatprep.subr.bf16.mxu1 %v7012_v63 }
 0x4a0   :  { %5528 = vmatprep.mubr.bf16.mxu1 %v5233_v21  ;;  %6729 = vmatpush3.bf16.msra.mxu1 %v7012_v63 }
 0x4a1   :  { %6730 = vmatprep.subr.bf16.mxu1 %v7013_v48 }
 0x4a4   :  { %6731 = vmatpush3.bf16.msra.mxu1 %v7013_v48 }
 0x4a5   :  { %v5197_v1 = vld [vmem:[#allocation2 + $0x2f] sm:$0xff]  ;;  %6732 = vmatprep.subr.bf16.mxu1 %v7014_v51 }
 0x4a6   :  { %v5241_v57 = vld [vmem:[#allocation2 + $0x29] sm:$0xff]  ;;  %v5242_v18 = vld [vmem:[#allocation2 + $0x31] sm:$0xff]  ;;  %v5200_v8 = vpack.c.bf16 %v5197_v1, %v5196_v38 }
 0x4a7   :  { %v5245_v49 = vpack.c.bf16 %v5242_v18, %v5241_v57 }
 0x4a8   :  { %v5221_v50 = vmul.bf16 %v7010_v12, %v5200_v8  ;;  %6733 = vmatpush3.bf16.msra.mxu1 %v7014_v51 }
 0x4a9   :  { %v5266_v3 = vmul.bf16 %v7011_v33, %v5245_v49  ;;  %6734 = vmatprep.subr.bf16.mxu1 %v7015_v61 }
 0x4aa   :  { %5529 = vmatmul.mubr.bf16.gmra.mrb[224].mxu1 %v5221_v50  ;;  %v6161_v50 = vld [vmem:[%s8648_s6] ss:$0 sm:$0xff] }
 0x4ab   :  { %6725 = vmatmul.mubr.bf16.gmra.mrb[248].mxu0 %v5266_v3 }
 0x4ac   :  { %6735 = vmatpush3.bf16.msra.mxu1 %v7015_v61 }
 0x4ad   :  { %6736 = vmatprep.subr.bf16.mxu1 %v7016_v60 }
 0x4b0   :  { %6737 = vmatpush3.bf16.msra.mxu1 %v7016_v60 }
 0x4b1   :  { %6738 = vmatprep.subr.bf16.mxu1 %v7017_v10 }
 0x4b4   :  { %6739 = vmatpush3.bf16.msra.mxu1 %v7017_v10 }
 0x4b5   :  { %6740 = vmatprep.subr.bf16.mxu1 %v7018_v35 }
 0x4b8   :  { %6741 = vmatpush3.bf16.msra.mxu1 %v7018_v35 }
 0x4b9   :  { %6742 = vmatprep.subr.bf16.mxu1 %v7019_v37 }
 0x4bc   :  { %6743 = vmatpush3.bf16.msra.mxu1 %v7019_v37 }
 0x4c9   :  { %v5571_v52 = vpop.f32.mrb[240].mxu0 }
 0x4ca   :  { %v5572_v34 = vadd.f32 %v5571_v52, %v5515_v19  ;;  %v6718_v46 = vpop.f32.mrb[241].mxu0 }
 0x4cb   :  { %v5574_v55 = vpop.f32.mrb[242].mxu0 }
 0x4cc   :  { %v5594_v62 = vmax.f32 %v5572_v34, 0.0  ;;  %v5575_v45 = vadd.f32 %v5574_v55, %v5518_v4  ;;  %v6719_v6 = vpop.f32.mrb[243].mxu0 }
 0x4ce   :  { %5600 = vst [vmem:[#allocation2 + $0x8] sm:$0xff] %v5594_v62  ;;  %v5595_v58 = vmax.f32 %v5575_v45, 0.0 }
 0x4d0   :  { %5601 = vst [vmem:[#allocation2 + $0x10] sm:$0xff] %v5595_v58 }
 0x4d7   :  { %v5606_v27 = vld [vmem:[#allocation2 + $0x8] ss:$2 sm:$0xff]  ;;  %v5610_v54 = vld [vmem:[#allocation2 + $0x9] ss:$2 sm:$0xff] }
 0x4d8   :  { %v5614_v14 = vmax.f32 %v5606_v27, %v5610_v54 }
 0x509   :  { %v6409_v2 = vpop.f32.mrb[220].mxu1 }
 0x50a   :  { %v6410_v36 = vpop.f32.mrb[221].mxu1 }
 0x50b   :  { %v6411_v20 = vadd.f32 %v6410_v36, %v6409_v2  ;;  %v6412_v11 = vpop.f32.mrb[222].mxu1 }
 0x50c   :  { %v6413_v16 = vpop.f32.mrb[223].mxu1 }
 0x50d   :  { %v6414_v42 = vadd.f32 %v6413_v16, %v6412_v11  ;;  %v5523_v41 = vadd.f32 %v6411_v20, %v8619_v25 }
 0x50f   :  { %v5526_v9 = vadd.f32 %v6414_v42, %v8619_v25 }
 0x549   :  { %v5579_v0 = vpop.f32.mrb[244].mxu0 }
 0x54a   :  { %v5580_v43 = vadd.f32 %v5579_v0, %v5523_v41  ;;  %v6722_v56 = vpop.f32.mrb[245].mxu0 }
 0x54b   :  { %v5582_v17 = vpop.f32.mrb[246].mxu0 }
 0x54c   :  { %v5596_v29 = vmax.f32 %v5580_v43, 0.0  ;;  %v5583_v28 = vadd.f32 %v5582_v17, %v5526_v9  ;;  %v6723_v39 = vpop.f32.mrb[247].mxu0 }
 0x54e   :  { %5602 = vst [vmem:[#allocation2 + $0x18] sm:$0xff] %v5596_v29  ;;  %v5597_v24 = vmax.f32 %v5583_v28, 0.0 }
 0x550   :  { %5603 = vst [vmem:[#allocation2 + $0x20] sm:$0xff] %v5597_v24 }
 0x557   :  { %v5608_v7 = vld [vmem:[#allocation2 + $0x18] ss:$2 sm:$0xff]  ;;  %v5612_v13 = vld [vmem:[#allocation2 + $0x19] ss:$2 sm:$0xff] }
 0x558   :  { %v5615_v32 = vmax.f32 %v5608_v7, %v5612_v13 }
 0x55a   :  { %v5617_v44 = vpack.c.bf16 %v5615_v32, %v5614_v14 }
 0x55c   :  { %6744 = vmatprep.mubr.bf16.mxu1 %v5617_v44 }
 0x57d   :  { %v6415_v22 = vpop.f32.mrb[224].mxu1 }
 0x57e   :  { %v5587_v23 = vpop.f32.mrb[248].mxu0  ;;  %v6416_v15 = vpop.f32.mrb[225].mxu1 }
 0x57f   :  { %v6726_v47 = vpop.f32.mrb[249].mxu0  ;;  %v6417_v53 = vadd.f32 %v6416_v15, %v6415_v22  ;;  %v6418_v5 = vpop.f32.mrb[226].mxu1 }
 0x580   :  { %v5590_v30 = vpop.f32.mrb[250].mxu0  ;;  %v6419_v40 = vpop.f32.mrb[227].mxu1 }
 0x581   :  { %v6727_v59 = vpop.f32.mrb[251].mxu0  ;;  %v5531_v26 = vadd.f32 %v6417_v53, %v8619_v25  ;;  %v6420_v31 = vadd.f32 %v6419_v40, %v6418_v5 }
 0x583   :  { %v5588_v21 = vadd.f32 %v5587_v23, %v5531_v26  ;;  %v5534_v38 = vadd.f32 %v6420_v31, %v8619_v25 }
 0x585   :  { %v5598_v12 = vmax.f32 %v5588_v21, 0.0  ;;  %v5591_v33 = vadd.f32 %v5590_v30, %v5534_v38 }
 0x587   :  { %5604 = vst [vmem:[#allocation2 + $0x28] sm:$0xff] %v5598_v12  ;;  %v5599_v1 = vmax.f32 %v5591_v33, 0.0 }
 0x589   :  { %5605 = vst [vmem:[#allocation2 + $0x30] sm:$0xff] %v5599_v1 }
 0x590   :  { %v5609_v57 = vld [vmem:[#allocation2 + $0x28] ss:$2 sm:$0xff]  ;;  %v5613_v18 = vld [vmem:[#allocation2 + $0x29] ss:$2 sm:$0xff] }
 0x591   :  { %v5616_v8 = vmax.f32 %v5609_v57, %v5613_v18 }
 0x593   :  { %v5618_v49 = vpack.c.bf16 %v5616_v8, %v5616_v8 }
 0x595   :  { %6745 = vmatmul.mubr.bf16.vlgmr.msra.gmra.mrb[228].mxu1 %v5618_v49 }
 0x668   :  { %v6746_v3 = vpop.f32.mrb[228].mxu1 }
 0x669   :  { %v5733_v19 = vadd.f32 %v6746_v3, %v6161_v50  ;;  %v5724_v52 = vpop.f32.mrb[229].mxu1 }
 0x66a   :  { %v5725_v25 = vadd.f32 %v6161_v50, %v5724_v52  ;;  %v6747_v34 = vpop.f32.mrb[230].mxu1 }
 0x66b   :  { %5740 = vst [vmem:[#allocation12 + $0x10] sm:$0xff] %v5733_v19  ;;  %v5727_v46 = vpop.f32.mrb[231].mxu1 }
 0x66c   :  { %5738 = vst [vmem:[#allocation12] sm:$0xff] %v5725_v25  ;;  %v5728_v4 = vadd.f32 %v6161_v50, %v5727_v46 }
 0x66e   :  { %5739 = vst [vmem:[#allocation12 + $0x8] sm:$0xff] %v5728_v4 }
 0x66f   :  { %7124 = shalt.err (!%p7121_p8)
}
 0x670   :  { %s7125_s15 = scalar_lea.hbm %s8651_s9, 384 }
 0x671   :  { %p7126_p9 = scmp.ne.s32.totalorder %s8651_s9, %s7125_s15  ;;  %p7129_p10 = scmp.lt.u32.totalorder %s7125_s15, %s8651_s9 }
 0x673   :  { %p7131_p11 = pnand %p7129_p10, %p7126_p9 }
 0x675   :  { %7134 = shalt.err (!%p7131_p11)
}
 0x676   :  { %s7153_s21 = smov 128   ;;  %s7154_s22 = smov 8  }
 0x677   :  { %5752 = dma.vmem_to_hbm [thread:$0]  %s5747_s10, 384, %s8651_s9, [#allocation6], %s7153_s21, %s7153_s21, %s7154_s22  }
 0x678   :  { %7141 = dma.done.wait [#allocation6], 384  }
 0x679   :  { %7142 = vsyncadd [#allocation6], 4294966912 }
 0x67a   :  { %5756 = vsyncpa [#allocation5], 1 }
 0x67b   :  { %5757 = vsyncpa [#allocation8], 1 }
 0x67c   :  { %5758 = vsyncpa [#allocation11], 1 }
 0x67d   :  { %5759 = vsyncpa [#allocation6], 1 }

</bundles_post_ra>
